<compile_context>
chip_gen: v7x
topology: tpu7x:2x2x1
jax: 0.10.0
libtpu: 0.0.40
codegen_flags: <defaults>
</compile_context>

<pallas_src>
import itertools
import functools

import jax
import jax.numpy as jnp
from jax import lax
from jax.experimental import pallas as pl
from jax.experimental.pallas import tpu as pltpu


# ----------------------------------------------------------------------------
# Pallas kernel: attention forward for one batch tile (bt batch elements).
# ----------------------------------------------------------------------------
def _attention_kernel(x_ref, wqkv_ref, bqkv_ref, ab_ref, wp_ref, bp_ref,
                      o_ref, acc_ref, *, num_heads, key_dim, d, bt, n_tok):
    R = bt * n_tok
    nh_kd = num_heads * key_dim

    x2 = x_ref[...]                                           # (R, C) bf16

    # One fused QKV projection on the full row slab (MXU M = R rows).
    # Softmax scale is already folded into the Q columns / bias in glue.
    qkv = jnp.dot(x2, wqkv_ref[...],
                  preferred_element_type=jnp.float32) + bqkv_ref[...]   # (R, h_total) f32
    qkv3 = qkv.reshape(bt, n_tok, qkv.shape[-1])              # (bt, Np, h_total)

    for h in range(num_heads):                                # static unroll (H small)
        q = qkv3[:, :, h * key_dim:(h + 1) * key_dim].astype(jnp.bfloat16)        # (bt,Np,kd)
        k = qkv3[:, :, nh_kd + h * key_dim: nh_kd + (h + 1) * key_dim].astype(jnp.bfloat16)
        v = qkv3[:, :, 2 * nh_kd + h * d: 2 * nh_kd + (h + 1) * d].astype(jnp.bfloat16)

        # scores = q @ k^T, batched over the batch tile (contraction on kd).
        s = lax.dot_general(q, k, (((2,), (2,)), ((0,), (0,))),
                            preferred_element_type=jnp.float32)         # (bt,Np,Np) f32
        s = s + ab_ref[h].astype(jnp.float32)                 # rel-pos bias (broadcast over bt)

        # numerically stable softmax (f32 elementwise — required on v5e)
        s = s - jnp.max(s, axis=-1, keepdims=True)
        p = jnp.exp(s)
        p = p * pl.reciprocal(jnp.sum(p, axis=-1, keepdims=True), approx=True)

        # attn @ v (batched) -> hardswish -> write head lane-slice of the
        # (R, dh) accumulator (no o_ref read-modify-write).
        oh = lax.dot_general(p.astype(jnp.bfloat16), v, (((2,), (1,)), ((0,), (0,))),
                             preferred_element_type=jnp.float32)        # (bt,Np,d) f32
        hs = oh * jnp.clip(oh + 3.0, 0.0, 6.0) * (1.0 / 6.0)            # hardswish f32
        acc_ref[:, h * d:(h + 1) * d] = hs.reshape(R, d)

    # One wide output projection (K = dh) + one bias add + ONE full-block store.
    out = jnp.dot(acc_ref[...].astype(jnp.bfloat16), wp_ref[...],
                  preferred_element_type=jnp.float32) + bp_ref[...]
    o_ref[...] = out.astype(o_ref.dtype)


def _round_up(x, m):
    return ((x + m - 1) // m) * m


def _tensorcores_per_chip():
    """2 TensorCores on v7x-class parts, 1 on v5e/v6e.  Conservative default 1."""
    try:
        kind = jax.devices()[0].device_kind.lower()
    except Exception:
        return 1
    return 2 if "v7" in kind else 1


def _pick_batch_block(B, n_tok, n_cores, max_rows=4096):
    """Single-TC chips: one big grid step (bt = B) unless the slab gets huge.
    Dual-TC chips: >= n_cores 'parallel' grid steps, each as large as fits."""
    divs = [dv for dv in range(1, B + 1) if B % dv == 0]
    fit = [dv for dv in divs if dv * n_tok <= max_rows] or [1]
    if n_cores <= 1:
        return max(fit)
    multi = [dv for dv in fit if B // dv >= n_cores]
    return max(multi) if multi else max(fit)


def attention_forward(x, wqkv_eff, bqkv_eff, ab, wproj_eff, bproj_eff, *,
                      num_heads, key_dim, attn_ratio, batch_block=None):
    B, N, C = x.shape
    d = int(attn_ratio * key_dim)
    dh = d * num_heads
    per_head = 2 * key_dim + d
    h_total = num_heads * per_head
    nh_kd = num_heads * key_dim
    dim = wproj_eff.shape[1]
    scale = float(key_dim) ** -0.5

    # Token-axis padding to a bf16-friendly sublane granule.
    Np = _round_up(N, 16)

    # ---- reorder fused qkv weight columns to [q_all | k_all | v_all] -------
    # (softmax scale folded into the Q columns / bias)
    w3 = wqkv_eff.reshape(C, num_heads, per_head)
    wqkv_re = jnp.concatenate(
        [(w3[:, :, :key_dim] * scale).reshape(C, nh_kd),
         w3[:, :, key_dim:2 * key_dim].reshape(C, nh_kd),
         w3[:, :, 2 * key_dim:].reshape(C, dh)], axis=1).astype(jnp.bfloat16)   # (C, h_total)
    b3 = bqkv_eff.reshape(num_heads, per_head)
    bqkv_re = jnp.concatenate(
        [(b3[:, :key_dim] * scale).reshape(-1),
         b3[:, key_dim:2 * key_dim].reshape(-1),
         b3[:, 2 * key_dim:].reshape(-1)])[None, :].astype(jnp.float32)          # (1, h_total)

    wp = wproj_eff.astype(jnp.bfloat16)                 # (dh, dim)  head-major rows
    bp = bproj_eff.reshape(1, dim).astype(jnp.float32)  # (1, dim)

    # Attention bias, padded: padded key columns get -1e9 (=> ~0 softmax weight).
    # Stored as bf16 (largest grid-invariant, N^2-scaling operand); added in f32.
    ab_p = jnp.zeros((num_heads, Np, Np), jnp.float32)
    ab_p = ab_p.at[:, :N, :N].set(ab.astype(jnp.float32))
    if Np > N:
        ab_p = ab_p.at[:, :, N:].set(-1e9)
    ab_p = ab_p.astype(jnp.bfloat16)

    # Pad + flatten activations; matmul operands bf16 (f32 accumulation in-kernel).
    x_p = jnp.zeros((B, Np, C), x.dtype).at[:, :N, :].set(x)
    x2 = x_p.reshape(B * Np, C).astype(jnp.bfloat16)

    bt = batch_block or _pick_batch_block(B, Np, _tensorcores_per_chip())
    R = bt * Np
    grid = (B // bt,)

    kernel = functools.partial(_attention_kernel, num_heads=num_heads,
                               key_dim=key_dim, d=d, bt=bt, n_tok=Np)

    cost = pl.CostEstimate(
        flops=int(2 * B * Np * C * h_total
                  + 2 * B * num_heads * Np * Np * (key_dim + d)
                  + 2 * B * Np * dh * dim),
        transcendentals=int(B * num_heads * Np * Np),
        bytes_accessed=int(x2.size * 2 + B * Np * dim * 4
                           + (wqkv_re.size + wp.size + ab_p.size) * 2
                           + (bqkv_re.size + bp.size) * 4),
    )

    out2 = pl.pallas_call(
        kernel,
        # TODO(synk): output could be emitted as bf16 to halve writeback if the
        # consumer tolerates it; kept f32 to match the PyTorch module dtype.
        out_shape=jax.ShapeDtypeStruct((B * Np, dim), jnp.float32),
        grid_spec=pltpu.PrefetchScalarGridSpec(
            num_scalar_prefetch=0,
            grid=grid,
            in_specs=[
                pl.BlockSpec((R, C), lambda i: (i, 0)),                   # x rows
                pl.BlockSpec((C, h_total), lambda i: (0, 0)),             # fused qkv W
                pl.BlockSpec((1, h_total), lambda i: (0, 0)),             # fused qkv b
                pl.BlockSpec((num_heads, Np, Np), lambda i: (0, 0, 0)),   # rel-pos bias
                pl.BlockSpec((dh, dim), lambda i: (0, 0)),                # proj W
                pl.BlockSpec((1, dim), lambda i: (0, 0)),                 # proj b
            ],
            out_specs=pl.BlockSpec((R, dim), lambda i: (i, 0)),
            scratch_shapes=[pltpu.VMEM((R, dh), jnp.float32)],            # head accumulator
        ),
        compiler_params=pltpu.CompilerParams(
            dimension_semantics=("parallel",)),
        cost_estimate=cost,
    )(x2, wqkv_re, bqkv_re, ab_p, wp, bp)

    return out2.reshape(B, Np, dim)[:, :N, :]


# ----------------------------------------------------------------------------
# Glue: parameter construction (deterministic), BN fusion, bias-table gather.
# ----------------------------------------------------------------------------
def fuse_linear_bn(w, gamma, beta, running_mean, running_var, eps=1e-5):
    """Fold BatchNorm1d (inference stats) into a bias-free Linear.

    w: (out, in) PyTorch-style linear weight.  Returns (w_eff (in,out), b_eff (out,))
    so that  y = x @ w_eff + b_eff  ==  BN(Linear(x)).
    """
    s = gamma / jnp.sqrt(running_var + eps)          # (out,)
    w_eff = (w * s[:, None]).T                       # (in, out)
    b_eff = beta - running_mean * s                  # (out,)
    return w_eff, b_eff


def build_attention_bias_idxs(resolution_x, resolution_z, template_number):
    """Replicates the 'ori_pos' branch of Attention.__init__."""
    points = list(itertools.product(range(resolution_x), range(resolution_x)))
    for i in range(template_number):
        rng = range(resolution_x + resolution_z * i,
                    resolution_x + resolution_z * (i + 1))
        points += list(itertools.product(rng, rng))
    N_xz = len(points)
    attention_offsets = {}
    idxs = []
    for p1 in points:
        for p2 in points:
            offset = (abs(p1[0] - p2[0]), abs(p1[1] - p2[1]))
            if offset not in attention_offsets:
                attention_offsets[offset] = len(attention_offsets)
            idxs.append(attention_offsets[offset])
    return jnp.array(idxs, dtype=jnp.int32).reshape(N_xz, N_xz), len(attention_offsets)


def reference_forward(x, wqkv, bqkv, ab, wproj, bproj, *, num_heads, key_dim,
                      attn_ratio):
    """Pure-JAX f32 reference mirroring the PyTorch forward (ori_pos branch)."""
    B, N, C = x.shape
    d = int(attn_ratio * key_dim)
    dh = d * num_heads
    scale = float(key_dim) ** -0.5
    qkv = x @ wqkv + bqkv                                        # (B, N, h)
    qkv = qkv.reshape(B, N, num_heads, 2 * key_dim + d)
    q = qkv[..., :key_dim].transpose(0, 2, 1, 3)                 # (B, H, N, kd)
    k = qkv[..., key_dim:2 * key_dim].transpose(0, 2, 1, 3)
    v = qkv[..., 2 * key_dim:].transpose(0, 2, 1, 3)             # (B, H, N, d)
    attn = jnp.einsum('bhnk,bhmk->bhnm', q, k) * scale + ab[None]
    attn = jax.nn.softmax(attn, axis=-1)
    out = jnp.einsum('bhnm,bhmd->bhnd', attn, v)
    out = out.transpose(0, 2, 1, 3).reshape(B, N, dh)
    out = jax.nn.hard_swish(out)
    return out @ wproj + bproj


# ----------------------------------------------------------------------------
if __name__ == "__main__":
    # Small-but-representative configuration.
    B = 8
    dim = 32
    key_dim = 8
    num_heads = 2
    attn_ratio = 2
    resolution_x = 4
    resolution_z = 2
    template_number = 1

    d = int(attn_ratio * key_dim)          # 16
    dh = d * num_heads                     # 32
    nh_kd = key_dim * num_heads            # 16
    h = dh + 2 * nh_kd                     # 64
    N = resolution_x ** 2 + template_number * resolution_z ** 2   # 20

    key = jax.random.PRNGKey(0)
    keys = jax.random.split(key, 12)

    # Input activations.
    x = jax.random.normal(keys[0], (B, N, dim), dtype=jnp.float32)

    # qkv Linear_BN params (Linear(dim, h, bias=False) + BatchNorm1d(h)).
    w_qkv = jax.random.normal(keys[1], (h, dim), dtype=jnp.float32) * 0.1
    g_qkv = 1.0 + 0.05 * jax.random.normal(keys[2], (h,), dtype=jnp.float32)
    b_qkv = 0.05 * jax.random.normal(keys[3], (h,), dtype=jnp.float32)
    rm_qkv = 0.05 * jax.random.normal(keys[4], (h,), dtype=jnp.float32)
    rv_qkv = 1.0 + 0.05 * jax.random.uniform(keys[5], (h,), dtype=jnp.float32)

    # proj Linear_BN params (Linear(dh, dim, bias=False) + BatchNorm1d(dim)).
    # (PyTorch inits this BN weight to 0; nonzero random values used so the
    #  test output is non-trivial — shapes/semantics are identical.)
    w_proj = jax.random.normal(keys[6], (dim, dh), dtype=jnp.float32) * 0.1
    g_proj = 1.0 + 0.05 * jax.random.normal(keys[7], (dim,), dtype=jnp.float32)
    b_proj = 0.05 * jax.random.normal(keys[8], (dim,), dtype=jnp.float32)
    rm_proj = 0.05 * jax.random.normal(keys[9], (dim,), dtype=jnp.float32)
    rv_proj = 1.0 + 0.05 * jax.random.uniform(keys[10], (dim,), dtype=jnp.float32)

    # Relative position bias table + index gather (ori_pos).
    idxs, n_offsets = build_attention_bias_idxs(resolution_x, resolution_z,
                                                template_number)
    attention_biases = 0.1 * jax.random.normal(keys[11], (num_heads, n_offsets),
                                               dtype=jnp.float32)
    ab = jnp.take(attention_biases, idxs, axis=1)                # (H, N, N)

    # Fuse BN (inference-mode running stats) into the linears.
    wqkv_eff, bqkv_eff = fuse_linear_bn(w_qkv, g_qkv, b_qkv, rm_qkv, rv_qkv)
    wproj_eff, bproj_eff = fuse_linear_bn(w_proj, g_proj, b_proj, rm_proj, rv_proj)
    # TODO(synk): training-mode BatchNorm (batch statistics) is not implemented;
    # inference semantics (running stats) are used, matching the fused module.

    out = attention_forward(x, wqkv_eff, bqkv_eff, ab, wproj_eff, bproj_eff,
                            num_heads=num_heads, key_dim=key_dim,
                            attn_ratio=attn_ratio)
    out = jax.block_until_ready(out)

    ref = reference_forward(x, wqkv_eff, bqkv_eff, ab, wproj_eff, bproj_eff,
                            num_heads=num_heads, key_dim=key_dim,
                            attn_ratio=attn_ratio)
    assert out.shape == (B, N, dim)
    # bf16 matmul operands / bf16 bias table with f32 accumulation vs all-f32 ref.
    assert jnp.allclose(out, ref, atol=3e-2, rtol=3e-2), "mismatch vs reference"

    print("KERNEL_OK")
</pallas_src>

<mosaic_0001>
module attributes {stable_mosaic.version = 11 : i64} {
  func.func @_attention_kernel(%arg0: i32, %arg1: memref<256x32xbf16, #tpu.memory_space<vmem>>, %arg2: memref<32x64xbf16, #tpu.memory_space<vmem>>, %arg3: memref<1x64xf32, #tpu.memory_space<vmem>>, %arg4: memref<2x32x32xbf16, #tpu.memory_space<vmem>>, %arg5: memref<32x32xbf16, #tpu.memory_space<vmem>>, %arg6: memref<1x32xf32, #tpu.memory_space<vmem>>, %arg7: memref<256x32xf32, #tpu.memory_space<vmem>>, %arg8: memref<256x32xf32, #tpu.memory_space<vmem>>) attributes {dimension_semantics = [#tpu.dimension_semantics<parallel>], iteration_bounds = array<i64: 1>, scalar_prefetch = 0 : i64, scratch_operands = 1 : i64, tpu.core_type = #tpu.core_type<tc>, window_params = [{transform_indices = @transform_0, window_bounds = array<i64: 256, 32>}, {pipeline_mode = #tpu.pipeline_mode<synchronous>, transform_indices = @transform_1, window_bounds = array<i64: 32, 64>}, {pipeline_mode = #tpu.pipeline_mode<synchronous>, transform_indices = @transform_2, window_bounds = array<i64: 1, 64>}, {pipeline_mode = #tpu.pipeline_mode<synchronous>, transform_indices = @transform_3, window_bounds = array<i64: 2, 32, 32>}, {pipeline_mode = #tpu.pipeline_mode<synchronous>, transform_indices = @transform_4, window_bounds = array<i64: 32, 32>}, {pipeline_mode = #tpu.pipeline_mode<synchronous>, transform_indices = @transform_5, window_bounds = array<i64: 1, 32>}, {transform_indices = @transform_6, window_bounds = array<i64: 256, 32>}]} {
    %c0 = arith.constant 0 : index
    %c0_0 = arith.constant 0 : index
    %0 = vector.load %arg1[%c0, %c0_0] : memref<256x32xbf16, #tpu.memory_space<vmem>>, vector<256x32xbf16>
    %c0_1 = arith.constant 0 : index
    %c0_2 = arith.constant 0 : index
    %1 = vector.load %arg2[%c0_1, %c0_2] : memref<32x64xbf16, #tpu.memory_space<vmem>>, vector<32x64xbf16>
    %cst = arith.constant dense<0.000000e+00> : vector<256x64xf32>
    %2 = tpu.matmul %0, %1, %cst {dimension_numbers = #tpu.dot_dimension_numbers<[1], [0], [0], [1], [0, 0, 1, 1], [], []>} : vector<256x32xbf16>, vector<32x64xbf16>, vector<256x64xf32> -> vector<256x64xf32>
    %c0_3 = arith.constant 0 : index
    %c0_4 = arith.constant 0 : index
    %3 = vector.load %arg3[%c0_3, %c0_4] : memref<1x64xf32, #tpu.memory_space<vmem>>, vector<1x64xf32>
    %4 = vector.broadcast %3 : vector<1x64xf32> to vector<256x64xf32>
    %5 = arith.addf %2, %4 : vector<256x64xf32>
    %6 = vector.shape_cast %5 : vector<256x64xf32> to vector<8x32x64xf32>
    %7 = vector.extract_strided_slice %6 {offsets = [0, 0, 0], sizes = [8, 32, 8], strides = [1, 1, 1]} : vector<8x32x64xf32> to vector<8x32x8xf32>
    %8 = arith.truncf %7 : vector<8x32x8xf32> to vector<8x32x8xbf16>
    %9 = vector.extract_strided_slice %6 {offsets = [0, 0, 16], sizes = [8, 32, 8], strides = [1, 1, 1]} : vector<8x32x64xf32> to vector<8x32x8xf32>
    %10 = arith.truncf %9 : vector<8x32x8xf32> to vector<8x32x8xbf16>
    %11 = vector.extract_strided_slice %6 {offsets = [0, 0, 32], sizes = [8, 32, 16], strides = [1, 1, 1]} : vector<8x32x64xf32> to vector<8x32x16xf32>
    %12 = arith.truncf %11 : vector<8x32x16xf32> to vector<8x32x16xbf16>
    %cst_5 = arith.constant dense<0.000000e+00> : vector<8x32x32xf32>
    %13 = tpu.matmul %8, %10, %cst_5 {dimension_numbers = #tpu.dot_dimension_numbers<[2], [2], [1], [1], [0, 0, 0, 1, 1, 1], [0], [0]>} : vector<8x32x8xbf16>, vector<8x32x8xbf16>, vector<8x32x32xf32> -> vector<8x32x32xf32>
    %c0_6 = arith.constant 0 : index
    %c0_7 = arith.constant 0 : index
    %c0_8 = arith.constant 0 : index
    %14 = vector.load %arg4[%c0_6, %c0_7, %c0_8] : memref<2x32x32xbf16, #tpu.memory_space<vmem>>, vector<1x32x32xbf16>
    %15 = vector.shape_cast %14 : vector<1x32x32xbf16> to vector<32x32xbf16>
    %16 = arith.extf %15 : vector<32x32xbf16> to vector<32x32xf32>
    %17 = vector.shape_cast %16 : vector<32x32xf32> to vector<1x32x32xf32>
    %18 = vector.broadcast %17 : vector<1x32x32xf32> to vector<8x32x32xf32>
    %19 = arith.addf %13, %18 : vector<8x32x32xf32>
    %cst_9 = arith.constant dense<0xFF800000> : vector<8x32xf32>
    %20 = vector.multi_reduction <maximumf>, %19, %cst_9 [2] : vector<8x32x32xf32> to vector<8x32xf32>
    %21 = vector.shape_cast %20 : vector<8x32xf32> to vector<8x32x1xf32>
    %22 = vector.broadcast %21 : vector<8x32x1xf32> to vector<8x32x32xf32>
    %23 = arith.subf %19, %22 : vector<8x32x32xf32>
    %24 = math.exp %23 : vector<8x32x32xf32>
    %cst_10 = arith.constant dense<0.000000e+00> : vector<8x32xf32>
    %25 = vector.multi_reduction <add>, %24, %cst_10 [2] : vector<8x32x32xf32> to vector<8x32xf32>
    %26 = vector.shape_cast %25 : vector<8x32xf32> to vector<8x32x1xf32>
    %27 = tpu.reciprocal %26 {approx = true} : vector<8x32x1xf32> -> vector<8x32x1xf32>
    %28 = vector.broadcast %27 : vector<8x32x1xf32> to vector<8x32x32xf32>
    %29 = arith.mulf %24, %28 : vector<8x32x32xf32>
    %30 = arith.truncf %29 : vector<8x32x32xf32> to vector<8x32x32xbf16>
    %cst_11 = arith.constant dense<0.000000e+00> : vector<8x32x16xf32>
    %31 = tpu.matmul %30, %12, %cst_11 {dimension_numbers = #tpu.dot_dimension_numbers<[2], [1], [1], [2], [0, 0, 0, 1, 1, 2], [0], [0]>} : vector<8x32x32xbf16>, vector<8x32x16xbf16>, vector<8x32x16xf32> -> vector<8x32x16xf32>
    %cst_12 = arith.constant 3.000000e+00 : f32
    %32 = vector.broadcast %cst_12 : f32 to vector<8x32x16xf32>
    %33 = arith.addf %31, %32 : vector<8x32x16xf32>
    %cst_13 = arith.constant 0.000000e+00 : f32
    %cst_14 = arith.constant 6.000000e+00 : f32
    %34 = vector.broadcast %cst_13 : f32 to vector<8x32x16xf32>
    %35 = arith.maximumf %34, %33 : vector<8x32x16xf32>
    %36 = vector.broadcast %cst_14 : f32 to vector<8x32x16xf32>
    %37 = arith.minimumf %36, %35 : vector<8x32x16xf32>
    %38 = arith.mulf %31, %37 : vector<8x32x16xf32>
    %cst_15 = arith.constant 0.166666672 : f32
    %39 = vector.broadcast %cst_15 : f32 to vector<8x32x16xf32>
    %40 = arith.mulf %38, %39 : vector<8x32x16xf32>
    %41 = vector.shape_cast %40 : vector<8x32x16xf32> to vector<256x16xf32>
    %c0_16 = arith.constant 0 : index
    %c0_17 = arith.constant 0 : index
    %42 = vector.load %arg8[%c0_16, %c0_17] : memref<256x32xf32, #tpu.memory_space<vmem>>, vector<256x16xf32>
    tpu.vector_store %arg8[%c0_16, %c0_17], %41 {strides = array<i32>} : memref<256x32xf32, #tpu.memory_space<vmem>>, vector<256x16xf32>,
    %43 = vector.extract_strided_slice %6 {offsets = [0, 0, 8], sizes = [8, 32, 8], strides = [1, 1, 1]} : vector<8x32x64xf32> to vector<8x32x8xf32>
    %44 = arith.truncf %43 : vector<8x32x8xf32> to vector<8x32x8xbf16>
    %45 = vector.extract_strided_slice %6 {offsets = [0, 0, 24], sizes = [8, 32, 8], strides = [1, 1, 1]} : vector<8x32x64xf32> to vector<8x32x8xf32>
    %46 = arith.truncf %45 : vector<8x32x8xf32> to vector<8x32x8xbf16>
    %47 = vector.extract_strided_slice %6 {offsets = [0, 0, 48], sizes = [8, 32, 16], strides = [1, 1, 1]} : vector<8x32x64xf32> to vector<8x32x16xf32>
    %48 = arith.truncf %47 : vector<8x32x16xf32> to vector<8x32x16xbf16>
    %cst_18 = arith.constant dense<0.000000e+00> : vector<8x32x32xf32>
    %49 = tpu.matmul %44, %46, %cst_18 {dimension_numbers = #tpu.dot_dimension_numbers<[2], [2], [1], [1], [0, 0, 0, 1, 1, 1], [0], [0]>} : vector<8x32x8xbf16>, vector<8x32x8xbf16>, vector<8x32x32xf32> -> vector<8x32x32xf32>
    %c1 = arith.constant 1 : index
    %c0_19 = arith.constant 0 : index
    %c0_20 = arith.constant 0 : index
    %50 = vector.load %arg4[%c1, %c0_19, %c0_20] : memref<2x32x32xbf16, #tpu.memory_space<vmem>>, vector<1x32x32xbf16>
    %51 = vector.shape_cast %50 : vector<1x32x32xbf16> to vector<32x32xbf16>
    %52 = arith.extf %51 : vector<32x32xbf16> to vector<32x32xf32>
    %53 = vector.shape_cast %52 : vector<32x32xf32> to vector<1x32x32xf32>
    %54 = vector.broadcast %53 : vector<1x32x32xf32> to vector<8x32x32xf32>
    %55 = arith.addf %49, %54 : vector<8x32x32xf32>
    %cst_21 = arith.constant dense<0xFF800000> : vector<8x32xf32>
    %56 = vector.multi_reduction <maximumf>, %55, %cst_21 [2] : vector<8x32x32xf32> to vector<8x32xf32>
    %57 = vector.shape_cast %56 : vector<8x32xf32> to vector<8x32x1xf32>
    %58 = vector.broadcast %57 : vector<8x32x1xf32> to vector<8x32x32xf32>
    %59 = arith.subf %55, %58 : vector<8x32x32xf32>
    %60 = math.exp %59 : vector<8x32x32xf32>
    %cst_22 = arith.constant dense<0.000000e+00> : vector<8x32xf32>
    %61 = vector.multi_reduction <add>, %60, %cst_22 [2] : vector<8x32x32xf32> to vector<8x32xf32>
    %62 = vector.shape_cast %61 : vector<8x32xf32> to vector<8x32x1xf32>
    %63 = tpu.reciprocal %62 {approx = true} : vector<8x32x1xf32> -> vector<8x32x1xf32>
    %64 = vector.broadcast %63 : vector<8x32x1xf32> to vector<8x32x32xf32>
    %65 = arith.mulf %60, %64 : vector<8x32x32xf32>
    %66 = arith.truncf %65 : vector<8x32x32xf32> to vector<8x32x32xbf16>
    %cst_23 = arith.constant dense<0.000000e+00> : vector<8x32x16xf32>
    %67 = tpu.matmul %66, %48, %cst_23 {dimension_numbers = #tpu.dot_dimension_numbers<[2], [1], [1], [2], [0, 0, 0, 1, 1, 2], [0], [0]>} : vector<8x32x32xbf16>, vector<8x32x16xbf16>, vector<8x32x16xf32> -> vector<8x32x16xf32>
    %cst_24 = arith.constant 3.000000e+00 : f32
    %68 = vector.broadcast %cst_24 : f32 to vector<8x32x16xf32>
    %69 = arith.addf %67, %68 : vector<8x32x16xf32>
    %cst_25 = arith.constant 0.000000e+00 : f32
    %cst_26 = arith.constant 6.000000e+00 : f32
    %70 = vector.broadcast %cst_25 : f32 to vector<8x32x16xf32>
    %71 = arith.maximumf %70, %69 : vector<8x32x16xf32>
    %72 = vector.broadcast %cst_26 : f32 to vector<8x32x16xf32>
    %73 = arith.minimumf %72, %71 : vector<8x32x16xf32>
    %74 = arith.mulf %67, %73 : vector<8x32x16xf32>
    %cst_27 = arith.constant 0.166666672 : f32
    %75 = vector.broadcast %cst_27 : f32 to vector<8x32x16xf32>
    %76 = arith.mulf %74, %75 : vector<8x32x16xf32>
    %77 = vector.shape_cast %76 : vector<8x32x16xf32> to vector<256x16xf32>
    %c0_28 = arith.constant 0 : index
    %c16 = arith.constant 16 : index
    %78 = vector.load %arg8[%c0_28, %c16] : memref<256x32xf32, #tpu.memory_space<vmem>>, vector<256x16xf32>
    tpu.vector_store %arg8[%c0_28, %c16], %77 {strides = array<i32>} : memref<256x32xf32, #tpu.memory_space<vmem>>, vector<256x16xf32>,
    %c0_29 = arith.constant 0 : index
    %c0_30 = arith.constant 0 : index
    %79 = vector.load %arg8[%c0_29, %c0_30] : memref<256x32xf32, #tpu.memory_space<vmem>>, vector<256x32xf32>
    %80 = arith.truncf %79 : vector<256x32xf32> to vector<256x32xbf16>
    %c0_31 = arith.constant 0 : index
    %c0_32 = arith.constant 0 : index
    %81 = vector.load %arg5[%c0_31, %c0_32] : memref<32x32xbf16, #tpu.memory_space<vmem>>, vector<32x32xbf16>
    %cst_33 = arith.constant dense<0.000000e+00> : vector<256x32xf32>
    %82 = tpu.matmul %80, %81, %cst_33 {dimension_numbers = #tpu.dot_dimension_numbers<[1], [0], [0], [1], [0, 0, 1, 1], [], []>} : vector<256x32xbf16>, vector<32x32xbf16>, vector<256x32xf32> -> vector<256x32xf32>
    %c0_34 = arith.constant 0 : index
    %c0_35 = arith.constant 0 : index
    %83 = vector.load %arg6[%c0_34, %c0_35] : memref<1x32xf32, #tpu.memory_space<vmem>>, vector<1x32xf32>
    %84 = vector.broadcast %83 : vector<1x32xf32> to vector<256x32xf32>
    %85 = arith.addf %82, %84 : vector<256x32xf32>
    %c0_36 = arith.constant 0 : index
    %c0_37 = arith.constant 0 : index
    %86 = vector.load %arg7[%c0_36, %c0_37] : memref<256x32xf32, #tpu.memory_space<vmem>>, vector<256x32xf32>
    tpu.vector_store %arg7[%c0_36, %c0_37], %85 {strides = array<i32>} : memref<256x32xf32, #tpu.memory_space<vmem>>, vector<256x32xf32>,
    return
  }
  func.func @transform_0(%arg0: i32) -> (i32, i32) {
    %c0_i32 = arith.constant 0 : i32
    %c0_i32_0 = arith.constant 0 : i32
    return %arg0, %c0_i32 : i32, i32
  }
  func.func @transform_1(%arg0: i32) -> (i32, i32) {
    %c0_i32 = arith.constant 0 : i32
    %c0_i32_0 = arith.constant 0 : i32
    %c0_i32_1 = arith.constant 0 : i32
    return %c0_i32, %c0_i32_0 : i32, i32
  }
  func.func @transform_2(%arg0: i32) -> (i32, i32) {
    %c0_i32 = arith.constant 0 : i32
    %c0_i32_0 = arith.constant 0 : i32
    %c0_i32_1 = arith.constant 0 : i32
    return %c0_i32, %c0_i32_0 : i32, i32
  }
  func.func @transform_3(%arg0: i32) -> (i32, i32, i32) {
    %c0_i32 = arith.constant 0 : i32
    %c0_i32_0 = arith.constant 0 : i32
    %c0_i32_1 = arith.constant 0 : i32
    %c0_i32_2 = arith.constant 0 : i32
    return %c0_i32, %c0_i32_0, %c0_i32_1 : i32, i32, i32
  }
  func.func @transform_4(%arg0: i32) -> (i32, i32) {
    %c0_i32 = arith.constant 0 : i32
    %c0_i32_0 = arith.constant 0 : i32
    %c0_i32_1 = arith.constant 0 : i32
    return %c0_i32, %c0_i32_0 : i32, i32
  }
  func.func @transform_5(%arg0: i32) -> (i32, i32) {
    %c0_i32 = arith.constant 0 : i32
    %c0_i32_0 = arith.constant 0 : i32
    %c0_i32_1 = arith.constant 0 : i32
    return %c0_i32, %c0_i32_0 : i32, i32
  }
  func.func @transform_6(%arg0: i32) -> (i32, i32) {
    %c0_i32 = arith.constant 0 : i32
    %c0_i32_0 = arith.constant 0 : i32
    return %arg0, %c0_i32 : i32, i32
  }
}

</mosaic_0001>

<bundles_post_ra>
// kernel: tpu_custom_call.1
= control target key start
LH: loop header
LB: loop body
LE: loop exit
PB: predicated region body
PF: predicated region fallthrough
CT: control target
= control target key end

     0   :  { %vm159_vm0 = vcmask 261120   ;;  %vm399_vm1 = vcmask 64512   ;;  %s4986_s13 = smov 104   ;;  %s4987_s14 = smov 120   ;;  %vm1946_vm2 = vcmask 130048   ;;  %vm3684_vm3 = vcmask 261248   ;;  %s6575_s1 = inlined_call_operand.vmem [shape: bf16[32,64], index: 1, kind: input, shape index: {}]   ;;  %s6576_s0 = inlined_call_operand.vmem [shape: bf16[256,32], index: 0, kind: input, shape index: {}]   ;;  %s6577_s2 = inlined_call_operand.vmem [shape: f32[1,64], index: 2, kind: input, shape index: {}]   ;;  %s6578_s3 = inlined_call_operand.vmem [shape: bf16[2,32,32], index: 3, kind: input, shape index: {}]   ;;  %s6579_s4 = inlined_call_operand.vmem [shape: bf16[32,32], index: 4, kind: input, shape index: {}]   ;;  %s6580_s5 = inlined_call_operand.vmem [shape: f32[1,32], index: 5, kind: input, shape index: {}]   ;;  %s6581_s6 = inlined_call_operand.vmem [shape: f32[256,32], index: 6, kind: output, shape index: {}]  }
   0x1   :  { %v4708_v0 = vld [vmem:[%s6575_s1] sm:$0xff]   ;;  %v4709_v1 = vld [vmem:[%s6575_s1 + $0x8] sm:$0xff]   ;;  %v4712_v4 = vld [vmem:[%s6576_s0 + $0x10] sm:$0xff]   ;;  %s4988_s15 = smov 80   ;;  %s4989_s23 = smov 16  }
   0x2   :  { %4338 = vmatprep.subr.bf16.mxu0 %v4708_v0  ;;  %v4710_v2 = vld [vmem:[%s6576_s0] sm:$0xff]   ;;  %v4711_v3 = vld [vmem:[%s6576_s0 + $0x8] sm:$0xff]   ;;  %v4713_v5 = vld [vmem:[%s6576_s0 + $0x18] sm:$0xff]  }
   0x3   :  { %4339 = vmatpush3.bf16.msra.mxu0 %v4708_v0  ;;  %4342 = vmatprep.mubr.msk.bf16.mxu0 %vm159_vm0, %v4710_v2  ;;  %v4714_v6 = vld [vmem:[%s6576_s0 + $0x20] sm:$0xff]   ;;  %v4715_v7 = vld [vmem:[%s6576_s0 + $0x28] sm:$0xff]   ;;  %v4716_v8 = vld [vmem:[%s6576_s0 + $0x30] sm:$0xff]  }
   0x4   :  { %4340 = vmatprep.subr.bf16.mxu0 %v4709_v1  ;;  %v4717_v9 = vld [vmem:[%s6576_s0 + $0x38] sm:$0xff]   ;;  %v4718_v10 = vld [vmem:[%s6576_s0 + $0x40] sm:$0xff]   ;;  %v4719_v11 = vld [vmem:[%s6576_s0 + $0x48] sm:$0xff]  }
   0x5   :  { %v4720_v12 = vld [vmem:[%s6576_s0 + $0x50] sm:$0xff]   ;;  %v4721_v13 = vld [vmem:[%s6576_s0 + $0x58] sm:$0xff]   ;;  %v4722_v14 = vld [vmem:[%s6576_s0 + $0x60] sm:$0xff]  }
   0x6   :  { %v4723_v15 = vld [vmem:[%s6576_s0 + $0x68] sm:$0xff]   ;;  %v4724_v16 = vld [vmem:[%s6576_s0 + $0x70] sm:$0xff]   ;;  %v4725_v17 = vld [vmem:[%s6576_s0 + $0x78] sm:$0xff]   ;;  %s4984_s0 = smov 112  }
   0x7   :  { %4341 = vmatpush3.bf16.msra.mxu0 %v4709_v1  ;;  %v5098_v19 = vld [vmem:[%s6577_s2] ss:$0 sm:$0xff]  ;;  %s4985_s2 = smov 96  }
   0xa   :  { %4343 = vmatmul.mubr.msk.bf16.vlgmr.msra.gmra.mrb[0].mxu0 %vm159_vm0, %v4711_v3 }
   0xb   :  { %4346 = vmatprep.mubr.msk.bf16.mxu0 %vm159_vm0, %v4712_v4 }
  0x12   :  { %4347 = vmatmul.mubr.msk.bf16.gmra.mrb[4].mxu0 %vm159_vm0, %v4713_v5 }
  0x13   :  { %4350 = vmatprep.mubr.msk.bf16.mxu0 %vm159_vm0, %v4714_v6 }
  0x1a   :  { %4351 = vmatmul.mubr.msk.bf16.gmra.mrb[8].mxu0 %vm159_vm0, %v4715_v7 }
  0x1b   :  { %4354 = vmatprep.mubr.msk.bf16.mxu0 %vm159_vm0, %v4716_v8 }
  0x22   :  { %4355 = vmatmul.mubr.msk.bf16.gmra.mrb[12].mxu0 %vm159_vm0, %v4717_v9 }
  0x23   :  { %4358 = vmatprep.mubr.msk.bf16.mxu0 %vm159_vm0, %v4718_v10 }
  0x2a   :  { %4359 = vmatmul.mubr.msk.bf16.gmra.mrb[16].mxu0 %vm159_vm0, %v4719_v11 }
  0x2b   :  { %4362 = vmatprep.mubr.msk.bf16.mxu0 %vm159_vm0, %v4720_v12 }
  0x32   :  { %4363 = vmatmul.mubr.msk.bf16.gmra.mrb[20].mxu0 %vm159_vm0, %v4721_v13 }
  0x33   :  { %4366 = vmatprep.mubr.msk.bf16.mxu0 %vm159_vm0, %v4722_v14 }
  0x3a   :  { %4367 = vmatmul.mubr.msk.bf16.gmra.mrb[24].mxu0 %vm159_vm0, %v4723_v15 }
  0x3b   :  { %4370 = vmatprep.mubr.msk.bf16.mxu0 %vm159_vm0, %v4724_v16 }
  0x42   :  { %4371 = vmatmul.mubr.msk.bf16.gmra.mrb[28].mxu0 %vm159_vm0, %v4725_v17 }
  0xdd   :  { %v4344_v18 = vpop.f32.mrb[0].mxu0 }
  0xde   :  { %v242_v20 = vpop.f32.mrb[1].mxu0  ;;  %v251_v22 = vadd.f32 %v4344_v18, %v5098_v19 }
  0xdf   :  { %v4345_v21 = vpop.f32.mrb[2].mxu0  ;;  %v243_v25 = vadd.f32 %v5098_v19, %v242_v20 }
  0xe0   :  { %v254_v23 = vadd.f32 %v4345_v21, %v5098_v19  ;;  %v245_v24 = vpop.f32.mrb[3].mxu0 }
  0xe1   :  { %v246_v26 = vadd.f32 %v5098_v19, %v245_v24 }
  0xe2   :  { %v5104_v27 = vpack.c.bf16 %v254_v23, %v251_v22 }
  0xe3   :  { %v5106_v28 = vpack.c.bf16 %v246_v26, %v243_v25 }
  0xe5   :  { %v4348_v29 = vpop.f32.mrb[4].mxu0  ;;  %395 = vrot.lane.b32.xlu0 %v5106_v28, %s4984_s0  ;;  %4378 = vmatprep.mubr.msk.bf16.mxu1 %vm399_vm1, %v5106_v28 }
  0xe6   :  { %v267_v30 = vadd.f32 %v4348_v29, %v5098_v19  ;;  %v258_v31 = vpop.f32.mrb[5].mxu0 }
  0xe7   :  { %v259_v32 = vadd.f32 %v5098_v19, %v258_v31  ;;  %v4349_v33 = vpop.f32.mrb[6].mxu0 }
  0xe8   :  { %v270_v34 = vadd.f32 %v4349_v33, %v5098_v19  ;;  %v261_v35 = vpop.f32.mrb[7].mxu0 }
  0xe9   :  { %v262_v36 = vadd.f32 %v5098_v19, %v261_v35  ;;  %397 = vrot.lane.b32.xlu0 %v5104_v27, %s4984_s0 }
  0xea   :  { %v5118_v37 = vpack.c.bf16 %v270_v34, %v267_v30 }
  0xeb   :  { %v5120_v38 = vpack.c.bf16 %v262_v36, %v259_v32 }
  0xed   :  { %v4352_v39 = vpop.f32.mrb[8].mxu0  ;;  %463 = vrot.lane.b32.xlu1 %v5120_v38, %s4984_s0 }
  0xee   :  { %v283_v40 = vadd.f32 %v4352_v39, %v5098_v19  ;;  %v274_v41 = vpop.f32.mrb[9].mxu0 }
  0xef   :  { %v275_v42 = vadd.f32 %v5098_v19, %v274_v41  ;;  %v4353_v43 = vpop.f32.mrb[10].mxu0 }
  0xf0   :  { %v286_v44 = vadd.f32 %v4353_v43, %v5098_v19  ;;  %v277_v45 = vpop.f32.mrb[11].mxu0 }
  0xf1   :  { %v278_v46 = vadd.f32 %v5098_v19, %v277_v45  ;;  %465 = vrot.lane.b32.xlu1 %v5118_v37, %s4984_s0 }
  0xf2   :  { %v5130_v47 = vpack.c.bf16 %v286_v44, %v283_v40 }
  0xf3   :  { %v5132_v48 = vpack.c.bf16 %v278_v46, %v275_v42 }
  0xf5   :  { %v4356_v49 = vpop.f32.mrb[12].mxu0  ;;  %532 = vrot.lane.b32.xlu1 %v5130_v47, %s4984_s0  ;;  %530 = vrot.lane.b32.xlu0 %v5132_v48, %s4984_s0 }
  0xf6   :  { %v299_v50 = vadd.f32 %v4356_v49, %v5098_v19  ;;  %v290_v51 = vpop.f32.mrb[13].mxu0 }
  0xf7   :  { %v291_v52 = vadd.f32 %v5098_v19, %v290_v51  ;;  %v4357_v53 = vpop.f32.mrb[14].mxu0 }
  0xf8   :  { %v302_v54 = vadd.f32 %v4357_v53, %v5098_v19  ;;  %v293_v55 = vpop.f32.mrb[15].mxu0 }
  0xf9   :  { %v294_v56 = vadd.f32 %v5098_v19, %v293_v55 }
  0xfa   :  { %v5142_v57 = vpack.c.bf16 %v302_v54, %v299_v50 }
  0xfb   :  { %v5144_v58 = vpack.c.bf16 %v294_v56, %v291_v52 }
  0xfc   :  { %599 = vrot.lane.b32.xlu1 %v5142_v57, %s4984_s0 }
  0xfd   :  { %v4360_v59 = vpop.f32.mrb[16].mxu0  ;;  %597 = vrot.lane.b32.xlu0 %v5144_v58, %s4984_s0 }
  0xfe   :  { %v315_v60 = vadd.f32 %v4360_v59, %v5098_v19  ;;  %v306_v61 = vpop.f32.mrb[17].mxu0 }
  0xff   :  { %v307_v62 = vadd.f32 %v5098_v19, %v306_v61  ;;  %v4361_v63 = vpop.f32.mrb[18].mxu0 }
 0x100   :  { %v318_v0 = vadd.f32 %v4361_v63, %v5098_v19  ;;  %v309_v1 = vpop.f32.mrb[19].mxu0 }
 0x101   :  { %v310_v2 = vadd.f32 %v5098_v19, %v309_v1 }
 0x102   :  { %v5154_v3 = vpack.c.bf16 %v318_v0, %v315_v60 }
 0x103   :  { %v5156_v4 = vpack.c.bf16 %v310_v2, %v307_v62 }
 0x104   :  { %666 = vrot.lane.b32.xlu1 %v5154_v3, %s4984_s0 }
 0x105   :  { %4410 = vmatprep.mubr.msk.bf16.mxu0 %vm399_vm1, %v5156_v4  ;;  %664 = vrot.lane.b32.xlu0 %v5156_v4, %s4984_s0  ;;  %v4364_v5 = vpop.f32.mrb[20].mxu0 }
 0x106   :  { %v331_v6 = vadd.f32 %v4364_v5, %v5098_v19  ;;  %v322_v7 = vpop.f32.mrb[21].mxu0 }
 0x107   :  { %v323_v8 = vadd.f32 %v5098_v19, %v322_v7  ;;  %v4365_v9 = vpop.f32.mrb[22].mxu0 }
 0x108   :  { %v334_v10 = vadd.f32 %v4365_v9, %v5098_v19  ;;  %v325_v11 = vpop.f32.mrb[23].mxu0 }
 0x109   :  { %v326_v12 = vadd.f32 %v5098_v19, %v325_v11 }
 0x10a   :  { %v5168_v13 = vpack.c.bf16 %v334_v10, %v331_v6 }
 0x10b   :  { %v5170_v14 = vpack.c.bf16 %v326_v12, %v323_v8 }
 0x10c   :  { %733 = vrot.lane.b32.xlu1 %v5168_v13, %s4984_s0 }
 0x10d   :  { %v4368_v15 = vpop.f32.mrb[24].mxu0  ;;  %731 = vrot.lane.b32.xlu0 %v5170_v14, %s4984_s0 }
 0x10e   :  { %v347_v16 = vadd.f32 %v4368_v15, %v5098_v19  ;;  %v338_v17 = vpop.f32.mrb[25].mxu0 }
 0x10f   :  { %v339_v18 = vadd.f32 %v5098_v19, %v338_v17  ;;  %v4369_v20 = vpop.f32.mrb[26].mxu0 }
 0x110   :  { %v350_v21 = vadd.f32 %v4369_v20, %v5098_v19  ;;  %v341_v22 = vpop.f32.mrb[27].mxu0 }
 0x111   :  { %v342_v23 = vadd.f32 %v5098_v19, %v341_v22 }
 0x112   :  { %v5180_v24 = vpack.c.bf16 %v350_v21, %v347_v16 }
 0x113   :  { %v5182_v25 = vpack.c.bf16 %v342_v23, %v339_v18 }
 0x114   :  { %800 = vrot.lane.b32.xlu1 %v5180_v24, %s4984_s0 }
 0x115   :  { %v4372_v26 = vpop.f32.mrb[28].mxu0  ;;  %798 = vrot.lane.b32.xlu0 %v5182_v25, %s4984_s0 }
 0x116   :  { %v363_v29 = vadd.f32 %v4372_v26, %v5098_v19  ;;  %v354_v30 = vpop.f32.mrb[29].mxu0  ;;  %v4171_v26 = vld [vmem:[%s6578_s3 + $0x8] sm:$0xff]  }
 0x117   :  { %v355_v31 = vadd.f32 %v5098_v19, %v354_v30  ;;  %v4373_v32 = vpop.f32.mrb[30].mxu0  ;;  %v5292_v30 = vunpack.c.l.bf16 %v4171_v26 }
 0x118   :  { %v366_v33 = vadd.f32 %v4373_v32, %v5098_v19  ;;  %v357_v34 = vpop.f32.mrb[31].mxu0 }
 0x119   :  { %v358_v35 = vadd.f32 %v5098_v19, %v357_v34 }
 0x11a   :  { %v5192_v36 = vpack.c.bf16 %v366_v33, %v363_v29  ;;  %v4156_v29 = vld [vmem:[%s6578_s3] sm:$0xff]  }
 0x11b   :  { %v5194_v39 = vpack.c.bf16 %v358_v35, %v355_v31  ;;  %v5294_v31 = vunpack.c.l.bf16 %v4156_v29  ;;  %v5296_v33 = vunpack.c.h.bf16 %v4156_v29 }
 0x11c   :  { %6593 = vst [vmem:[#allocation3_spill] sm:$0xff] %v5192_v36  ;;  %867 = vrot.lane.b32.xlu1 %v5192_v36, %s4984_s0 }
 0x11d   :  { %6594 = vst [vmem:[#allocation4_spill] sm:$0xff] %v5194_v39  ;;  %865 = vrot.lane.b32.xlu0 %v5194_v39, %s4984_s0 }
 0x120   :  { %1298 = vrot.lane.b32.xlu1 %v5106_v28, %s4985_s2 }
 0x121   :  { %1359 = vrot.lane.b32.xlu0 %v5120_v38, %s4985_s2 }
 0x124   :  { %1300 = vrot.lane.b32.xlu1 %v5104_v27, %s4985_s2 }
 0x125   :  { %1420 = vrot.lane.b32.xlu0 %v5132_v48, %s4985_s2 }
 0x128   :  { %1361 = vrot.lane.b32.xlu1 %v5118_v37, %s4985_s2 }
 0x129   :  { %1481 = vrot.lane.b32.xlu0 %v5144_v58, %s4985_s2 }
 0x12c   :  { %1422 = vrot.lane.b32.xlu1 %v5130_v47, %s4985_s2 }
 0x12d   :  { %1542 = vrot.lane.b32.xlu0 %v5156_v4, %s4985_s2 }
 0x130   :  { %1483 = vrot.lane.b32.xlu1 %v5142_v57, %s4985_s2 }
 0x131   :  { %1603 = vrot.lane.b32.xlu0 %v5170_v14, %s4985_s2 }
 0x134   :  { %1544 = vrot.lane.b32.xlu1 %v5154_v3, %s4985_s2 }
 0x138   :  { %1664 = vrot.lane.b32.xlu1 %v5182_v25, %s4985_s2 }
 0x13c   :  { %1605 = vrot.lane.b32.xlu1 %v5168_v13, %s4985_s2 }
 0x140   :  { %1666 = vrot.lane.b32.xlu1 %v5180_v24, %s4985_s2 }
 0x144   :  { %1727 = vrot.lane.b32.xlu1 %v5192_v36, %s4985_s2 }
 0x148   :  { %1725 = vrot.lane.b32.xlu1 %v5194_v39, %s4985_s2 }
 0x157   :  { %v396_v19 = vpop.permute.xlu0 %395 }
 0x158   :  { %4670 = vmatprep.subr.msk.bf16.mxu1 %vm399_vm1, %v396_v19  ;;  %v407_v40 = vsel %vm399_vm1, %v396_v19, 0 }
 0x159   :  { %4375 = vmatpush3.bf16.xpose.msra.mxu1 %v407_v40 }
 0x15b   :  { %v398_v41 = vpop.permute.xlu0 %397 }
 0x15c   :  { %4671 = vmatprep.subr.msk.bf16.mxu1 %vm399_vm1, %v398_v41  ;;  %v410_v42 = vsel %vm399_vm1, %v398_v41, 0  ;;  %v5304_v41 = vunpack.c.h.bf16 %v4171_v26 }
 0x15f   :  { %v464_v43 = vpop.permute.xlu1 %463 }
 0x160   :  { %v474_v44 = vsel %vm399_vm1, %v464_v43, 0 }
 0x161   :  { %4377 = vmatpush3.bf16.xpose.msra.mxu1 %v410_v42 }
 0x162   :  { %4672 = vmatprep.subr.msk.bf16.mxu1 %vm399_vm1, %v464_v43 }
 0x163   :  { %v466_v45 = vpop.permute.xlu1 %465 }
 0x164   :  { %v477_v50 = vsel %vm399_vm1, %v466_v45, 0 }
 0x167   :  { %v531_v46 = vpop.permute.xlu0 %530  ;;  %v533_v49 = vpop.permute.xlu1 %532 }
 0x168   :  { %4379 = vmatmul.mubr.msk.bf16.vlgmr.msra.gmra.mrb[0].mxu1 %vm399_vm1, %v5104_v27  ;;  %v541_v55 = vsel %vm399_vm1, %v531_v46, 0  ;;  %v544_v59 = vsel %vm399_vm1, %v533_v49, 0 }
 0x169   :  { %4383 = vmatpush3.bf16.xpose.msra.mxu1 %v474_v44  ;;  %4386 = vmatprep.mubr.msk.bf16.mxu1 %vm399_vm1, %v5120_v38 }
 0x16a   :  { %4673 = vmatprep.subr.msk.bf16.mxu1 %vm399_vm1, %v466_v45 }
 0x16e   :  { %v600_v52 = vpop.permute.xlu1 %599 }
 0x16f   :  { %v598_v51 = vpop.permute.xlu0 %597  ;;  %v611_v6 = vsel %vm399_vm1, %v600_v52, 0 }
 0x170   :  { %v608_v0 = vsel %vm399_vm1, %v598_v51, 0 }
 0x171   :  { %4385 = vmatpush3.bf16.xpose.msra.mxu1 %v477_v50 }
 0x172   :  { %4674 = vmatprep.subr.msk.bf16.mxu1 %vm399_vm1, %v531_v46 }
 0x176   :  { %v667_v54 = vpop.permute.xlu1 %666 }
 0x177   :  { %v665_v53 = vpop.permute.xlu0 %664  ;;  %v678_v60 = vsel %vm399_vm1, %v667_v54, 0 }
 0x178   :  { %4387 = vmatmul.mubr.msk.bf16.vlgmr.msra.gmra.mrb[4].mxu1 %vm399_vm1, %v5118_v37  ;;  %4678 = vmatprep.subr.msk.bf16.mxu0 %vm399_vm1, %v665_v53  ;;  %v675_v56 = vsel %vm399_vm1, %v665_v53, 0 }
 0x179   :  { %4391 = vmatpush3.bf16.xpose.msra.mxu1 %v541_v55  ;;  %4394 = vmatprep.mubr.msk.bf16.mxu1 %vm399_vm1, %v5132_v48 }
 0x17a   :  { %4407 = vmatpush3.bf16.xpose.msra.mxu0 %v675_v56  ;;  %4675 = vmatprep.subr.msk.bf16.mxu1 %vm399_vm1, %v533_v49 }
 0x17b   :  { %4679 = vmatprep.subr.msk.bf16.mxu0 %vm399_vm1, %v667_v54 }
 0x17e   :  { %v734_v62 = vpop.permute.xlu1 %733 }
 0x17f   :  { %v732_v61 = vpop.permute.xlu0 %731  ;;  %v745_v15 = vsel %vm399_vm1, %v734_v62, 0 }
 0x180   :  { %v742_v10 = vsel %vm399_vm1, %v732_v61, 0 }
 0x181   :  { %4393 = vmatpush3.bf16.xpose.msra.mxu1 %v544_v59 }
 0x182   :  { %4409 = vmatpush3.bf16.xpose.msra.mxu0 %v678_v60  ;;  %4676 = vmatprep.subr.msk.bf16.mxu1 %vm399_vm1, %v598_v51 }
 0x186   :  { %v801_v2 = vpop.permute.xlu1 %800 }
 0x187   :  { %v799_v63 = vpop.permute.xlu0 %798  ;;  %v812_v7 = vsel %vm399_vm1, %v801_v2, 0 }
 0x188   :  { %4395 = vmatmul.mubr.msk.bf16.vlgmr.msra.gmra.mrb[8].mxu1 %vm399_vm1, %v5130_v47  ;;  %4682 = vmatprep.subr.msk.bf16.mxu0 %vm399_vm1, %v799_v63  ;;  %v809_v1 = vsel %vm399_vm1, %v799_v63, 0 }
 0x189   :  { %4411 = vmatmul.mubr.msk.bf16.vlgmr.msra.gmra.mrb[32].mxu0 %vm399_vm1, %v5154_v3  ;;  %4399 = vmatpush3.bf16.xpose.msra.mxu1 %v608_v0 }
 0x18a   :  { %4402 = vmatprep.mubr.msk.bf16.mxu1 %vm399_vm1, %v5144_v58  ;;  %4423 = vmatpush3.bf16.xpose.msra.mxu0 %v809_v1 }
 0x18b   :  { %4426 = vmatprep.mubr.msk.bf16.mxu0 %vm399_vm1, %v5182_v25  ;;  %4677 = vmatprep.subr.msk.bf16.mxu1 %vm399_vm1, %v600_v52 }
 0x18c   :  { %4683 = vmatprep.subr.msk.bf16.mxu0 %vm399_vm1, %v801_v2 }
 0x18e   :  { %v868_v5 = vpop.permute.xlu1 %867 }
 0x18f   :  { %v866_v9 = vpop.permute.xlu0 %865  ;;  %v879_v17 = vsel %vm399_vm1, %v868_v5, 0 }
 0x190   :  { %v876_v16 = vsel %vm399_vm1, %v866_v9, 0 }
 0x191   :  { %4401 = vmatpush3.bf16.xpose.msra.mxu1 %v611_v6 }
 0x192   :  { %4425 = vmatpush3.bf16.xpose.msra.mxu0 %v812_v7  ;;  %v1299_v8 = vpop.permute.xlu1 %1298  ;;  %4680 = vmatprep.subr.msk.bf16.mxu1 %vm399_vm1, %v732_v61 }
 0x193   :  { %4438 = vmatprep.subr.bf16.mxu0 %v1299_v8  ;;  %v5265_v12 = vpop.permute.xlu0 %1359 }
 0x196   :  { %v1301_v11 = vpop.permute.xlu1 %1300 }
 0x197   :  { %v1421_v18 = vpop.permute.xlu0 %1420 }
 0x198   :  { %4403 = vmatmul.mubr.msk.bf16.vlgmr.msra.gmra.mrb[12].mxu1 %vm399_vm1, %v5142_v57 }
 0x199   :  { %4427 = vmatmul.mubr.msk.bf16.vlgmr.msra.gmra.mrb[36].mxu0 %vm399_vm1, %v5180_v24  ;;  %4415 = vmatpush3.bf16.xpose.msra.mxu1 %v742_v10 }
 0x19a   :  { %4418 = vmatprep.mubr.msk.bf16.mxu1 %vm399_vm1, %v5170_v14  ;;  %4439 = vmatpush3.bf16.msra.mxu0 %v1299_v8  ;;  %v5277_v20 = vpop.permute.xlu1 %1361 }
 0x19b   :  { %4440 = vmatprep.subr.bf16.mxu0 %v1301_v11  ;;  %4681 = vmatprep.subr.msk.bf16.mxu1 %vm399_vm1, %v734_v62  ;;  %v5279_v21 = vpop.permute.xlu0 %1481 }
 0x19e   :  { %4441 = vmatpush3.bf16.msra.mxu0 %v1301_v11  ;;  %v1423_v22 = vpop.permute.xlu1 %1422 }
 0x19f   :  { %4446 = vmatprep.subr.bf16.mxu0 %v5265_v12  ;;  %v5283_v23 = vpop.permute.xlu0 %1542 }
 0x1a0   :  { %6595 = vst [vmem:[#allocation5_spill] sm:$0xff] %v5283_v23 }
 0x1a1   :  { %4417 = vmatpush3.bf16.xpose.msra.mxu1 %v745_v15 }
 0x1a2   :  { %4684 = vmatprep.subr.msk.bf16.mxu1 %vm399_vm1, %v866_v9 }
 0x1a8   :  { %4419 = vmatmul.mubr.msk.bf16.vlgmr.msra.gmra.mrb[16].mxu1 %vm399_vm1, %v5168_v13 }
 0x1a9   :  { %4431 = vmatpush3.bf16.xpose.msra.mxu1 %v876_v16  ;;  %4434 = vmatprep.mubr.msk.bf16.mxu1 %vm399_vm1, %v5194_v39 }
 0x1aa   :  { %4685 = vmatprep.subr.msk.bf16.mxu1 %vm399_vm1, %v868_v5 }
 0x1b1   :  { %4433 = vmatpush3.bf16.xpose.msra.mxu1 %v879_v17 }
 0x1b2   :  { %4454 = vmatprep.subr.bf16.mxu1 %v1421_v18 }
 0x1b8   :  { %4435 = vmatmul.mubr.msk.bf16.vlgmr.msra.gmra.mrb[20].mxu1 %vm399_vm1, %v5192_v36 }
 0x1b9   :  { %4455 = vmatpush3.bf16.msra.mxu1 %v1421_v18 }
 0x1ba   :  { %4456 = vmatprep.subr.bf16.mxu1 %v1423_v22 }
 0x1bd   :  { %4457 = vmatpush3.bf16.msra.mxu1 %v1423_v22 }
 0x1be   :  { %4470 = vmatprep.subr.bf16.mxu1 %v5283_v23 }
 0x23b   :  { %v4380_v32 = vpop.f32.mrb[0].mxu1 }
 0x23c   :  { %v5299_v34 = vadd.f32 %v4380_v32, %v5292_v30  ;;  %v446_v35 = vpop.f32.mrb[1].mxu1 }
 0x23d   :  { %v4381_v19 = vpop.f32.mrb[2].mxu1  ;;  %v5302_v40 = vadd.f32 %v5294_v31, %v446_v35 }
 0x23e   :  { %v449_v42 = vpop.f32.mrb[3].mxu1  ;;  %v936_v43 = vsel %vm159_vm0, %v5299_v34, -inf  ;;  %v5314_v46 = vadd.f32 %v4381_v19, %v5304_v41 }
 0x23f   :  { %v5309_v44 = vadd.f32 %v5296_v33, %v449_v42  ;;  %937 = vmax.xlane.f32.xlu0 %v936_v43  ;;  %v930_v49 = vsel %vm159_vm0, %v5302_v40, -inf }
 0x240   :  { %v939_v50 = vsel %vm159_vm0, %v5314_v46, -inf }
 0x241   :  { %v933_v45 = vsel %vm159_vm0, %v5309_v44, -inf }
 0x242   :  { %934 = vmax.xlane.f32.xlu1 %v933_v45 }
 0x243   :  { %931 = vmax.xlane.f32.xlu0 %v930_v49 }
 0x247   :  { %940 = vmax.xlane.f32.xlu0 %v939_v50 }
 0x24b   :  { %v4388_v51 = vpop.f32.mrb[4].mxu1 }
 0x24c   :  { %v5321_v52 = vadd.f32 %v4388_v51, %v5292_v30  ;;  %v513_v53 = vpop.f32.mrb[5].mxu1 }
 0x24d   :  { %v4389_v54 = vpop.f32.mrb[6].mxu1  ;;  %v5324_v55 = vadd.f32 %v5294_v31, %v513_v53 }
 0x24e   :  { %v5327_v56 = vadd.f32 %v4389_v54, %v5304_v41  ;;  %v516_v59 = vpop.f32.mrb[7].mxu1  ;;  %v948_v60 = vsel %vm159_vm0, %v5321_v52, -inf }
 0x24f   :  { %949 = vmax.xlane.f32.xlu1 %v948_v60  ;;  %v5332_v61 = vadd.f32 %v5296_v33, %v516_v59  ;;  %v942_v63 = vsel %vm159_vm0, %v5324_v55, -inf }
 0x250   :  { %v951_v62 = vsel %vm159_vm0, %v5327_v56, -inf }
 0x251   :  { %952 = vmax.xlane.f32.xlu0 %v951_v62  ;;  %v945_v0 = vsel %vm159_vm0, %v5332_v61, -inf }
 0x253   :  { %943 = vmax.xlane.f32.xlu1 %v942_v63 }
 0x255   :  { %946 = vmax.xlane.f32.xlu0 %v945_v0 }
 0x25b   :  { %v4396_v1 = vpop.f32.mrb[8].mxu1 }
 0x25c   :  { %v5341_v2 = vadd.f32 %v4396_v1, %v5292_v30  ;;  %v4412_v5 = vpop.f32.mrb[32].mxu0  ;;  %v580_v6 = vpop.f32.mrb[9].mxu1 }
 0x25d   :  { %v714_v7 = vpop.f32.mrb[33].mxu0  ;;  %v4397_v8 = vpop.f32.mrb[10].mxu1  ;;  %v5344_v9 = vadd.f32 %v4412_v5, %v5292_v30  ;;  %v5357_v26 = vadd.f32 %v5294_v31, %v580_v6 }
 0x25e   :  { %v5347_v10 = vadd.f32 %v4397_v8, %v5304_v41  ;;  %v4413_v11 = vpop.f32.mrb[34].mxu0  ;;  %v583_v15 = vpop.f32.mrb[11].mxu1  ;;  %v960_v16 = vsel %vm159_vm0, %v5341_v2, -inf  ;;  %v5367_v19 = vadd.f32 %v5294_v31, %v714_v7 }
 0x25f   :  { %v717_v17 = vpop.f32.mrb[35].mxu0  ;;  %961 = vmax.xlane.f32.xlu1 %v960_v16  ;;  %v5352_v18 = vadd.f32 %v4413_v11, %v5304_v41  ;;  %v984_v29 = vsel %vm159_vm0, %v5344_v9, -inf  ;;  %v5362_v32 = vadd.f32 %v5296_v33, %v583_v15  ;;  %v954_v42 = vsel %vm159_vm0, %v5357_v26, -inf }
 0x260   :  { %v963_v22 = vsel %vm159_vm0, %v5347_v10, -inf  ;;  %v5372_v43 = vadd.f32 %v5296_v33, %v717_v17  ;;  %v978_v49 = vsel %vm159_vm0, %v5367_v19, -inf }
 0x261   :  { %964 = vmax.xlane.f32.xlu0 %v963_v22  ;;  %v987_v35 = vsel %vm159_vm0, %v5352_v18, -inf  ;;  %v957_v45 = vsel %vm159_vm0, %v5362_v32, -inf }
 0x262   :  { %v981_v59 = vsel %vm159_vm0, %v5372_v43, -inf }
 0x263   :  { %985 = vmax.xlane.f32.xlu1 %v984_v29 }
 0x265   :  { %988 = vmax.xlane.f32.xlu0 %v987_v35 }
 0x267   :  { %955 = vmax.xlane.f32.xlu1 %v954_v42 }
 0x269   :  { %958 = vmax.xlane.f32.xlu0 %v957_v45 }
 0x26b   :  { %v4404_v50 = vpop.f32.mrb[12].mxu1  ;;  %979 = vmax.xlane.f32.xlu1 %v978_v49 }
 0x26c   :  { %v5379_v51 = vadd.f32 %v4404_v50, %v5292_v30  ;;  %v4428_v53 = vpop.f32.mrb[36].mxu0  ;;  %v647_v54 = vpop.f32.mrb[13].mxu1 }
 0x26d   :  { %v848_v60 = vpop.f32.mrb[37].mxu0  ;;  %v4405_v62 = vpop.f32.mrb[14].mxu1  ;;  %982 = vmax.xlane.f32.xlu0 %v981_v59  ;;  %v5384_v63 = vadd.f32 %v4428_v53, %v5292_v30  ;;  %v5397_v15 = vadd.f32 %v5294_v31, %v647_v54 }
 0x26e   :  { %v5387_v0 = vadd.f32 %v4405_v62, %v5304_v41  ;;  %v4429_v1 = vpop.f32.mrb[38].mxu0  ;;  %v650_v5 = vpop.f32.mrb[15].mxu1  ;;  %v972_v6 = vsel %vm159_vm0, %v5379_v51, -inf  ;;  %v5407_v29 = vadd.f32 %v5294_v31, %v848_v60 }
 0x26f   :  { %v851_v7 = vpop.f32.mrb[39].mxu0  ;;  %973 = vmax.xlane.f32.xlu1 %v972_v6  ;;  %v5392_v8 = vadd.f32 %v4429_v1, %v5304_v41  ;;  %v1008_v16 = vsel %vm159_vm0, %v5384_v63, -inf  ;;  %v5402_v17 = vadd.f32 %v5296_v33, %v650_v5  ;;  %v966_v35 = vsel %vm159_vm0, %v5397_v15, -inf }
 0x270   :  { %v975_v11 = vsel %vm159_vm0, %v5387_v0, -inf  ;;  %v5412_v42 = vadd.f32 %v5296_v33, %v851_v7  ;;  %v1002_v49 = vsel %vm159_vm0, %v5407_v29, -inf }
 0x271   :  { %976 = vmax.xlane.f32.xlu0 %v975_v11  ;;  %v1011_v22 = vsel %vm159_vm0, %v5392_v8, -inf  ;;  %v969_v45 = vsel %vm159_vm0, %v5402_v17, -inf }
 0x272   :  { %v1005_v59 = vsel %vm159_vm0, %v5412_v42, -inf }
 0x273   :  { %1009 = vmax.xlane.f32.xlu1 %v1008_v16 }
 0x275   :  { %1012 = vmax.xlane.f32.xlu0 %v1011_v22 }
 0x277   :  { %967 = vmax.xlane.f32.xlu1 %v966_v35 }
 0x279   :  { %970 = vmax.xlane.f32.xlu0 %v969_v45 }
 0x27b   :  { %v4420_v50 = vpop.f32.mrb[16].mxu1  ;;  %1003 = vmax.xlane.f32.xlu1 %v1002_v49 }
 0x27c   :  { %v5419_v53 = vadd.f32 %v4420_v50, %v5292_v30  ;;  %v781_v54 = vpop.f32.mrb[17].mxu1 }
 0x27d   :  { %v4421_v60 = vpop.f32.mrb[18].mxu1  ;;  %1006 = vmax.xlane.f32.xlu0 %v1005_v59  ;;  %v5424_v62 = vadd.f32 %v5294_v31, %v781_v54 }
 0x27e   :  { %v5427_v1 = vadd.f32 %v4421_v60, %v5304_v41  ;;  %v784_v5 = vpop.f32.mrb[19].mxu1  ;;  %v996_v6 = vsel %vm159_vm0, %v5419_v53, -inf }
 0x27f   :  { %997 = vmax.xlane.f32.xlu1 %v996_v6  ;;  %v5432_v7 = vadd.f32 %v5296_v33, %v784_v5  ;;  %v990_v16 = vsel %vm159_vm0, %v5424_v62, -inf }
 0x280   :  { %v999_v11 = vsel %vm159_vm0, %v5427_v1, -inf }
 0x281   :  { %1000 = vmax.xlane.f32.xlu0 %v999_v11  ;;  %v993_v22 = vsel %vm159_vm0, %v5432_v7, -inf }
 0x283   :  { %991 = vmax.xlane.f32.xlu1 %v990_v16 }
 0x285   :  { %994 = vmax.xlane.f32.xlu0 %v993_v22 }
 0x28b   :  { %v4436_v35 = vpop.f32.mrb[20].mxu1 }
 0x28c   :  { %v5441_v45 = vadd.f32 %v4436_v35, %v5292_v30  ;;  %v915_v49 = vpop.f32.mrb[21].mxu1 }
 0x28d   :  { %v4437_v50 = vpop.f32.mrb[22].mxu1  ;;  %v5444_v54 = vadd.f32 %v5294_v31, %v915_v49 }
 0x28e   :  { %v5447_v59 = vadd.f32 %v4437_v50, %v5304_v41  ;;  %v918_v60 = vpop.f32.mrb[23].mxu1  ;;  %v1020_v5 = vsel %vm159_vm0, %v5441_v45, -inf  ;;  %v5460_v41 = vpop.permute.xlu1 %1483 }
 0x28f   :  { %1021 = vmax.xlane.f32.xlu1 %v1020_v5  ;;  %v5452_v6 = vadd.f32 %v5296_v33, %v918_v60  ;;  %v1014_v11 = vsel %vm159_vm0, %v5444_v54, -inf  ;;  %v5472_v50 = vpop.permute.xlu0 %1603 }
 0x290   :  { %v1023_v30 = vsel %vm159_vm0, %v5447_v59, -inf }
 0x291   :  { %1024 = vmax.xlane.f32.xlu0 %v1023_v30  ;;  %v1017_v31 = vsel %vm159_vm0, %v5452_v6, -inf }
 0x292   :  { %v5462_v16 = vpop.permute.xlu1 %1544 }
 0x293   :  { %1015 = vmax.xlane.f32.xlu1 %v1014_v11  ;;  %6596 = vst [vmem:[#allocation6_spill] sm:$0xff] %v5462_v16 }
 0x295   :  { %1018 = vmax.xlane.f32.xlu0 %v1017_v31 }
 0x296   :  { %v5464_v22 = vpop.permute.xlu1 %1664 }
 0x297   :  { %6597 = vst [vmem:[#allocation7_spill] sm:$0xff] %v5464_v22 }
 0x29a   :  { %v5466_v33 = vpop.permute.xlu1 %1605 }
 0x29b   :  { %6598 = vst [vmem:[#allocation8_spill] sm:$0xff] %v5466_v33 }
 0x29e   :  { %v5468_v35 = vpop.permute.xlu1 %1666 }
 0x29f   :  { %6599 = vst [vmem:[#allocation9_spill] sm:$0xff] %v5468_v35 }
 0x2a2   :  { %v5470_v49 = vpop.permute.xlu1 %1727 }
 0x2a3   :  { %6600 = vst [vmem:[#allocation10_spill] sm:$0xff] %v5470_v49 }
 0x2a6   :  { %v5474_v60 = vpop.permute.xlu1 %1725 }
 0x2a7   :  { %6601 = vst [vmem:[#allocation11_spill] sm:$0xff] %v5474_v60 }
 0x2cc   :  { %v938_v5 = vpop.xlane.xlu0 %937 }
 0x2cd   :  { %v1028_v30 = vsub.f32 %v5299_v34, %v938_v5 }
 0x2cf   :  { %v1062_v11 = vmul.f32 1.442695, %v1028_v30  ;;  %v935_v31 = vpop.xlane.xlu1 %934 }
 0x2d0   :  { %v932_v39 = vpop.xlane.xlu0 %931  ;;  %v1027_v22 = vsub.f32 %v5309_v44, %v935_v31 }
 0x2d1   :  { %4728 = vpow2.f32 %v1062_v11  ;;  %v1026_v16 = vsub.f32 %v5302_v40, %v932_v39 }
 0x2d2   :  { %v1060_v35 = vmul.f32 1.442695, %v1027_v22 }
 0x2d3   :  { %v1058_v33 = vmul.f32 1.442695, %v1026_v16 }
 0x2d4   :  { %v941_v23 = vpop.xlane.xlu0 %940 }
 0x2d5   :  { %4730 = vpow2.f32 %v1058_v33  ;;  %v1029_v49 = vsub.f32 %v5314_v46, %v941_v23 }
 0x2d7   :  { %v1064_v36 = vmul.f32 1.442695, %v1029_v49 }
 0x2d9   :  { %4732 = vpow2.f32 %v1064_v36 }
 0x2da   :  { %4734 = vpow2.f32 %v1060_v35 }
 0x2db   :  { %v5480_v60 = vpop.eup %4728 }
 0x2dc   :  { %v950_v34 = vpop.xlane.xlu1 %949  ;;  %v1128_v5 = vsel %vm159_vm0, %v5480_v60, 0.0 }
 0x2dd   :  { %v1032_v30 = vsub.f32 %v5321_v52, %v950_v34  ;;  %1129 = vadd.xlane.f32.xlu1 %v1128_v5 }
 0x2de   :  { %v953_v39 = vpop.xlane.xlu0 %952 }
 0x2df   :  { %v5485_v40 = vpop.eup %4730  ;;  %v1070_v44 = vmul.f32 1.442695, %v1032_v30  ;;  %v1033_v16 = vsub.f32 %v5327_v56, %v953_v39 }
 0x2e0   :  { %v944_v23 = vpop.xlane.xlu1 %943  ;;  %v1122_v36 = vsel %vm159_vm0, %v5485_v40, 0.0 }
 0x2e1   :  { %4736 = vpow2.f32 %v1070_v44  ;;  %v1072_v46 = vmul.f32 1.442695, %v1033_v16  ;;  %v1030_v22 = vsub.f32 %v5324_v55, %v944_v23  ;;  %1123 = vadd.xlane.f32.xlu1 %v1122_v36 }
 0x2e2   :  { %v947_v33 = vpop.xlane.xlu0 %946 }
 0x2e3   :  { %v5491_v35 = vpop.eup %4732  ;;  %4738 = vpow2.f32 %v1072_v46  ;;  %v1066_v52 = vmul.f32 1.442695, %v1030_v22  ;;  %v1031_v49 = vsub.f32 %v5332_v61, %v947_v33 }
 0x2e4   :  { %v1131_v11 = vsel %vm159_vm0, %v5491_v35, 0.0  ;;  %v5496_v56 = vpop.eup %4734 }
 0x2e5   :  { %4740 = vpow2.f32 %v1066_v52  ;;  %v1068_v31 = vmul.f32 1.442695, %v1031_v49  ;;  %1132 = vadd.xlane.f32.xlu0 %v1131_v11  ;;  %v1125_v55 = vsel %vm159_vm0, %v5496_v56, 0.0 }
 0x2e7   :  { %4742 = vpow2.f32 %v1068_v31 }
 0x2e9   :  { %1126 = vadd.xlane.f32.xlu0 %v1125_v55 }
 0x2eb   :  { %v5500_v34 = vpop.eup %4736 }
 0x2ec   :  { %v962_v5 = vpop.xlane.xlu1 %961  ;;  %v1140_v30 = vsel %vm159_vm0, %v5500_v34, 0.0 }
 0x2ed   :  { %v5504_v61 = vpop.eup %4738  ;;  %v1036_v39 = vsub.f32 %v5341_v2, %v962_v5  ;;  %1141 = vadd.xlane.f32.xlu1 %v1140_v30 }
 0x2ee   :  { %v965_v44 = vpop.xlane.xlu0 %964  ;;  %v1143_v16 = vsel %vm159_vm0, %v5504_v61, 0.0 }
 0x2ef   :  { %v5509_v23 = vpop.eup %4740  ;;  %v1078_v36 = vmul.f32 1.442695, %v1036_v39  ;;  %v1037_v46 = vsub.f32 %v5347_v10, %v965_v44  ;;  %1144 = vadd.xlane.f32.xlu0 %v1143_v16 }
 0x2f0   :  { %v986_v22 = vpop.xlane.xlu1 %985  ;;  %v1134_v33 = vsel %vm159_vm0, %v5509_v23, 0.0 }
 0x2f1   :  { %v5514_v52 = vpop.eup %4742  ;;  %4744 = vpow2.f32 %v1078_v36  ;;  %v1080_v49 = vmul.f32 1.442695, %v1037_v46  ;;  %v1044_v2 = vsub.f32 %v5344_v9, %v986_v22  ;;  %1135 = vadd.xlane.f32.xlu1 %v1134_v33 }
 0x2f2   :  { %v989_v11 = vpop.xlane.xlu0 %988  ;;  %v1137_v31 = vsel %vm159_vm0, %v5514_v52, 0.0 }
 0x2f3   :  { %4746 = vpow2.f32 %v1080_v49  ;;  %v1094_v55 = vmul.f32 1.442695, %v1044_v2  ;;  %v1045_v10 = vsub.f32 %v5352_v18, %v989_v11  ;;  %1138 = vadd.xlane.f32.xlu0 %v1137_v31 }
 0x2f4   :  { %v956_v5 = vpop.xlane.xlu1 %955 }
 0x2f5   :  { %4748 = vpow2.f32 %v1094_v55  ;;  %v1096_v30 = vmul.f32 1.442695, %v1045_v10  ;;  %v1034_v39 = vsub.f32 %v5357_v26, %v956_v5 }
 0x2f6   :  { %v959_v44 = vpop.xlane.xlu0 %958 }
 0x2f7   :  { %4750 = vpow2.f32 %v1096_v30  ;;  %v1074_v16 = vmul.f32 1.442695, %v1034_v39  ;;  %v1035_v9 = vsub.f32 %v5362_v32, %v959_v44 }
 0x2f8   :  { %v980_v36 = vpop.xlane.xlu1 %979 }
 0x2f9   :  { %4752 = vpow2.f32 %v1074_v16  ;;  %v1076_v46 = vmul.f32 1.442695, %v1035_v9  ;;  %v1042_v22 = vsub.f32 %v5367_v19, %v980_v36 }
 0x2fa   :  { %v983_v33 = vpop.xlane.xlu0 %982 }
 0x2fb   :  { %v5523_v49 = vpop.eup %4744  ;;  %4754 = vpow2.f32 %v1076_v46  ;;  %v1090_v18 = vmul.f32 1.442695, %v1042_v22  ;;  %v1043_v2 = vsub.f32 %v5372_v43, %v983_v33 }
 0x2fc   :  { %v974_v11 = vpop.xlane.xlu1 %973  ;;  %v1152_v26 = vsel %vm159_vm0, %v5523_v49, 0.0 }
 0x2fd   :  { %v5528_v31 = vpop.eup %4746  ;;  %4756 = vpow2.f32 %v1090_v18  ;;  %v1092_v32 = vmul.f32 1.442695, %v1043_v2  ;;  %v1040_v55 = vsub.f32 %v5379_v51, %v974_v11  ;;  %1153 = vadd.xlane.f32.xlu1 %v1152_v26 }
 0x2fe   :  { %v977_v10 = vpop.xlane.xlu0 %976  ;;  %v1155_v19 = vsel %vm159_vm0, %v5528_v31, 0.0 }
 0x2ff   :  { %v5533_v5 = vpop.eup %4748  ;;  %4758 = vpow2.f32 %v1092_v32  ;;  %v1086_v30 = vmul.f32 1.442695, %v1040_v55  ;;  %1156 = vadd.xlane.f32.xlu0 %v1155_v19  ;;  %v1041_v11 = vsub.f32 %v5387_v0, %v977_v10 }
 0x300   :  { %v1010_v43 = vpop.xlane.xlu1 %1009  ;;  %v1176_v39 = vsel %vm159_vm0, %v5533_v5, 0.0 }
 0x301   :  { %v5537_v44 = vpop.eup %4750  ;;  %4760 = vpow2.f32 %v1086_v30  ;;  %v1052_v16 = vsub.f32 %v5384_v63, %v1010_v43  ;;  %1177 = vadd.xlane.f32.xlu1 %v1176_v39  ;;  %v1088_v0 = vmul.f32 1.442695, %v1041_v11 }
 0x302   :  { %v1013_v51 = vpop.xlane.xlu0 %1012  ;;  %v1179_v9 = vsel %vm159_vm0, %v5537_v44, 0.0 }
 0x303   :  { %v5542_v36 = vpop.eup %4752  ;;  %v1110_v46 = vmul.f32 1.442695, %v1052_v16  ;;  %v1053_v22 = vsub.f32 %v5392_v8, %v1013_v51  ;;  %1180 = vadd.xlane.f32.xlu0 %v1179_v9 }
 0x304   :  { %v968_v33 = vpop.xlane.xlu1 %967  ;;  %v1146_v18 = vsel %vm159_vm0, %v5542_v36, 0.0 }
 0x305   :  { %v5547_v2 = vpop.eup %4754  ;;  %4762 = vpow2.f32 %v1110_v46  ;;  %v1038_v63 = vsub.f32 %v5397_v15, %v968_v33  ;;  %1147 = vadd.xlane.f32.xlu1 %v1146_v18  ;;  %v1112_v8 = vmul.f32 1.442695, %v1053_v22 }
 0x306   :  { %v971_v26 = vpop.xlane.xlu0 %970  ;;  %v1149_v32 = vsel %vm159_vm0, %v5547_v2, 0.0 }
 0x307   :  { %v5553_v55 = vpop.eup %4756  ;;  %v1082_v19 = vmul.f32 1.442695, %v1038_v63  ;;  %1150 = vadd.xlane.f32.xlu0 %v1149_v32  ;;  %v1039_v9 = vsub.f32 %v5402_v17, %v971_v26 }
 0x308   :  { %v1004_v30 = vpop.xlane.xlu1 %1003  ;;  %v1170_v43 = vsel %vm159_vm0, %v5553_v55, 0.0 }
 0x309   :  { %v5557_v39 = vpop.eup %4758  ;;  %4764 = vpow2.f32 %v1082_v19  ;;  %v1050_v15 = vsub.f32 %v5407_v29, %v1004_v30  ;;  %1171 = vadd.xlane.f32.xlu1 %v1170_v43  ;;  %v1084_v11 = vmul.f32 1.442695, %v1039_v9 }
 0x30a   :  { %v1007_v10 = vpop.xlane.xlu0 %1006  ;;  %v1173_v16 = vsel %vm159_vm0, %v5557_v39, 0.0  ;;  %4766 = vpow2.f32 %v1112_v8 }
 0x30b   :  { %v5562_v51 = vpop.eup %4760  ;;  %v1106_v46 = vmul.f32 1.442695, %v1050_v15  ;;  %v1051_v22 = vsub.f32 %v5412_v42, %v1007_v10  ;;  %1174 = vadd.xlane.f32.xlu0 %v1173_v16 }
 0x30c   :  { %v998_v33 = vpop.xlane.xlu1 %997  ;;  %v1164_v18 = vsel %vm159_vm0, %v5562_v51, 0.0 }
 0x30d   :  { %4768 = vpow2.f32 %v1106_v46  ;;  %v1108_v29 = vmul.f32 1.442695, %v1051_v22  ;;  %1165 = vadd.xlane.f32.xlu1 %v1164_v18  ;;  %v1048_v32 = vsub.f32 %v5419_v53, %v998_v33 }
 0x30e   :  { %4770 = vpow2.f32 %v1088_v0  ;;  %v1001_v42 = vpop.xlane.xlu0 %1000 }
 0x30f   :  { %v5568_v63 = vpop.eup %4762  ;;  %4772 = vpow2.f32 %v1108_v29  ;;  %v1102_v19 = vmul.f32 1.442695, %v1048_v32  ;;  %v1049_v53 = vsub.f32 %v5427_v1, %v1001_v42 }
 0x310   :  { %v992_v8 = vpop.xlane.xlu1 %991  ;;  %v1200_v17 = vsel %vm159_vm0, %v5568_v63, 0.0  ;;  %4774 = vpow2.f32 %v1084_v11 }
 0x311   :  { %1201 = vadd.xlane.f32.xlu0 %v1200_v17  ;;  %v1046_v30 = vsub.f32 %v5424_v62, %v992_v8  ;;  %4776 = vpow2.f32 %v1102_v19  ;;  %v1104_v33 = vmul.f32 1.442695, %v1049_v53 }
 0x312   :  { %v995_v9 = vpop.xlane.xlu0 %994 }
 0x313   :  { %v5573_v26 = vpop.eup %4764  ;;  %v1098_v10 = vmul.f32 1.442695, %v1046_v30  ;;  %v1047_v18 = vsub.f32 %v5432_v7, %v995_v9 }
 0x314   :  { %v1158_v43 = vsel %vm159_vm0, %v5573_v26, 0.0  ;;  %v5578_v15 = vpop.eup %4766 }
 0x315   :  { %1159 = vadd.xlane.f32.xlu1 %v1158_v43  ;;  %v1203_v62 = vsel %vm159_vm0, %v5578_v15, 0.0  ;;  %4778 = vpow2.f32 %v1098_v10  ;;  %v1100_v32 = vmul.f32 1.442695, %v1047_v18 }
 0x316   :  { %4780 = vpow2.f32 %v1104_v33 }
 0x317   :  { %v5580_v0 = vpop.eup %4768  ;;  %4782 = vpow2.f32 %v1100_v32 }
 0x318   :  { %v5583_v16 = vpop.eup %4770  ;;  %v1194_v46 = vsel %vm159_vm0, %v5580_v0, 0.0 }
 0x319   :  { %v5589_v22 = vpop.eup %4772  ;;  %1195 = vadd.xlane.f32.xlu0 %v1194_v46  ;;  %1204 = vadd.xlane.f32.xlu1 %v1203_v62  ;;  %v1167_v1 = vsel %vm159_vm0, %v5583_v16, 0.0 }
 0x31a   :  { %v1197_v29 = vsel %vm159_vm0, %v5589_v22, 0.0  ;;  %v5596_v11 = vpop.eup %4774 }
 0x31b   :  { %v1161_v8 = vsel %vm159_vm0, %v5596_v11, 0.0  ;;  %v5600_v17 = vpop.eup %4776 }
 0x31c   :  { %v1188_v7 = vsel %vm159_vm0, %v5600_v17, 0.0 }
 0x31d   :  { %1168 = vadd.xlane.f32.xlu0 %v1167_v1  ;;  %1198 = vadd.xlane.f32.xlu1 %v1197_v29  ;;  %v1022_v29 = vpop.xlane.xlu1 %1021 }
 0x31e   :  { %v1025_v9 = vpop.xlane.xlu0 %1024 }
 0x31f   :  { %v5604_v42 = vpop.eup %4778  ;;  %v1057_v46 = vsub.f32 %v5447_v59, %v1025_v9 }
 0x320   :  { %v1182_v19 = vsel %vm159_vm0, %v5604_v42, 0.0  ;;  %v5608_v30 = vpop.eup %4780 }
 0x321   :  { %1162 = vadd.xlane.f32.xlu0 %v1161_v8  ;;  %v1191_v43 = vsel %vm159_vm0, %v5608_v30, 0.0  ;;  %v5612_v53 = vpop.eup %4782  ;;  %v1120_v33 = vmul.f32 1.442695, %v1057_v46  ;;  %v1056_v8 = vsub.f32 %v5441_v45, %v1022_v29 }
 0x322   :  { %v1185_v10 = vsel %vm159_vm0, %v5612_v53, 0.0  ;;  %v1019_v62 = vpop.xlane.xlu0 %1018 }
 0x323   :  { %v1055_v18 = vsub.f32 %v5452_v6, %v1019_v62  ;;  %4784 = vpow2.f32 %v1120_v33 }
 0x325   :  { %1189 = vadd.xlane.f32.xlu0 %v1188_v7  ;;  %v1116_v1 = vmul.f32 1.442695, %v1055_v18  ;;  %v1016_v7 = vpop.xlane.xlu1 %1015 }
 0x326   :  { %v1054_v6 = vsub.f32 %v5444_v54, %v1016_v7 }
 0x327   :  { %4786 = vpow2.f32 %v1116_v1 }
 0x328   :  { %v1114_v9 = vmul.f32 1.442695, %v1054_v6 }
 0x329   :  { %1183 = vadd.xlane.f32.xlu0 %v1182_v19 }
 0x32d   :  { %1192 = vadd.xlane.f32.xlu0 %v1191_v43  ;;  %v5622_v32 = vpop.eup %4784  ;;  %v1118_v43 = vmul.f32 1.442695, %v1056_v8 }
 0x32e   :  { %1994 = vrot.lane.b32.xlu1 %v5104_v27, %s4986_s13  ;;  %v1215_v19 = vsel %vm159_vm0, %v5622_v32, 0.0 }
 0x32f   :  { %4788 = vpow2.f32 %v1118_v43 }
 0x330   :  { %4790 = vpow2.f32 %v1114_v9 }
 0x331   :  { %1186 = vadd.xlane.f32.xlu0 %v1185_v10  ;;  %v5627_v59 = vpop.eup %4786 }
 0x332   :  { %v1209_v10 = vsel %vm159_vm0, %v5627_v59, 0.0 }
 0x339   :  { %v5632_v46 = vpop.eup %4788 }
 0x33a   :  { %v1212_v45 = vsel %vm159_vm0, %v5632_v46, 0.0  ;;  %v5636_v62 = vpop.eup %4790 }
 0x33b   :  { %v1206_v54 = vsel %vm159_vm0, %v5636_v62, 0.0 }
 0x347   :  { %1992 = vrot.lane.b32.xlu0 %v5106_v28, %s4986_s13 }
 0x352   :  { %1216 = vadd.xlane.f32.xlu1 %v1215_v19 }
 0x356   :  { %1210 = vadd.xlane.f32.xlu1 %v1209_v10 }
 0x366   :  { %1213 = vadd.xlane.f32.xlu0 %v1212_v45 }
 0x367   :  { %1988 = vrot.lane.b32.xlu1 %v5106_v28, %s4987_s14 }
 0x36a   :  { %1207 = vadd.xlane.f32.xlu0 %v1206_v54  ;;  %v1130_v33 = vpop.xlane.xlu1 %1129 }
 0x36b   :  { %2130 = vrot.lane.b32.xlu1 %v5132_v48, %s4986_s13 }
 0x36e   :  { %v1124_v18 = vpop.xlane.xlu1 %1123 }
 0x36f   :  { %2057 = vrot.lane.b32.xlu1 %v5120_v38, %s4987_s14 }
 0x372   :  { %v1133_v1 = vpop.xlane.xlu0 %1132 }
 0x373   :  { %2199 = vrot.lane.b32.xlu1 %v5144_v58, %s4986_s13  ;;  %4792 = vrcp.f32 %v1133_v1 }
 0x374   :  { %4794 = vrcp.f32 %v1124_v18 }
 0x375   :  { %4796 = vrcp.f32 %v1130_v33 }
 0x376   :  { %v1127_v29 = vpop.xlane.xlu0 %1126 }
 0x377   :  { %4798 = vrcp.f32 %v1127_v29  ;;  %2126 = vrot.lane.b32.xlu1 %v5132_v48, %s4987_s14 }
 0x37a   :  { %v1142_v8 = vpop.xlane.xlu1 %1141 }
 0x37b   :  { %2268 = vrot.lane.b32.xlu1 %v5156_v4, %s4986_s13 }
 0x37c   :  { %v1145_v7 = vpop.xlane.xlu0 %1144 }
 0x37d   :  { %v4793_v19 = vpop.eup %4792  ;;  %4800 = vrcp.f32 %v1145_v7 }
 0x37e   :  { %v1136_v43 = vpop.xlane.xlu1 %1135  ;;  %v4795_v6 = vpop.eup %4794  ;;  %v1253_v54 = vmul.f32 %v4793_v19, %v5491_v35 }
 0x37f   :  { %4802 = vrcp.f32 %v1136_v43  ;;  %2195 = vrot.lane.b32.xlu1 %v5144_v58, %s4987_s14  ;;  %v4797_v10 = vpop.eup %4796  ;;  %v1250_v33 = vmul.f32 %v4795_v6, %v5485_v40 }
 0x380   :  { %4804 = vrcp.f32 %v1142_v8  ;;  %2061 = vrot.lane.b32.xlu0 %v5120_v38, %s4986_s13  ;;  %v1139_v9 = vpop.xlane.xlu0 %1138  ;;  %v1252_v1 = vmul.f32 %v4797_v10, %v5480_v60 }
 0x381   :  { %v4799_v45 = vpop.eup %4798  ;;  %4806 = vrcp.f32 %v1139_v9 }
 0x382   :  { %v1251_v18 = vmul.f32 %v4799_v45, %v5496_v56  ;;  %v1283_v8 = vpack.c.bf16 %v1253_v54, %v1252_v1  ;;  %v6602_v54 = vld [vmem:[#allocation3_spill] sm:$0xff] }
 0x383   :  { %2270 = vrot.lane.b32.xlu1 %v5154_v3, %s4986_s13 }
 0x384   :  { %2063 = vrot.lane.b32.xlu0 %v5118_v37, %s4986_s13  ;;  %v1282_v29 = vpack.c.bf16 %v1251_v18, %v1250_v33 }
 0x386   :  { %4442 = vmatprep.mubr.msk.bf16.mxu0 %vm159_vm0, %v1282_v29 }
 0x387   :  { %2264 = vrot.lane.b32.xlu1 %v5156_v4, %s4987_s14  ;;  %4443 = vmatmul.mubr.msk.bf16.vlgmr.msra.gmra.mrb[40].mxu0 %vm159_vm0, %v1283_v8  ;;  %v4801_v40 = vpop.eup %4800 }
 0x388   :  { %4447 = vmatpush3.bf16.msra.mxu0 %v5265_v12  ;;  %1990 = vrot.lane.b32.xlu0 %v5104_v27, %s4987_s14  ;;  %v1257_v19 = vmul.f32 %v4801_v40, %v5504_v61 }
 0x389   :  { %v4803_v60 = vpop.eup %4802  ;;  %4448 = vmatprep.subr.bf16.mxu0 %v5277_v20 }
 0x38a   :  { %v4805_v35 = vpop.eup %4804  ;;  %v1154_v56 = vpop.xlane.xlu1 %1153  ;;  %v1254_v43 = vmul.f32 %v4803_v60, %v5509_v23 }
 0x38b   :  { %v4807_v7 = vpop.eup %4806  ;;  %2339 = vrot.lane.b32.xlu1 %v5168_v13, %s4986_s13  ;;  %v1256_v10 = vmul.f32 %v4805_v35, %v5500_v34 }
 0x38c   :  { %4449 = vmatpush3.bf16.msra.mxu0 %v5277_v20  ;;  %2132 = vrot.lane.b32.xlu0 %v5130_v47, %s4986_s13  ;;  %v1157_v12 = vpop.xlane.xlu0 %1156  ;;  %v1255_v6 = vmul.f32 %v4807_v7, %v5514_v52 }
 0x38d   :  { %4462 = vmatprep.subr.bf16.mxu0 %v5279_v21  ;;  %v1285_v61 = vpack.c.bf16 %v1257_v19, %v1256_v10  ;;  %4808 = vrcp.f32 %v1157_v12  ;;  %v6603_v10 = vld [vmem:[#allocation5_spill] sm:$0xff] }
 0x38e   :  { %v1178_v9 = vpop.xlane.xlu1 %1177  ;;  %v1284_v45 = vpack.c.bf16 %v1255_v6, %v1254_v43 }
 0x38f   :  { %2333 = vrot.lane.b32.xlu1 %v5170_v14, %s4987_s14 }
 0x390   :  { %2059 = vrot.lane.b32.xlu0 %v5118_v37, %s4987_s14  ;;  %4450 = vmatprep.mubr.msk.bf16.mxu0 %vm159_vm0, %v1284_v45  ;;  %v1181_v20 = vpop.xlane.xlu0 %1180 }
 0x391   :  { %4451 = vmatmul.mubr.msk.bf16.vlgmr.msra.gmra.mrb[44].mxu0 %vm159_vm0, %v1285_v61 }
 0x392   :  { %4463 = vmatpush3.bf16.msra.mxu0 %v5279_v21  ;;  %v1148_v34 = vpop.xlane.xlu1 %1147 }
 0x393   :  { %4810 = vrcp.f32 %v1148_v34  ;;  %4464 = vmatprep.subr.bf16.mxu0 %v5460_v41  ;;  %2408 = vrot.lane.b32.xlu1 %v5180_v24, %s4986_s13 }
 0x394   :  { %4812 = vrcp.f32 %v1154_v56  ;;  %2201 = vrot.lane.b32.xlu0 %v5142_v57, %s4986_s13  ;;  %v1151_v23 = vpop.xlane.xlu0 %1150 }
 0x395   :  { %4814 = vrcp.f32 %v1151_v23  ;;  %v6606_v23 = vld [vmem:[#allocation9_spill] sm:$0xff] }
 0x396   :  { %4465 = vmatpush3.bf16.msra.mxu0 %v5460_v41  ;;  %v1172_v52 = vpop.xlane.xlu1 %1171 }
 0x397   :  { %4816 = vrcp.f32 %v1172_v52  ;;  %4478 = vmatprep.subr.bf16.mxu0 %v5472_v50  ;;  %2402 = vrot.lane.b32.xlu1 %v5182_v25, %s4987_s14  ;;  %v4809_v33 = vpop.eup %4808 }
 0x398   :  { %2128 = vrot.lane.b32.xlu0 %v5130_v47, %s4987_s14  ;;  %v1175_v21 = vpop.xlane.xlu0 %1174  ;;  %v1261_v8 = vmul.f32 %v4809_v33, %v5528_v31 }
 0x399   :  { %4818 = vrcp.f32 %v1175_v21 }
 0x39a   :  { %4820 = vrcp.f32 %v1181_v20  ;;  %v1166_v1 = vpop.xlane.xlu1 %1165  ;;  %v6604_v20 = vld [vmem:[#allocation6_spill] sm:$0xff] }
 0x39b   :  { %2477 = vrot.lane.b32.xlu1 %v6602_v54, %s4986_s13  ;;  %4822 = vrcp.f32 %v1178_v9 }
 0x39c   :  { %2197 = vrot.lane.b32.xlu0 %v5142_v57, %s4987_s14 }
 0x39d   :  { %v4811_v41 = vpop.eup %4810 }
 0x39e   :  { %v4813_v18 = vpop.eup %4812  ;;  %v1258_v40 = vmul.f32 %v4811_v41, %v5542_v36  ;;  %v1202_v7 = vpop.xlane.xlu0 %1201 }
 0x39f   :  { %v4815_v29 = vpop.eup %4814  ;;  %2473 = vrot.lane.b32.xlu1 %v6602_v54, %s4987_s14  ;;  %v1260_v56 = vmul.f32 %v4813_v18, %v5523_v49 }
 0x3a0   :  { %2337 = vrot.lane.b32.xlu0 %v5170_v14, %s4986_s13  ;;  %v1259_v60 = vmul.f32 %v4815_v29, %v5547_v2 }
 0x3a1   :  { %v4817_v35 = vpop.eup %4816  ;;  %v1287_v31 = vpack.c.bf16 %v1261_v8, %v1260_v56 }
 0x3a2   :  { %v1160_v19 = vpop.xlane.xlu1 %1159  ;;  %v1286_v12 = vpack.c.bf16 %v1259_v60, %v1258_v40  ;;  %v1266_v36 = vmul.f32 %v4817_v35, %v5553_v55 }
 0x3a3   :  { %v4819_v43 = vpop.eup %4818  ;;  %2908 = vrot.lane.b32.xlu1 %v5106_v28, %s4988_s15 }
 0x3a4   :  { %v4821_v6 = vpop.eup %4820  ;;  %2266 = vrot.lane.b32.xlu0 %v5154_v3, %s4987_s14  ;;  %4458 = vmatprep.mubr.msk.bf16.mxu1 %vm159_vm0, %v1286_v12  ;;  %v1267_v2 = vmul.f32 %v4819_v43, %v5557_v39 }
 0x3a5   :  { %4459 = vmatmul.mubr.msk.bf16.vlgmr.msra.gmra.mrb[24].mxu1 %vm159_vm0, %v1287_v31  ;;  %v4823_v49 = vpop.eup %4822  ;;  %v1269_v28 = vmul.f32 %v4821_v6, %v5537_v44  ;;  %v6605_v44 = vld [vmem:[#allocation7_spill] sm:$0xff] }
 0x3a6   :  { %4471 = vmatpush3.bf16.msra.mxu1 %v6603_v10  ;;  %v1205_v9 = vpop.xlane.xlu1 %1204  ;;  %v1196_v45 = vpop.xlane.xlu0 %1195  ;;  %v1290_v61 = vpack.c.bf16 %v1267_v2, %v1266_v36  ;;  %v1268_v55 = vmul.f32 %v4823_v49, %v5533_v5 }
 0x3a7   :  { %4472 = vmatprep.subr.bf16.mxu1 %v6604_v20  ;;  %2910 = vrot.lane.b32.xlu1 %v5104_v27, %s4988_s15  ;;  %4824 = vrcp.f32 %v1205_v9 }
 0x3a8   :  { %2406 = vrot.lane.b32.xlu0 %v5182_v25, %s4986_s13  ;;  %4474 = vmatprep.mubr.msk.bf16.mxu1 %vm159_vm0, %v1290_v61  ;;  %4826 = vrcp.f32 %v1196_v45  ;;  %v1291_v27 = vpack.c.bf16 %v1269_v28, %v1268_v55 }
 0x3a9   :  { %4828 = vrcp.f32 %v1202_v7 }
 0x3aa   :  { %4473 = vmatpush3.bf16.msra.mxu1 %v6604_v20  ;;  %v1199_v39 = vpop.xlane.xlu1 %1198  ;;  %v1169_v34 = vpop.xlane.xlu0 %1168 }
 0x3ab   :  { %4830 = vrcp.f32 %v1199_v39  ;;  %4486 = vmatprep.subr.bf16.mxu1 %v6605_v44  ;;  %3030 = vrot.lane.b32.xlu1 %v5132_v48, %s4988_s15  ;;  %v6607_v48 = vld [vmem:[#allocation4_spill] sm:$0xff] }
 0x3ac   :  { %4832 = vrcp.f32 %v1169_v34  ;;  %2335 = vrot.lane.b32.xlu0 %v5168_v13, %s4987_s14 }
 0x3ad   :  { %4834 = vrcp.f32 %v1160_v19  ;;  %4475 = vmatmul.mubr.msk.bf16.vlgmr.msra.gmra.mrb[28].mxu1 %vm159_vm0, %v1291_v27 }
 0x3ae   :  { %4836 = vrcp.f32 %v1166_v1  ;;  %4487 = vmatpush3.bf16.msra.mxu1 %v6605_v44  ;;  %v1163_v5 = vpop.xlane.xlu0 %1162 }
 0x3af   :  { %4488 = vmatprep.subr.bf16.mxu1 %v6606_v23  ;;  %4838 = vrcp.f32 %v1163_v5  ;;  %3091 = vrot.lane.b32.xlu1 %v5144_v58, %s4988_s15 }
 0x3b0   :  { %2475 = vrot.lane.b32.xlu0 %v6607_v48, %s4986_s13 }
 0x3b1   :  { %v4825_v52 = vpop.eup %4824 }
 0x3b2   :  { %4489 = vmatpush3.bf16.msra.mxu1 %v6606_v23  ;;  %v1190_v21 = vpop.xlane.xlu0 %1189  ;;  %v4827_v33 = vpop.eup %4826  ;;  %v1277_v1 = vmul.f32 %v4825_v52, %v5578_v15 }
 0x3b3   :  { %3032 = vrot.lane.b32.xlu1 %v5130_v47, %s4988_s15  ;;  %v4829_v41 = vpop.eup %4828  ;;  %v1274_v8 = vmul.f32 %v4827_v33, %v5580_v0 }
 0x3b4   :  { %2404 = vrot.lane.b32.xlu0 %v5180_v24, %s4987_s14  ;;  %v1276_v35 = vmul.f32 %v4829_v41, %v5568_v63 }
 0x3b5   :  { %v4831_v18 = vpop.eup %4830 }
 0x3b6   :  { %v4833_v29 = vpop.eup %4832  ;;  %v1184_v58 = vpop.xlane.xlu0 %1183  ;;  %v1275_v40 = vmul.f32 %v4831_v18, %v5589_v22  ;;  %v1295_v19 = vpack.c.bf16 %v1277_v1, %v1276_v35 }
 0x3b7   :  { %v4835_v60 = vpop.eup %4834  ;;  %3152 = vrot.lane.b32.xlu1 %v5156_v4, %s4988_s15  ;;  %v1265_v15 = vmul.f32 %v4833_v29, %v5583_v16 }
 0x3b8   :  { %v4837_v47 = vpop.eup %4836  ;;  %2471 = vrot.lane.b32.xlu0 %v6607_v48, %s4987_s14  ;;  %v1294_v56 = vpack.c.bf16 %v1275_v40, %v1274_v8  ;;  %v1262_v22 = vmul.f32 %v4835_v60, %v5573_v26 }
 0x3b9   :  { %v4839_v7 = vpop.eup %4838  ;;  %v1264_v63 = vmul.f32 %v4837_v47, %v5562_v51 }
 0x3ba   :  { %4490 = vmatprep.mubr.msk.bf16.mxu1 %vm159_vm0, %v1294_v56  ;;  %v1193_v0 = vpop.xlane.xlu0 %1192  ;;  %v1263_v12 = vmul.f32 %v4839_v7, %v5596_v11  ;;  %v6609_v11 = vld [vmem:[#allocation11_spill] sm:$0xff] }
 0x3bb   :  { %3213 = vrot.lane.b32.xlu1 %v5170_v14, %s4988_s15  ;;  %4491 = vmatmul.mubr.msk.bf16.vlgmr.msra.gmra.mrb[32].mxu1 %vm159_vm0, %v1295_v19  ;;  %4840 = vrcp.f32 %v1193_v0  ;;  %v1289_v16 = vpack.c.bf16 %v1265_v15, %v1264_v63  ;;  %v6608_v14 = vld [vmem:[#allocation8_spill] sm:$0xff] }
 0x3bc   :  { %2969 = vrot.lane.b32.xlu0 %v5120_v38, %s4988_s15  ;;  %v1288_v4 = vpack.c.bf16 %v1263_v12, %v1262_v22  ;;  %4842 = vrcp.f32 %v1184_v58 }
 0x3bd   :  { %4844 = vrcp.f32 %v1190_v21 }
 0x3be   :  { %4466 = vmatprep.mubr.msk.bf16.mxu0 %vm159_vm0, %v1288_v4  ;;  %v1187_v26 = vpop.xlane.xlu0 %1186 }
 0x3bf   :  { %4846 = vrcp.f32 %v1187_v26  ;;  %3215 = vrot.lane.b32.xlu1 %v5168_v13, %s4988_s15  ;;  %4467 = vmatmul.mubr.msk.bf16.vlgmr.msra.gmra.mrb[48].mxu0 %vm159_vm0, %v1289_v16  ;;  %v1995_v13 = vpop.permute.xlu1 %1994 }
 0x3c0   :  { %4479 = vmatpush3.bf16.msra.mxu0 %v5472_v50  ;;  %2971 = vrot.lane.b32.xlu0 %v5118_v37, %s4988_s15  ;;  %v2006_v49 = vsel %vm399_vm1, %v1995_v13, 0 }
 0x3c1   :  { %4480 = vmatprep.subr.bf16.mxu0 %v6608_v14 }
 0x3c2   :  { %v1993_v38 = vpop.permute.xlu0 %1992 }
 0x3c3   :  { %4686 = vmatprep.subr.msk.bf16.mxu1 %vm399_vm1, %v1993_v38  ;;  %v2003_v51 = vsel %vm399_vm1, %v1993_v38, 0 }
 0x3c4   :  { %4481 = vmatpush3.bf16.msra.mxu0 %v6608_v14  ;;  %3093 = vrot.lane.b32.xlu0 %v5142_v57, %s4988_s15 }
 0x3c5   :  { %4494 = vmatprep.subr.bf16.mxu0 %v6609_v11  ;;  %4503 = vmatpush3.bf16.xpose.msra.mxu1 %v2003_v51  ;;  %v4841_v50 = vpop.eup %4840 }
 0x3c6   :  { %4687 = vmatprep.subr.msk.bf16.mxu1 %vm399_vm1, %v1995_v13  ;;  %v4843_v37 = vpop.eup %4842  ;;  %v1273_v6 = vmul.f32 %v4841_v50, %v5608_v30 }
 0x3c7   :  { %v4845_v43 = vpop.eup %4844  ;;  %v1270_v36 = vmul.f32 %v4843_v37, %v5604_v42 }
 0x3c8   :  { %3154 = vrot.lane.b32.xlu0 %v5154_v3, %s4988_s15  ;;  %v1272_v57 = vmul.f32 %v4845_v43, %v5600_v17  ;;  %v6610_v3 = vld [vmem:[#allocation10_spill] sm:$0xff] }
 0x3c9   :  { %v4847_v31 = vpop.eup %4846 }
 0x3ca   :  { %v1271_v2 = vmul.f32 %v4847_v31, %v5612_v53  ;;  %v1293_v9 = vpack.c.bf16 %v1273_v6, %v1272_v57 }
 0x3cc   :  { %v1292_v10 = vpack.c.bf16 %v1271_v2, %v1270_v36 }
 0x3cd   :  { %4505 = vmatpush3.bf16.xpose.msra.mxu1 %v2006_v49 }
 0x3ce   :  { %4482 = vmatprep.mubr.msk.bf16.mxu0 %vm159_vm0, %v1292_v10 }
 0x3cf   :  { %4483 = vmatmul.mubr.msk.bf16.vlgmr.msra.gmra.mrb[52].mxu0 %vm159_vm0, %v1293_v9 }
 0x3d0   :  { %4495 = vmatpush3.bf16.msra.mxu0 %v6609_v11 }
 0x3d1   :  { %4496 = vmatprep.subr.bf16.mxu0 %v6610_v3 }
 0x3d4   :  { %4497 = vmatpush3.bf16.msra.mxu0 %v6610_v3 }
 0x3df   :  { %v1217_v42 = vpop.xlane.xlu1 %1216 }
 0x3e3   :  { %v1211_v30 = vpop.xlane.xlu1 %1210 }
 0x3e7   :  { %v1989_v53 = vpop.permute.xlu1 %1988 }
 0x3e8   :  { %4506 = vmatprep.mubr.msk.bf16.mxu1 %vm399_vm1, %v1989_v53 }
 0x3eb   :  { %v2131_v17 = vpop.permute.xlu1 %2130 }
 0x3ec   :  { %4690 = vmatprep.subr.msk.bf16.mxu1 %vm399_vm1, %v2131_v17  ;;  %v2141_v8 = vsel %vm399_vm1, %v2131_v17, 0 }
 0x3ef   :  { %v2058_v45 = vpop.permute.xlu1 %2057 }
 0x3f3   :  { %v2200_v61 = vpop.permute.xlu1 %2199  ;;  %v1214_v28 = vpop.xlane.xlu0 %1213 }
 0x3f4   :  { %4848 = vrcp.f32 %v1214_v28  ;;  %v2210_v63 = vsel %vm399_vm1, %v2200_v61, 0 }
 0x3f5   :  { %4850 = vrcp.f32 %v1211_v30 }
 0x3f6   :  { %4852 = vrcp.f32 %v1217_v42 }
 0x3f7   :  { %v2127_v20 = vpop.permute.xlu1 %2126  ;;  %v1208_v55 = vpop.xlane.xlu0 %1207 }
 0x3f8   :  { %4854 = vrcp.f32 %v1208_v55 }
 0x3fb   :  { %v2269_v39 = vpop.permute.xlu1 %2268  ;;  %v2062_v34 = vpop.permute.xlu0 %2061 }
 0x3fc   :  { %4688 = vmatprep.subr.msk.bf16.mxu0 %vm399_vm1, %v2062_v34  ;;  %v2279_v0 = vsel %vm399_vm1, %v2269_v39, 0 }
 0x3fe   :  { %v4849_v44 = vpop.eup %4848 }
 0x3ff   :  { %v2196_v27 = vpop.permute.xlu1 %2195  ;;  %v2064_v5 = vpop.permute.xlu0 %2063  ;;  %v1280_v33 = vmul.f32 %v4849_v44, %v5632_v46 }
 0x400   :  { %v4851_v23 = vpop.eup %4850  ;;  %v2075_v15 = vsel %vm399_vm1, %v2064_v5, 0 }
 0x401   :  { %v4853_v52 = vpop.eup %4852  ;;  %v1279_v29 = vmul.f32 %v4851_v23, %v5627_v59 }
 0x402   :  { %v4855_v21 = vpop.eup %4854  ;;  %v1281_v58 = vmul.f32 %v4853_v52, %v5622_v32 }
 0x403   :  { %v2271_v41 = vpop.permute.xlu1 %2270  ;;  %v1991_v18 = vpop.permute.xlu0 %1990  ;;  %v1278_v1 = vmul.f32 %v4855_v21, %v5636_v62  ;;  %v2072_v62 = vsel %vm399_vm1, %v2062_v34, 0 }
 0x404   :  { %4507 = vmatmul.mubr.msk.bf16.vlgmr.msra.gmra.mrb[36].mxu1 %vm399_vm1, %v1991_v18  ;;  %v1297_v60 = vpack.c.bf16 %v1281_v58, %v1280_v33  ;;  %v2282_v26 = vsel %vm399_vm1, %v2271_v41, 0 }
 0x405   :  { %4519 = vmatpush3.bf16.xpose.msra.mxu1 %v2141_v8  ;;  %4522 = vmatprep.mubr.msk.bf16.mxu1 %vm399_vm1, %v2127_v20  ;;  %v1296_v40 = vpack.c.bf16 %v1279_v29, %v1278_v1 }
 0x407   :  { %v2265_v35 = vpop.permute.xlu1 %2264  ;;  %4498 = vmatprep.mubr.msk.bf16.mxu0 %vm159_vm0, %v1296_v40  ;;  %v2133_v46 = vpop.permute.xlu0 %2132 }
 0x408   :  { %4499 = vmatmul.mubr.msk.bf16.vlgmr.msra.gmra.mrb[56].mxu0 %vm159_vm0, %v1297_v60  ;;  %4691 = vmatprep.subr.msk.bf16.mxu1 %vm399_vm1, %v2133_v46  ;;  %v2144_v47 = vsel %vm399_vm1, %v2133_v46, 0 }
 0x409   :  { %4511 = vmatpush3.bf16.xpose.msra.mxu0 %v2072_v62  ;;  %4514 = vmatprep.mubr.msk.bf16.mxu0 %vm399_vm1, %v2058_v45 }
 0x40a   :  { %4689 = vmatprep.subr.msk.bf16.mxu0 %vm399_vm1, %v2064_v5 }
 0x40b   :  { %v2340_v32 = vpop.permute.xlu1 %2339  ;;  %v2060_v59 = vpop.permute.xlu0 %2059 }
 0x40c   :  { %v2351_v2 = vsel %vm399_vm1, %v2340_v32, 0 }
 0x40d   :  { %4521 = vmatpush3.bf16.xpose.msra.mxu1 %v2144_v47 }
 0x40e   :  { %4694 = vmatprep.subr.msk.bf16.mxu1 %vm399_vm1, %v2269_v39 }
 0x40f   :  { %v2334_v56 = vpop.permute.xlu1 %2333  ;;  %v2202_v7 = vpop.permute.xlu0 %2201 }
 0x410   :  { %v2213_v38 = vsel %vm399_vm1, %v2202_v7, 0 }
 0x411   :  { %4513 = vmatpush3.bf16.xpose.msra.mxu0 %v2075_v15 }
 0x412   :  { %4692 = vmatprep.subr.msk.bf16.mxu0 %vm399_vm1, %v2200_v61 }
 0x413   :  { %v2129_v19 = vpop.permute.xlu0 %2128  ;;  %v2409_v22 = vpop.permute.xlu1 %2408 }
 0x414   :  { %4523 = vmatmul.mubr.msk.bf16.vlgmr.msra.gmra.mrb[40].mxu1 %vm399_vm1, %v2129_v19  ;;  %v2420_v6 = vsel %vm399_vm1, %v2409_v22, 0 }
 0x415   :  { %4535 = vmatpush3.bf16.xpose.msra.mxu1 %v2279_v0  ;;  %4538 = vmatprep.mubr.msk.bf16.mxu1 %vm399_vm1, %v2265_v35 }
 0x416   :  { %4695 = vmatprep.subr.msk.bf16.mxu1 %vm399_vm1, %v2271_v41 }
 0x417   :  { %v2198_v12 = vpop.permute.xlu0 %2197  ;;  %v2403_v4 = vpop.permute.xlu1 %2402 }
 0x418   :  { %4515 = vmatmul.mubr.msk.bf16.vlgmr.msra.gmra.mrb[60].mxu0 %vm399_vm1, %v2060_v59 }
 0x419   :  { %4527 = vmatpush3.bf16.xpose.msra.mxu0 %v2210_v63  ;;  %4530 = vmatprep.mubr.msk.bf16.mxu0 %vm399_vm1, %v2196_v27 }
 0x41a   :  { %4693 = vmatprep.subr.msk.bf16.mxu0 %vm399_vm1, %v2202_v7 }
 0x41b   :  { %v2338_v16 = vpop.permute.xlu0 %2337  ;;  %v2478_v51 = vpop.permute.xlu1 %2477 }
 0x41c   :  { %v2348_v43 = vsel %vm399_vm1, %v2338_v16, 0  ;;  %v2489_v42 = vsel %vm399_vm1, %v2478_v51, 0 }
 0x41d   :  { %4537 = vmatpush3.bf16.xpose.msra.mxu1 %v2282_v26 }
 0x41f   :  { %v2267_v14 = vpop.permute.xlu0 %2266  ;;  %v2474_v50 = vpop.permute.xlu1 %2473 }
 0x421   :  { %4529 = vmatpush3.bf16.xpose.msra.mxu0 %v2213_v38 }
 0x422   :  { %4696 = vmatprep.subr.msk.bf16.mxu0 %vm399_vm1, %v2338_v16 }
 0x423   :  { %v2407_v13 = vpop.permute.xlu0 %2406  ;;  %v2909_v36 = vpop.permute.xlu1 %2908 }
 0x424   :  { %4539 = vmatmul.mubr.msk.bf16.vlgmr.msra.gmra.mrb[44].mxu1 %vm399_vm1, %v2267_v14  ;;  %4698 = vmatprep.subr.msk.bf16.mxu1 %vm399_vm1, %v2407_v13  ;;  %v2417_v11 = vsel %vm399_vm1, %v2407_v13, 0 }
 0x425   :  { %4554 = vmatprep.mubr.msk.bf16.mxu1 %vm399_vm1, %v2403_v4  ;;  %4551 = vmatpush3.bf16.xpose.msra.mxu1 %v2417_v11 }
 0x426   :  { %4699 = vmatprep.subr.msk.bf16.mxu1 %vm399_vm1, %v2409_v22 }
 0x427   :  { %v2336_v37 = vpop.permute.xlu0 %2335  ;;  %v2911_v49 = vpop.permute.xlu1 %2910 }
 0x428   :  { %4531 = vmatmul.mubr.msk.bf16.vlgmr.msra.gmra.mrb[64].mxu0 %vm399_vm1, %v2198_v12 }
 0x429   :  { %4543 = vmatpush3.bf16.xpose.msra.mxu0 %v2348_v43  ;;  %4546 = vmatprep.mubr.msk.bf16.mxu0 %vm399_vm1, %v2334_v56 }
 0x42a   :  { %4697 = vmatprep.subr.msk.bf16.mxu0 %vm399_vm1, %v2340_v32 }
 0x42b   :  { %v2476_v31 = vpop.permute.xlu0 %2475  ;;  %v5839_v3 = vpop.permute.xlu1 %3030 }
 0x42c   :  { %v2486_v9 = vsel %vm399_vm1, %v2476_v31, 0 }
 0x42d   :  { %4553 = vmatpush3.bf16.xpose.msra.mxu1 %v2420_v6 }
 0x42e   :  { %4566 = vmatprep.subr.bf16.mxu1 %v2909_v36 }
 0x42f   :  { %v2405_v57 = vpop.permute.xlu0 %2404  ;;  %v5845_v17 = vpop.permute.xlu1 %3091 }
 0x431   :  { %4545 = vmatpush3.bf16.xpose.msra.mxu0 %v2351_v2 }
 0x432   :  { %4700 = vmatprep.subr.msk.bf16.mxu0 %vm399_vm1, %v2476_v31 }
 0x433   :  { %v2472_v10 = vpop.permute.xlu0 %2471 }
 0x434   :  { %4555 = vmatmul.mubr.msk.bf16.vlgmr.msra.gmra.mrb[48].mxu1 %vm399_vm1, %v2405_v57 }
 0x435   :  { %4567 = vmatpush3.bf16.msra.mxu1 %v2909_v36 }
 0x436   :  { %4568 = vmatprep.subr.bf16.mxu1 %v2911_v49 }
 0x437   :  { %v2970_v30 = vpop.permute.xlu0 %2969 }
 0x438   :  { %4547 = vmatmul.mubr.msk.bf16.vlgmr.msra.gmra.mrb[68].mxu0 %vm399_vm1, %v2336_v37 }
 0x439   :  { %4559 = vmatpush3.bf16.xpose.msra.mxu0 %v2486_v9  ;;  %4562 = vmatprep.mubr.msk.bf16.mxu0 %vm399_vm1, %v2472_v10 }
 0x43a   :  { %4701 = vmatprep.subr.msk.bf16.mxu0 %vm399_vm1, %v2478_v51  ;;  %4569 = vmatpush3.bf16.msra.mxu1 %v2911_v49 }
 0x43b   :  { %4582 = vmatprep.subr.bf16.mxu1 %v5839_v3  ;;  %v2972_v53 = vpop.permute.xlu0 %2971 }
 0x441   :  { %4561 = vmatpush3.bf16.xpose.msra.mxu0 %v2489_v42 }
 0x442   :  { %4574 = vmatprep.subr.bf16.mxu0 %v2970_v30 }
 0x448   :  { %4563 = vmatmul.mubr.msk.bf16.vlgmr.msra.gmra.mrb[72].mxu0 %vm399_vm1, %v2474_v50 }
 0x449   :  { %4575 = vmatpush3.bf16.msra.mxu0 %v2970_v30 }
 0x44a   :  { %4576 = vmatprep.subr.bf16.mxu0 %v2972_v53 }
 0x44d   :  { %4577 = vmatpush3.bf16.msra.mxu0 %v2972_v53 }
 0x44e   :  { %4590 = vmatprep.subr.bf16.mxu0 %v5845_v17 }
 0x45a   :  { %v4444_v45 = vpop.f32.mrb[40].mxu0 }
 0x45b   :  { %v1788_v61 = vadd.f32 3.0, %v4444_v45  ;;  %v1344_v28 = vpop.f32.mrb[41].mxu0 }
 0x45c   :  { %v1786_v20 = vadd.f32 3.0, %v1344_v28  ;;  %v4445_v55 = vpop.f32.mrb[42].mxu0 }
 0x45d   :  { %v1820_v39 = vmax.f32 %v1788_v61, 0.0  ;;  %v1789_v34 = vadd.f32 3.0, %v4445_v55  ;;  %v1347_v44 = vpop.f32.mrb[43].mxu0 }
 0x45e   :  { %v1818_v27 = vmax.f32 %v1786_v20, 0.0  ;;  %v1787_v5 = vadd.f32 3.0, %v1347_v44 }
 0x45f   :  { %v1852_v23 = vmin.f32 %v1820_v39, 6.0  ;;  %v1821_v52 = vmax.f32 %v1789_v34, 0.0 }
 0x460   :  { %v1850_v21 = vmin.f32 %v1818_v27, 6.0  ;;  %v1819_v33 = vmax.f32 %v1787_v5, 0.0 }
 0x461   :  { %v1884_v41 = vmul.f32 %v4444_v45, %v1852_v23  ;;  %v1853_v18 = vmin.f32 %v1821_v52, 6.0 }
 0x462   :  { %v1882_v1 = vmul.f32 %v1850_v21, %v1344_v28  ;;  %v1851_v29 = vmin.f32 %v1819_v33, 6.0 }
 0x463   :  { %v1916_v58 = vmul.f32 0.16666667, %v1884_v41  ;;  %v1885_v8 = vmul.f32 %v4445_v55, %v1853_v18 }
 0x464   :  { %v1914_v40 = vmul.f32 0.16666667, %v1882_v1  ;;  %v1883_v60 = vmul.f32 %v1851_v29, %v1347_v44  ;;  %v4452_v35 = vpop.f32.mrb[44].mxu0 }
 0x465   :  { %v1917_v46 = vmul.f32 0.16666667, %v1885_v8  ;;  %v1792_v62 = vadd.f32 3.0, %v4452_v35  ;;  %v1405_v32 = vpop.f32.mrb[45].mxu0  ;;  %1949 = vst.msk [vmem:[#allocation2 + $0x10] sm:$0xff] %vm1946_vm2, %v1916_v58 }
 0x466   :  { %v1915_v59 = vmul.f32 0.16666667, %v1883_v60  ;;  %v1790_v47 = vadd.f32 3.0, %v1405_v32  ;;  %v4453_v56 = vpop.f32.mrb[46].mxu0  ;;  %1947 = vst.msk [vmem:[#allocation2] sm:$0xff] %vm1946_vm2, %v1914_v40 }
 0x467   :  { %v1824_v7 = vmax.f32 %v1792_v62, 0.0  ;;  %v1793_v15 = vadd.f32 3.0, %v4453_v56  ;;  %v1408_v19 = vpop.f32.mrb[47].mxu0  ;;  %1950 = vst.msk [vmem:[#allocation2 + $0x18] sm:$0xff] %vm1946_vm2, %v1917_v46 }
 0x468   :  { %v1822_v0 = vmax.f32 %v1790_v47, 0.0  ;;  %v1791_v22 = vadd.f32 3.0, %v1408_v19  ;;  %1948 = vst.msk [vmem:[#allocation2 + $0x8] sm:$0xff] %vm1946_vm2, %v1915_v59 }
 0x469   :  { %v1856_v12 = vmin.f32 %v1824_v7, 6.0  ;;  %v1825_v63 = vmax.f32 %v1793_v15, 0.0 }
 0x46a   :  { %v1854_v4 = vmin.f32 %v1822_v0, 6.0  ;;  %v1823_v16 = vmax.f32 %v1791_v22, 0.0 }
 0x46b   :  { %v1888_v26 = vmul.f32 %v4452_v35, %v1856_v12  ;;  %v1857_v14 = vmin.f32 %v1825_v63, 6.0 }
 0x46c   :  { %v1886_v38 = vmul.f32 %v1854_v4, %v1405_v32  ;;  %v1855_v51 = vmin.f32 %v1823_v16, 6.0 }
 0x46d   :  { %v1920_v13 = vmul.f32 0.16666667, %v1888_v26  ;;  %v1889_v11 = vmul.f32 %v4453_v56, %v1857_v14 }
 0x46e   :  { %v1918_v50 = vmul.f32 0.16666667, %v1886_v38  ;;  %v1887_v37 = vmul.f32 %v1855_v51, %v1408_v19 }
 0x46f   :  { %v1921_v43 = vmul.f32 0.16666667, %v1889_v11  ;;  %1953 = vst.msk [vmem:[#allocation2 + $0x30] sm:$0xff] %vm1946_vm2, %v1920_v13 }
 0x470   :  { %v1919_v31 = vmul.f32 0.16666667, %v1887_v37  ;;  %1951 = vst.msk [vmem:[#allocation2 + $0x20] sm:$0xff] %vm1946_vm2, %v1918_v50 }
 0x471   :  { %1954 = vst.msk [vmem:[#allocation2 + $0x38] sm:$0xff] %vm1946_vm2, %v1921_v43 }
 0x472   :  { %1952 = vst.msk [vmem:[#allocation2 + $0x28] sm:$0xff] %vm1946_vm2, %v1919_v31 }
 0x478   :  { %v4460_v6 = vpop.f32.mrb[24].mxu1 }
 0x479   :  { %v1796_v36 = vadd.f32 3.0, %v4460_v6  ;;  %v1466_v2 = vpop.f32.mrb[25].mxu1 }
 0x47a   :  { %v1794_v57 = vadd.f32 3.0, %v1466_v2  ;;  %v4461_v49 = vpop.f32.mrb[26].mxu1 }
 0x47b   :  { %v1828_v10 = vmax.f32 %v1796_v36, 0.0  ;;  %v1797_v9 = vadd.f32 3.0, %v4461_v49  ;;  %v1469_v42 = vpop.f32.mrb[27].mxu1 }
 0x47c   :  { %v1826_v30 = vmax.f32 %v1794_v57, 0.0  ;;  %v1795_v53 = vadd.f32 3.0, %v1469_v42 }
 0x47d   :  { %v1860_v45 = vmin.f32 %v1828_v10, 6.0  ;;  %v1829_v61 = vmax.f32 %v1797_v9, 0.0 }
 0x47e   :  { %v1858_v28 = vmin.f32 %v1826_v30, 6.0  ;;  %v1827_v20 = vmax.f32 %v1795_v53, 0.0 }
 0x47f   :  { %v1892_v55 = vmul.f32 %v4460_v6, %v1860_v45  ;;  %v1861_v39 = vmin.f32 %v1829_v61, 6.0 }
 0x480   :  { %v1890_v34 = vmul.f32 %v1858_v28, %v1466_v2  ;;  %v1859_v44 = vmin.f32 %v1827_v20, 6.0  ;;  %v4476_v27 = vpop.f32.mrb[28].mxu1 }
 0x481   :  { %v1924_v5 = vmul.f32 0.16666667, %v1892_v55  ;;  %v1893_v23 = vmul.f32 %v4461_v49, %v1861_v39  ;;  %v1804_v52 = vadd.f32 3.0, %v4476_v27  ;;  %v1588_v21 = vpop.f32.mrb[29].mxu1 }
 0x482   :  { %v1922_v33 = vmul.f32 0.16666667, %v1890_v34  ;;  %v1891_v41 = vmul.f32 %v1859_v44, %v1469_v42  ;;  %v1802_v18 = vadd.f32 3.0, %v1588_v21  ;;  %v4477_v1 = vpop.f32.mrb[30].mxu1 }
 0x483   :  { %v1925_v29 = vmul.f32 0.16666667, %v1893_v23  ;;  %v1836_v58 = vmax.f32 %v1804_v52, 0.0  ;;  %v1805_v8 = vadd.f32 3.0, %v4477_v1  ;;  %v1591_v40 = vpop.f32.mrb[31].mxu1  ;;  %1957 = vst.msk [vmem:[#allocation2 + $0x50] sm:$0xff] %vm1946_vm2, %v1924_v5 }
 0x484   :  { %v1923_v60 = vmul.f32 0.16666667, %v1891_v41  ;;  %v1834_v35 = vmax.f32 %v1802_v18, 0.0  ;;  %v1803_v46 = vadd.f32 3.0, %v1591_v40  ;;  %1955 = vst.msk [vmem:[#allocation2 + $0x40] sm:$0xff] %vm1946_vm2, %v1922_v33 }
 0x485   :  { %v1868_v62 = vmin.f32 %v1836_v58, 6.0  ;;  %v1837_v32 = vmax.f32 %v1805_v8, 0.0  ;;  %1958 = vst.msk [vmem:[#allocation2 + $0x58] sm:$0xff] %vm1946_vm2, %v1925_v29 }
 0x486   :  { %v1866_v59 = vmin.f32 %v1834_v35, 6.0  ;;  %v1835_v47 = vmax.f32 %v1803_v46, 0.0  ;;  %1956 = vst.msk [vmem:[#allocation2 + $0x48] sm:$0xff] %vm1946_vm2, %v1923_v60 }
 0x487   :  { %v1900_v56 = vmul.f32 %v4476_v27, %v1868_v62  ;;  %v1869_v7 = vmin.f32 %v1837_v32, 6.0 }
 0x488   :  { %v1898_v15 = vmul.f32 %v1866_v59, %v1588_v21  ;;  %v1867_v19 = vmin.f32 %v1835_v47, 6.0 }
 0x489   :  { %v1932_v0 = vmul.f32 0.16666667, %v1900_v56  ;;  %v1901_v22 = vmul.f32 %v4477_v1, %v1869_v7 }
 0x48a   :  { %v1930_v12 = vmul.f32 0.16666667, %v1898_v15  ;;  %v1899_v63 = vmul.f32 %v1867_v19, %v1591_v40 }
 0x48b   :  { %v1933_v4 = vmul.f32 0.16666667, %v1901_v22  ;;  %1965 = vst.msk [vmem:[#allocation2 + $0x90] sm:$0xff] %vm1946_vm2, %v1932_v0 }
 0x48c   :  { %v1931_v16 = vmul.f32 0.16666667, %v1899_v63  ;;  %1963 = vst.msk [vmem:[#allocation2 + $0x80] sm:$0xff] %vm1946_vm2, %v1930_v12 }
 0x48d   :  { %1966 = vst.msk [vmem:[#allocation2 + $0x98] sm:$0xff] %vm1946_vm2, %v1933_v4 }
 0x48e   :  { %v4492_v26 = vpop.f32.mrb[32].mxu1  ;;  %1964 = vst.msk [vmem:[#allocation2 + $0x88] sm:$0xff] %vm1946_vm2, %v1931_v16 }
 0x48f   :  { %v1812_v14 = vadd.f32 3.0, %v4492_v26  ;;  %v1710_v38 = vpop.f32.mrb[33].mxu1 }
 0x490   :  { %v1810_v51 = vadd.f32 3.0, %v1710_v38  ;;  %v4493_v13 = vpop.f32.mrb[34].mxu1 }
 0x491   :  { %v1844_v11 = vmax.f32 %v1812_v14, 0.0  ;;  %v1813_v50 = vadd.f32 3.0, %v4493_v13  ;;  %v1713_v37 = vpop.f32.mrb[35].mxu1 }
 0x492   :  { %v1842_v43 = vmax.f32 %v1810_v51, 0.0  ;;  %v1811_v31 = vadd.f32 3.0, %v1713_v37  ;;  %v4468_v6 = vpop.f32.mrb[48].mxu0 }
 0x493   :  { %v1876_v36 = vmin.f32 %v1844_v11, 6.0  ;;  %v1845_v2 = vmax.f32 %v1813_v50, 0.0  ;;  %v1800_v57 = vadd.f32 3.0, %v4468_v6  ;;  %v1527_v49 = vpop.f32.mrb[49].mxu0 }
 0x494   :  { %v1874_v10 = vmin.f32 %v1842_v43, 6.0  ;;  %v1843_v9 = vmax.f32 %v1811_v31, 0.0  ;;  %v1798_v42 = vadd.f32 3.0, %v1527_v49  ;;  %v4469_v30 = vpop.f32.mrb[50].mxu0 }
 0x495   :  { %v1908_v53 = vmul.f32 %v4492_v26, %v1876_v36  ;;  %v1877_v45 = vmin.f32 %v1845_v2, 6.0  ;;  %v1832_v61 = vmax.f32 %v1800_v57, 0.0  ;;  %v1801_v28 = vadd.f32 3.0, %v4469_v30  ;;  %v1530_v20 = vpop.f32.mrb[51].mxu0 }
 0x496   :  { %v1906_v55 = vmul.f32 %v1874_v10, %v1710_v38  ;;  %v1875_v39 = vmin.f32 %v1843_v9, 6.0  ;;  %v1830_v34 = vmax.f32 %v1798_v42, 0.0  ;;  %v1799_v44 = vadd.f32 3.0, %v1530_v20  ;;  %v4172_v10 = vld [vmem:[%s6578_s3 + $0x10] sm:$0xff]  }
 0x497   :  { %v1940_v27 = vmul.f32 0.16666667, %v1908_v53  ;;  %v1909_v5 = vmul.f32 %v4493_v13, %v1877_v45  ;;  %v1864_v23 = vmin.f32 %v1832_v61, 6.0  ;;  %v1833_v52 = vmax.f32 %v1801_v28, 0.0 }
 0x498   :  { %v1938_v21 = vmul.f32 0.16666667, %v1906_v55  ;;  %v1907_v33 = vmul.f32 %v1875_v39, %v1713_v37  ;;  %v1862_v41 = vmin.f32 %v1830_v34, 6.0  ;;  %v1831_v18 = vmax.f32 %v1799_v44, 0.0 }
 0x499   :  { %v1941_v1 = vmul.f32 0.16666667, %v1909_v5  ;;  %v1896_v29 = vmul.f32 %v4468_v6, %v1864_v23  ;;  %v1865_v58 = vmin.f32 %v1833_v52, 6.0  ;;  %1973 = vst.msk [vmem:[#allocation2 + $0xd0] sm:$0xff] %vm1946_vm2, %v1940_v27  ;;  %v5884_v42 = vunpack.c.l.bf16 %v4172_v10 }
 0x49a   :  { %v1939_v8 = vmul.f32 0.16666667, %v1907_v33  ;;  %v1894_v40 = vmul.f32 %v1862_v41, %v1527_v49  ;;  %v1863_v60 = vmin.f32 %v1831_v18, 6.0  ;;  %1971 = vst.msk [vmem:[#allocation2 + $0xc0] sm:$0xff] %vm1946_vm2, %v1938_v21  ;;  %v4173_v49 = vld [vmem:[%s6578_s3 + $0x18] sm:$0xff]   ;;  %v5888_v45 = vunpack.c.h.bf16 %v4172_v10 }
 0x49b   :  { %v1928_v35 = vmul.f32 0.16666667, %v1896_v29  ;;  %v1897_v46 = vmul.f32 %v4469_v30, %v1865_v58  ;;  %1974 = vst.msk [vmem:[#allocation2 + $0xd8] sm:$0xff] %vm1946_vm2, %v1941_v1  ;;  %v5882_v9 = vunpack.c.l.bf16 %v4173_v49  ;;  %v5886_v53 = vunpack.c.h.bf16 %v4173_v49 }
 0x49c   :  { %v1926_v62 = vmul.f32 0.16666667, %v1894_v40  ;;  %v1895_v32 = vmul.f32 %v1863_v60, %v1530_v20  ;;  %1972 = vst.msk [vmem:[#allocation2 + $0xc8] sm:$0xff] %vm1946_vm2, %v1939_v8 }
 0x49d   :  { %v1929_v59 = vmul.f32 0.16666667, %v1897_v46  ;;  %1961 = vst.msk [vmem:[#allocation2 + $0x70] sm:$0xff] %vm1946_vm2, %v1928_v35 }
 0x49e   :  { %v1927_v47 = vmul.f32 0.16666667, %v1895_v32  ;;  %1959 = vst.msk [vmem:[#allocation2 + $0x60] sm:$0xff] %vm1946_vm2, %v1926_v62 }
 0x49f   :  { %1962 = vst.msk [vmem:[#allocation2 + $0x78] sm:$0xff] %vm1946_vm2, %v1929_v59 }
 0x4a0   :  { %1960 = vst.msk [vmem:[#allocation2 + $0x68] sm:$0xff] %vm1946_vm2, %v1927_v47 }
 0x4a2   :  { %v4484_v56 = vpop.f32.mrb[52].mxu0 }
 0x4a3   :  { %v1808_v7 = vadd.f32 3.0, %v4484_v56  ;;  %v1649_v15 = vpop.f32.mrb[53].mxu0 }
 0x4a4   :  { %v1806_v19 = vadd.f32 3.0, %v1649_v15  ;;  %v4485_v0 = vpop.f32.mrb[54].mxu0 }
 0x4a5   :  { %v1840_v22 = vmax.f32 %v1808_v7, 0.0  ;;  %v1809_v12 = vadd.f32 3.0, %v4485_v0  ;;  %v1652_v63 = vpop.f32.mrb[55].mxu0 }
 0x4a6   :  { %v1838_v4 = vmax.f32 %v1806_v19, 0.0  ;;  %v1807_v16 = vadd.f32 3.0, %v1652_v63 }
 0x4a7   :  { %v1872_v26 = vmin.f32 %v1840_v22, 6.0  ;;  %v1841_v14 = vmax.f32 %v1809_v12, 0.0 }
 0x4a8   :  { %v1870_v38 = vmin.f32 %v1838_v4, 6.0  ;;  %v1839_v51 = vmax.f32 %v1807_v16, 0.0 }
 0x4a9   :  { %v1904_v13 = vmul.f32 %v4484_v56, %v1872_v26  ;;  %v1873_v11 = vmin.f32 %v1841_v14, 6.0 }
 0x4aa   :  { %v1902_v50 = vmul.f32 %v1870_v38, %v1649_v15  ;;  %v1871_v37 = vmin.f32 %v1839_v51, 6.0 }
 0x4ab   :  { %v1936_v43 = vmul.f32 0.16666667, %v1904_v13  ;;  %v1905_v31 = vmul.f32 %v4485_v0, %v1873_v11 }
 0x4ac   :  { %v1934_v6 = vmul.f32 0.16666667, %v1902_v50  ;;  %v1903_v36 = vmul.f32 %v1871_v37, %v1652_v63 }
 0x4ad   :  { %v1937_v2 = vmul.f32 0.16666667, %v1905_v31  ;;  %1969 = vst.msk [vmem:[#allocation2 + $0xb0] sm:$0xff] %vm1946_vm2, %v1936_v43 }
 0x4ae   :  { %v1935_v57 = vmul.f32 0.16666667, %v1903_v36  ;;  %1967 = vst.msk [vmem:[#allocation2 + $0xa0] sm:$0xff] %vm1946_vm2, %v1934_v6 }
 0x4af   :  { %1970 = vst.msk [vmem:[#allocation2 + $0xb8] sm:$0xff] %vm1946_vm2, %v1937_v2 }
 0x4b0   :  { %1968 = vst.msk [vmem:[#allocation2 + $0xa8] sm:$0xff] %vm1946_vm2, %v1935_v57 }
 0x4d7   :  { %v4508_v30 = vpop.f32.mrb[36].mxu1 }
 0x4d8   :  { %v5891_v61 = vadd.f32 %v4508_v30, %v5882_v9  ;;  %v2042_v28 = vpop.f32.mrb[37].mxu1 }
 0x4d9   :  { %v5894_v20 = vadd.f32 %v5884_v42, %v2042_v28  ;;  %v4509_v55 = vpop.f32.mrb[38].mxu1 }
 0x4da   :  { %v2045_v39 = vpop.f32.mrb[39].mxu1  ;;  %v2546_v34 = vsel %vm159_vm0, %v5891_v61, -inf  ;;  %v5899_v44 = vadd.f32 %v4509_v55, %v5886_v53 }
 0x4db   :  { %v5902_v27 = vadd.f32 %v5888_v45, %v2045_v39  ;;  %v4500_v5 = vpop.f32.mrb[56].mxu0  ;;  %2547 = vmax.xlane.f32.xlu1 %v2546_v34  ;;  %v2540_v23 = vsel %vm159_vm0, %v5894_v20, -inf }
 0x4dc   :  { %v1816_v52 = vadd.f32 3.0, %v4500_v5  ;;  %v1771_v21 = vpop.f32.mrb[57].mxu0  ;;  %2541 = vmax.xlane.f32.xlu0 %v2540_v23  ;;  %v2549_v60 = vsel %vm159_vm0, %v5899_v44, -inf }
 0x4dd   :  { %v1814_v33 = vadd.f32 3.0, %v1771_v21  ;;  %v4501_v41 = vpop.f32.mrb[58].mxu0  ;;  %v2543_v18 = vsel %vm159_vm0, %v5902_v27, -inf }
 0x4de   :  { %v1848_v1 = vmax.f32 %v1816_v52, 0.0  ;;  %v1817_v29 = vadd.f32 3.0, %v4501_v41  ;;  %v1774_v58 = vpop.f32.mrb[59].mxu0 }
 0x4df   :  { %v1846_v8 = vmax.f32 %v1814_v33, 0.0  ;;  %v1815_v40 = vadd.f32 3.0, %v1774_v58  ;;  %2544 = vmax.xlane.f32.xlu1 %v2543_v18 }
 0x4e0   :  { %v1880_v35 = vmin.f32 %v1848_v1, 6.0  ;;  %v1849_v46 = vmax.f32 %v1817_v29, 0.0  ;;  %2550 = vmax.xlane.f32.xlu0 %v2549_v60 }
 0x4e1   :  { %v1878_v62 = vmin.f32 %v1846_v8, 6.0  ;;  %v1847_v32 = vmax.f32 %v1815_v40, 0.0 }
 0x4e2   :  { %v1912_v59 = vmul.f32 %v4500_v5, %v1880_v35  ;;  %v1881_v47 = vmin.f32 %v1849_v46, 6.0 }
 0x4e3   :  { %v1910_v56 = vmul.f32 %v1878_v62, %v1771_v21  ;;  %v1879_v7 = vmin.f32 %v1847_v32, 6.0 }
 0x4e4   :  { %v1944_v15 = vmul.f32 0.16666667, %v1912_v59  ;;  %v1913_v19 = vmul.f32 %v4501_v41, %v1881_v47 }
 0x4e5   :  { %v1942_v0 = vmul.f32 0.16666667, %v1910_v56  ;;  %v1911_v22 = vmul.f32 %v1879_v7, %v1774_v58 }
 0x4e6   :  { %v1945_v12 = vmul.f32 0.16666667, %v1913_v19  ;;  %1977 = vst.msk [vmem:[#allocation2 + $0xf0] sm:$0xff] %vm1946_vm2, %v1944_v15 }
 0x4e7   :  { %v1943_v63 = vmul.f32 0.16666667, %v1911_v22  ;;  %v4524_v4 = vpop.f32.mrb[40].mxu1  ;;  %1975 = vst.msk [vmem:[#allocation2 + $0xe0] sm:$0xff] %vm1946_vm2, %v1942_v0 }
 0x4e8   :  { %v5913_v16 = vadd.f32 %v4524_v4, %v5882_v9  ;;  %v2180_v26 = vpop.f32.mrb[41].mxu1  ;;  %1978 = vst.msk [vmem:[#allocation2 + $0xf8] sm:$0xff] %vm1946_vm2, %v1945_v12 }
 0x4e9   :  { %v4525_v14 = vpop.f32.mrb[42].mxu1  ;;  %1976 = vst.msk [vmem:[#allocation2 + $0xe8] sm:$0xff] %vm1946_vm2, %v1943_v63  ;;  %v5918_v38 = vadd.f32 %v5884_v42, %v2180_v26 }
 0x4ea   :  { %v5921_v51 = vadd.f32 %v4525_v14, %v5886_v53  ;;  %v2183_v13 = vpop.f32.mrb[43].mxu1  ;;  %v2570_v11 = vsel %vm159_vm0, %v5913_v16, -inf }
 0x4eb   :  { %v4516_v50 = vpop.f32.mrb[60].mxu0  ;;  %2571 = vmax.xlane.f32.xlu1 %v2570_v11  ;;  %v5926_v37 = vadd.f32 %v5888_v45, %v2183_v13  ;;  %v2564_v57 = vsel %vm159_vm0, %v5918_v38, -inf }
 0x4ec   :  { %v2111_v43 = vpop.f32.mrb[61].mxu0  ;;  %v2573_v31 = vsel %vm159_vm0, %v5921_v51, -inf  ;;  %v5931_v36 = vadd.f32 %v4516_v50, %v5882_v9 }
 0x4ed   :  { %v4517_v6 = vpop.f32.mrb[62].mxu0  ;;  %2574 = vmax.xlane.f32.xlu0 %v2573_v31  ;;  %v5936_v49 = vadd.f32 %v5884_v42, %v2111_v43  ;;  %v2567_v10 = vsel %vm159_vm0, %v5926_v37, -inf }
 0x4ee   :  { %v2114_v2 = vpop.f32.mrb[63].mxu0  ;;  %v2558_v30 = vsel %vm159_vm0, %v5931_v36, -inf  ;;  %v5943_v28 = vadd.f32 %v4517_v6, %v5886_v53 }
 0x4ef   :  { %2565 = vmax.xlane.f32.xlu1 %v2564_v57  ;;  %v2552_v55 = vsel %vm159_vm0, %v5936_v49, -inf  ;;  %v5948_v34 = vadd.f32 %v5888_v45, %v2114_v2 }
 0x4f0   :  { %v2561_v52 = vsel %vm159_vm0, %v5943_v28, -inf }
 0x4f1   :  { %2568 = vmax.xlane.f32.xlu0 %v2567_v10  ;;  %v2555_v8 = vsel %vm159_vm0, %v5948_v34, -inf }
 0x4f3   :  { %2559 = vmax.xlane.f32.xlu1 %v2558_v30 }
 0x4f5   :  { %2553 = vmax.xlane.f32.xlu0 %v2552_v55 }
 0x4f7   :  { %v4540_v39 = vpop.f32.mrb[44].mxu1 }
 0x4f8   :  { %v5951_v5 = vadd.f32 %v4540_v39, %v5882_v9  ;;  %v2318_v23 = vpop.f32.mrb[45].mxu1 }
 0x4f9   :  { %v4541_v21 = vpop.f32.mrb[46].mxu1  ;;  %2562 = vmax.xlane.f32.xlu0 %v2561_v52  ;;  %v5956_v33 = vadd.f32 %v5884_v42, %v2318_v23 }
 0x4fa   :  { %v2321_v41 = vpop.f32.mrb[47].mxu1  ;;  %v2594_v18 = vsel %vm159_vm0, %v5951_v5, -inf  ;;  %v5961_v29 = vadd.f32 %v4541_v21, %v5886_v53 }
 0x4fb   :  { %v4532_v1 = vpop.f32.mrb[64].mxu0  ;;  %2595 = vmax.xlane.f32.xlu1 %v2594_v18  ;;  %v2588_v46 = vsel %vm159_vm0, %v5956_v33, -inf  ;;  %v5971_v62 = vadd.f32 %v5888_v45, %v2321_v41 }
 0x4fc   :  { %v2249_v58 = vpop.f32.mrb[65].mxu0  ;;  %v5966_v60 = vadd.f32 %v4532_v1, %v5882_v9  ;;  %v2597_v32 = vsel %vm159_vm0, %v5961_v29, -inf }
 0x4fd   :  { %v4533_v40 = vpop.f32.mrb[66].mxu0  ;;  %2556 = vmax.xlane.f32.xlu0 %v2555_v8  ;;  %v5976_v59 = vadd.f32 %v5884_v42, %v2249_v58  ;;  %v2591_v7 = vsel %vm159_vm0, %v5971_v62, -inf }
 0x4fe   :  { %v2252_v35 = vpop.f32.mrb[67].mxu0  ;;  %v2582_v47 = vsel %vm159_vm0, %v5966_v60, -inf  ;;  %v5981_v56 = vadd.f32 %v4533_v40, %v5886_v53 }
 0x4ff   :  { %2589 = vmax.xlane.f32.xlu1 %v2588_v46  ;;  %v2576_v15 = vsel %vm159_vm0, %v5976_v59, -inf  ;;  %v5988_v0 = vadd.f32 %v5888_v45, %v2252_v35 }
 0x500   :  { %v2585_v63 = vsel %vm159_vm0, %v5981_v56, -inf }
 0x501   :  { %2598 = vmax.xlane.f32.xlu0 %v2597_v32  ;;  %v2579_v31 = vsel %vm159_vm0, %v5988_v0, -inf }
 0x503   :  { %2583 = vmax.xlane.f32.xlu1 %v2582_v47 }
 0x505   :  { %2592 = vmax.xlane.f32.xlu0 %v2591_v7 }
 0x507   :  { %2577 = vmax.xlane.f32.xlu1 %v2576_v15  ;;  %v4556_v19 = vpop.f32.mrb[48].mxu1 }
 0x508   :  { %v5991_v22 = vadd.f32 %v4556_v19, %v5882_v9  ;;  %v2456_v12 = vpop.f32.mrb[49].mxu1 }
 0x509   :  { %2586 = vmax.xlane.f32.xlu0 %v2585_v63  ;;  %v4557_v4 = vpop.f32.mrb[50].mxu1  ;;  %v5996_v26 = vadd.f32 %v5884_v42, %v2456_v12 }
 0x50a   :  { %v2459_v14 = vpop.f32.mrb[51].mxu1  ;;  %v2618_v13 = vsel %vm159_vm0, %v5991_v22, -inf  ;;  %v6001_v50 = vadd.f32 %v4557_v4, %v5886_v53  ;;  %v6062_v4 = vpop.permute.xlu0 %3093 }
 0x50b   :  { %v4548_v11 = vpop.f32.mrb[68].mxu0  ;;  %2619 = vmax.xlane.f32.xlu1 %v2618_v13  ;;  %v2612_v10 = vsel %vm159_vm0, %v5996_v26, -inf  ;;  %v6011_v30 = vadd.f32 %v5888_v45, %v2459_v14 }
 0x50c   :  { %v2387_v43 = vpop.f32.mrb[69].mxu0  ;;  %v6006_v2 = vadd.f32 %v4548_v11, %v5882_v9  ;;  %v2621_v55 = vsel %vm159_vm0, %v6001_v50, -inf }
 0x50d   :  { %v4549_v6 = vpop.f32.mrb[70].mxu0  ;;  %2580 = vmax.xlane.f32.xlu0 %v2579_v31  ;;  %v6016_v39 = vadd.f32 %v5884_v42, %v2387_v43  ;;  %v2615_v21 = vsel %vm159_vm0, %v6011_v30, -inf }
 0x50e   :  { %v2390_v57 = vpop.f32.mrb[71].mxu0  ;;  %v2606_v23 = vsel %vm159_vm0, %v6006_v2, -inf  ;;  %v6021_v52 = vadd.f32 %v4549_v6, %v5886_v53  ;;  %v6066_v13 = vpop.permute.xlu0 %3154 }
 0x50f   :  { %2613 = vmax.xlane.f32.xlu1 %v2612_v10  ;;  %v2600_v41 = vsel %vm159_vm0, %v6016_v39, -inf  ;;  %v6028_v18 = vadd.f32 %v5888_v45, %v2390_v57 }
 0x510   :  { %v2609_v1 = vsel %vm159_vm0, %v6021_v52, -inf }
 0x511   :  { %2622 = vmax.xlane.f32.xlu0 %v2621_v55  ;;  %v2603_v35 = vsel %vm159_vm0, %v6028_v18, -inf }
 0x513   :  { %2607 = vmax.xlane.f32.xlu1 %v2606_v23 }
 0x515   :  { %2616 = vmax.xlane.f32.xlu0 %v2615_v21 }
 0x517   :  { %2601 = vmax.xlane.f32.xlu1 %v2600_v41 }
 0x519   :  { %2610 = vmax.xlane.f32.xlu0 %v2609_v1 }
 0x51b   :  { %v4564_v58 = vpop.f32.mrb[72].mxu0 }
 0x51c   :  { %v6033_v8 = vadd.f32 %v4564_v58, %v5882_v9  ;;  %v2525_v40 = vpop.f32.mrb[73].mxu0 }
 0x51d   :  { %v4565_v46 = vpop.f32.mrb[74].mxu0  ;;  %2604 = vmax.xlane.f32.xlu0 %v2603_v35  ;;  %v6038_v32 = vadd.f32 %v5884_v42, %v2525_v40 }
 0x51e   :  { %v6041_v47 = vadd.f32 %v4565_v46, %v5886_v53  ;;  %v2528_v7 = vpop.f32.mrb[75].mxu0  ;;  %v2630_v15 = vsel %vm159_vm0, %v6033_v8, -inf  ;;  %v6056_v53 = vpop.permute.xlu1 %3032 }
 0x51f   :  { %2631 = vmax.xlane.f32.xlu1 %v2630_v15  ;;  %v6046_v9 = vadd.f32 %v5888_v45, %v2528_v7  ;;  %v2624_v12 = vsel %vm159_vm0, %v6038_v32, -inf }
 0x520   :  { %v2633_v19 = vsel %vm159_vm0, %v6041_v47, -inf }
 0x521   :  { %2634 = vmax.xlane.f32.xlu0 %v2633_v19  ;;  %v2627_v42 = vsel %vm159_vm0, %v6046_v9, -inf }
 0x522   :  { %v6058_v63 = vpop.permute.xlu1 %3152 }
 0x523   :  { %2625 = vmax.xlane.f32.xlu1 %v2624_v12 }
 0x525   :  { %2628 = vmax.xlane.f32.xlu0 %v2627_v42 }
 0x526   :  { %v6060_v45 = vpop.permute.xlu1 %3213 }
 0x52a   :  { %v6064_v14 = vpop.permute.xlu1 %3215 }
 0x53b   :  { %3274 = vrot.lane.b32.xlu0 %v5182_v25, %s4988_s15 }
 0x568   :  { %v2548_v11 = vpop.xlane.xlu1 %2547 }
 0x569   :  { %v2638_v43 = vsub.f32 %v5891_v61, %v2548_v11  ;;  %v2542_v31 = vpop.xlane.xlu0 %2541 }
 0x56a   :  { %v2636_v6 = vsub.f32 %v5894_v20, %v2542_v31 }
 0x56b   :  { %v2672_v57 = vmul.f32 1.442695, %v2638_v43 }
 0x56c   :  { %v2668_v25 = vmul.f32 1.442695, %v2636_v6  ;;  %v2545_v10 = vpop.xlane.xlu1 %2544 }
 0x56d   :  { %4856 = vpow2.f32 %v2672_v57  ;;  %v2637_v55 = vsub.f32 %v5902_v27, %v2545_v10  ;;  %v2551_v23 = vpop.xlane.xlu0 %2550 }
 0x56e   :  { %v2639_v21 = vsub.f32 %v5899_v44, %v2551_v23  ;;  %4858 = vpow2.f32 %v2668_v25 }
 0x56f   :  { %v2670_v41 = vmul.f32 1.442695, %v2637_v55 }
 0x570   :  { %v2674_v1 = vmul.f32 1.442695, %v2639_v21 }
 0x572   :  { %4860 = vpow2.f32 %v2674_v1 }
 0x573   :  { %4862 = vpow2.f32 %v2670_v41 }
 0x577   :  { %v6072_v58 = vpop.eup %4856 }
 0x578   :  { %v2572_v61 = vpop.xlane.xlu1 %2571  ;;  %v2738_v20 = vsel %vm159_vm0, %v6072_v58, 0.0  ;;  %v6076_v40 = vpop.eup %4858 }
 0x579   :  { %v2646_v35 = vsub.f32 %v5913_v16, %v2572_v61  ;;  %2739 = vadd.xlane.f32.xlu1 %v2738_v20  ;;  %v2732_v19 = vsel %vm159_vm0, %v6076_v40, 0.0 }
 0x57a   :  { %v2575_v27 = vpop.xlane.xlu0 %2574 }
 0x57b   :  { %v2688_v46 = vmul.f32 1.442695, %v2646_v35  ;;  %v2647_v44 = vsub.f32 %v5921_v51, %v2575_v27 }
 0x57c   :  { %v6080_v7 = vpop.eup %4860  ;;  %v2566_v15 = vpop.xlane.xlu1 %2565 }
 0x57d   :  { %4864 = vpow2.f32 %v2688_v46  ;;  %v2690_v12 = vmul.f32 1.442695, %v2647_v44  ;;  %v2644_v42 = vsub.f32 %v5918_v38, %v2566_v15  ;;  %2733 = vadd.xlane.f32.xlu1 %v2732_v19  ;;  %v2741_v11 = vsel %vm159_vm0, %v6080_v7, 0.0  ;;  %v6087_v16 = vpop.eup %4862 }
 0x57e   :  { %2742 = vadd.xlane.f32.xlu0 %v2741_v11  ;;  %v2569_v43 = vpop.xlane.xlu0 %2568  ;;  %v2735_v38 = vsel %vm159_vm0, %v6087_v16, 0.0 }
 0x57f   :  { %4866 = vpow2.f32 %v2690_v12  ;;  %v2684_v51 = vmul.f32 1.442695, %v2644_v42  ;;  %v2645_v31 = vsub.f32 %v5926_v37, %v2569_v43 }
 0x580   :  { %v2560_v6 = vpop.xlane.xlu1 %2559 }
 0x581   :  { %4868 = vpow2.f32 %v2684_v51  ;;  %v2686_v57 = vmul.f32 1.442695, %v2645_v31  ;;  %v2642_v25 = vsub.f32 %v5931_v36, %v2560_v6 }
 0x582   :  { %2736 = vadd.xlane.f32.xlu0 %v2735_v38  ;;  %v2554_v10 = vpop.xlane.xlu0 %2553 }
 0x583   :  { %4870 = vpow2.f32 %v2686_v57  ;;  %v2680_v55 = vmul.f32 1.442695, %v2642_v25  ;;  %v2640_v23 = vsub.f32 %v5936_v49, %v2554_v10 }
 0x585   :  { %4872 = vpow2.f32 %v2680_v55  ;;  %v2676_v21 = vmul.f32 1.442695, %v2640_v23 }
 0x586   :  { %v2563_v41 = vpop.xlane.xlu0 %2562 }
 0x587   :  { %v6094_v1 = vpop.eup %4864  ;;  %4874 = vpow2.f32 %v2676_v21  ;;  %v2643_v37 = vsub.f32 %v5943_v28, %v2563_v41 }
 0x588   :  { %v2596_v61 = vpop.xlane.xlu1 %2595  ;;  %v2762_v36 = vsel %vm159_vm0, %v6094_v1, 0.0 }
 0x589   :  { %v6099_v20 = vpop.eup %4866  ;;  %v2682_v35 = vmul.f32 1.442695, %v2643_v37  ;;  %v2654_v27 = vsub.f32 %v5951_v5, %v2596_v61  ;;  %2763 = vadd.xlane.f32.xlu1 %v2762_v36 }
 0x58a   :  { %v2557_v46 = vpop.xlane.xlu0 %2556  ;;  %v2765_v49 = vsel %vm159_vm0, %v6099_v20, 0.0 }
 0x58b   :  { %v6104_v44 = vpop.eup %4868  ;;  %4876 = vpow2.f32 %v2682_v35  ;;  %v2704_v15 = vmul.f32 1.442695, %v2654_v27  ;;  %v2641_v28 = vsub.f32 %v5948_v34, %v2557_v46  ;;  %2766 = vadd.xlane.f32.xlu0 %v2765_v49 }
 0x58c   :  { %v2590_v19 = vpop.xlane.xlu1 %2589  ;;  %v2756_v12 = vsel %vm159_vm0, %v6104_v44, 0.0 }
 0x58d   :  { %v6109_v42 = vpop.eup %4870  ;;  %4878 = vpow2.f32 %v2704_v15  ;;  %v2678_v5 = vmul.f32 1.442695, %v2641_v28  ;;  %v2652_v11 = vsub.f32 %v5956_v33, %v2590_v19  ;;  %2757 = vadd.xlane.f32.xlu1 %v2756_v12 }
 0x58e   :  { %v2599_v43 = vpop.xlane.xlu0 %2598  ;;  %v2759_v51 = vsel %vm159_vm0, %v6109_v42, 0.0 }
 0x58f   :  { %v6114_v31 = vpop.eup %4872  ;;  %4880 = vpow2.f32 %v2678_v5  ;;  %v2700_v34 = vmul.f32 1.442695, %v2652_v11  ;;  %v2655_v6 = vsub.f32 %v5961_v29, %v2599_v43  ;;  %2760 = vadd.xlane.f32.xlu0 %v2759_v51 }
 0x590   :  { %v2584_v57 = vpop.xlane.xlu1 %2583  ;;  %v2750_v25 = vsel %vm159_vm0, %v6114_v31, 0.0 }
 0x591   :  { %v6119_v38 = vpop.eup %4874  ;;  %4882 = vpow2.f32 %v2700_v34  ;;  %v2706_v33 = vmul.f32 1.442695, %v2655_v6  ;;  %v2650_v10 = vsub.f32 %v5966_v60, %v2584_v57  ;;  %2751 = vadd.xlane.f32.xlu1 %v2750_v25 }
 0x592   :  { %v2593_v55 = vpop.xlane.xlu0 %2592  ;;  %v2744_v29 = vsel %vm159_vm0, %v6119_v38, 0.0 }
 0x593   :  { %4884 = vpow2.f32 %v2706_v33  ;;  %v2696_v23 = vmul.f32 1.442695, %v2650_v10  ;;  %v2653_v21 = vsub.f32 %v5971_v62, %v2593_v55 }
 0x594   :  { %v2578_v41 = vpop.xlane.xlu1 %2577 }
 0x595   :  { %v6125_v37 = vpop.eup %4876  ;;  %4886 = vpow2.f32 %v2696_v23  ;;  %v2702_v61 = vmul.f32 1.442695, %v2653_v21  ;;  %v2648_v36 = vsub.f32 %v5976_v59, %v2578_v41  ;;  %2745 = vadd.xlane.f32.xlu1 %v2744_v29 }
 0x596   :  { %v2587_v35 = vpop.xlane.xlu0 %2586  ;;  %v2753_v60 = vsel %vm159_vm0, %v6125_v37, 0.0 }
 0x597   :  { %v6130_v27 = vpop.eup %4878  ;;  %4888 = vpow2.f32 %v2702_v61  ;;  %v2692_v46 = vmul.f32 1.442695, %v2648_v36  ;;  %v2651_v62 = vsub.f32 %v5981_v56, %v2587_v35  ;;  %2754 = vadd.xlane.f32.xlu0 %v2753_v60 }
 0x598   :  { %v2620_v49 = vpop.xlane.xlu1 %2619  ;;  %v2786_v15 = vsel %vm159_vm0, %v6130_v27, 0.0 }
 0x599   :  { %v6135_v28 = vpop.eup %4880  ;;  %4890 = vpow2.f32 %v2692_v46  ;;  %v2698_v59 = vmul.f32 1.442695, %v2651_v62  ;;  %v2662_v19 = vsub.f32 %v5991_v22, %v2620_v49  ;;  %2787 = vadd.xlane.f32.xlu1 %v2786_v15 }
 0x59a   :  { %v2581_v12 = vpop.xlane.xlu0 %2580  ;;  %v2747_v5 = vsel %vm159_vm0, %v6135_v28, 0.0 }
 0x59b   :  { %v6140_v11 = vpop.eup %4882  ;;  %4892 = vpow2.f32 %v2698_v59  ;;  %v2649_v56 = vsub.f32 %v5988_v0, %v2581_v12  ;;  %2748 = vadd.xlane.f32.xlu0 %v2747_v5  ;;  %v2720_v6 = vmul.f32 1.442695, %v2662_v19 }
 0x59c   :  { %v2614_v43 = vpop.xlane.xlu1 %2613  ;;  %v2780_v51 = vsel %vm159_vm0, %v6140_v11, 0.0 }
 0x59d   :  { %v6145_v34 = vpop.eup %4884  ;;  %v2694_v57 = vmul.f32 1.442695, %v2649_v56  ;;  %v2660_v22 = vsub.f32 %v5996_v26, %v2614_v43  ;;  %2781 = vadd.xlane.f32.xlu1 %v2780_v51 }
 0x59e   :  { %v2623_v25 = vpop.xlane.xlu0 %2622  ;;  %v2789_v33 = vsel %vm159_vm0, %v6145_v34, 0.0 }
 0x59f   :  { %v6150_v10 = vpop.eup %4886  ;;  %4894 = vpow2.f32 %v2694_v57  ;;  %2790 = vadd.xlane.f32.xlu0 %v2789_v33  ;;  %v2716_v23 = vmul.f32 1.442695, %v2660_v22  ;;  %v2663_v21 = vsub.f32 %v6001_v50, %v2623_v25 }
 0x5a0   :  { %v2774_v0 = vsel %vm159_vm0, %v6150_v10, 0.0  ;;  %4896 = vpow2.f32 %v2720_v6  ;;  %v2608_v26 = vpop.xlane.xlu1 %2607 }
 0x5a1   :  { %v6154_v55 = vpop.eup %4888  ;;  %2775 = vadd.xlane.f32.xlu1 %v2774_v0  ;;  %4898 = vpow2.f32 %v2716_v23  ;;  %v2722_v60 = vmul.f32 1.442695, %v2663_v21 }
 0x5a2   :  { %v2617_v41 = vpop.xlane.xlu0 %2616  ;;  %v2783_v29 = vsel %vm159_vm0, %v6154_v55, 0.0 }
 0x5a3   :  { %v6159_v61 = vpop.eup %4890  ;;  %2784 = vadd.xlane.f32.xlu0 %v2783_v29  ;;  %4900 = vpow2.f32 %v2722_v60 }
 0x5a4   :  { %v2768_v36 = vsel %vm159_vm0, %v6159_v61, 0.0  ;;  %v2602_v49 = vpop.xlane.xlu1 %2601 }
 0x5a5   :  { %v6163_v35 = vpop.eup %4892  ;;  %2769 = vadd.xlane.f32.xlu1 %v2768_v36 }
 0x5a6   :  { %v2611_v46 = vpop.xlane.xlu0 %2610  ;;  %v2777_v50 = vsel %vm159_vm0, %v6163_v35, 0.0 }
 0x5a7   :  { %v2659_v62 = vsub.f32 %v6021_v52, %v2611_v46  ;;  %2778 = vadd.xlane.f32.xlu0 %v2777_v50 }
 0x5a9   :  { %v6168_v15 = vpop.eup %4894  ;;  %v2714_v59 = vmul.f32 1.442695, %v2659_v62  ;;  %v2661_v62 = vsub.f32 %v6011_v30, %v2617_v41 }
 0x5aa   :  { %v2605_v19 = vpop.xlane.xlu0 %2604  ;;  %v2771_v12 = vsel %vm159_vm0, %v6168_v15, 0.0  ;;  %v6172_v5 = vpop.eup %4896 }
 0x5ab   :  { %v2657_v56 = vsub.f32 %v6028_v18, %v2605_v19  ;;  %2772 = vadd.xlane.f32.xlu0 %v2771_v12  ;;  %4902 = vpow2.f32 %v2714_v59  ;;  %v2810_v57 = vsel %vm159_vm0, %v6172_v5, 0.0  ;;  %v6178_v22 = vpop.eup %4898  ;;  %v2658_v19 = vsub.f32 %v6006_v2, %v2608_v26 }
 0x5ac   :  { %v2632_v43 = vpop.xlane.xlu1 %2631  ;;  %v2804_v0 = vsel %vm159_vm0, %v6178_v22, 0.0  ;;  %v2718_v12 = vmul.f32 1.442695, %v2661_v62 }
 0x5ad   :  { %v2710_v51 = vmul.f32 1.442695, %v2657_v56  ;;  %v2666_v52 = vsub.f32 %v6033_v8, %v2632_v43  ;;  %v6182_v18 = vpop.eup %4900  ;;  %v2712_v56 = vmul.f32 1.442695, %v2658_v19  ;;  %v2656_v43 = vsub.f32 %v6016_v39, %v2602_v49 }
 0x5ae   :  { %v2635_v6 = vpop.xlane.xlu0 %2634  ;;  %v2813_v21 = vsel %vm159_vm0, %v6182_v18, 0.0 }
 0x5af   :  { %2811 = vadd.xlane.f32.xlu0 %v2810_v57  ;;  %4904 = vpow2.f32 %v2710_v51  ;;  %v2728_v25 = vmul.f32 1.442695, %v2666_v52  ;;  %v2708_v52 = vmul.f32 1.442695, %v2656_v43 }
 0x5b0   :  { %v2626_v51 = vpop.xlane.xlu1 %2625 }
 0x5b1   :  { %4906 = vpow2.f32 %v2728_v25  ;;  %v2664_v57 = vsub.f32 %v6038_v32, %v2626_v51  ;;  %v2667_v25 = vsub.f32 %v6041_v47, %v2635_v6 }
 0x5b2   :  { %v2629_v33 = vpop.xlane.xlu0 %2628 }
 0x5b3   :  { %v2665_v23 = vsub.f32 %v6046_v9, %v2629_v33  ;;  %2805 = vadd.xlane.f32.xlu0 %v2804_v0  ;;  %v2724_v30 = vmul.f32 1.442695, %v2664_v57  ;;  %v2730_v33 = vmul.f32 1.442695, %v2667_v25 }
 0x5b5   :  { %v2726_v8 = vmul.f32 1.442695, %v2665_v23  ;;  %v6189_v29 = vpop.eup %4902 }
 0x5b6   :  { %3276 = vrot.lane.b32.xlu1 %v5180_v24, %s4988_s15  ;;  %v2801_v36 = vsel %vm159_vm0, %v6189_v29, 0.0 }
 0x5b7   :  { %2814 = vadd.xlane.f32.xlu0 %v2813_v21  ;;  %4908 = vpow2.f32 %v2726_v8  ;;  %v6234_v8 = vpop.permute.xlu0 %3274 }
 0x5b8   :  { %4910 = vpow2.f32 %v2718_v12 }
 0x5b9   :  { %v6193_v60 = vpop.eup %4904  ;;  %4912 = vpow2.f32 %v2712_v56 }
 0x5ba   :  { %v2795_v9 = vsel %vm159_vm0, %v6193_v60, 0.0  ;;  %4914 = vpow2.f32 %v2708_v52 }
 0x5bb   :  { %2802 = vadd.xlane.f32.xlu0 %v2801_v36  ;;  %v6197_v46 = vpop.eup %4906  ;;  %4916 = vpow2.f32 %v2724_v30 }
 0x5bc   :  { %v2822_v24 = vsel %vm159_vm0, %v6197_v46, 0.0  ;;  %4918 = vpow2.f32 %v2730_v33 }
 0x5bf   :  { %2796 = vadd.xlane.f32.xlu0 %v2795_v9 }
 0x5c1   :  { %v6201_v50 = vpop.eup %4908 }
 0x5c2   :  { %v2819_v59 = vsel %vm159_vm0, %v6201_v50, 0.0  ;;  %v6210_v41 = vpop.eup %4910 }
 0x5c3   :  { %2823 = vadd.xlane.f32.xlu0 %v2822_v24  ;;  %v2807_v2 = vsel %vm159_vm0, %v6210_v41, 0.0  ;;  %v6214_v26 = vpop.eup %4912 }
 0x5c4   :  { %v2798_v39 = vsel %vm159_vm0, %v6214_v26, 0.0  ;;  %v6220_v32 = vpop.eup %4914 }
 0x5c5   :  { %v2792_v47 = vsel %vm159_vm0, %v6220_v32, 0.0  ;;  %v6224_v49 = vpop.eup %4916 }
 0x5c6   :  { %v2816_v6 = vsel %vm159_vm0, %v6224_v49, 0.0  ;;  %v6228_v0 = vpop.eup %4918 }
 0x5c7   :  { %2820 = vadd.xlane.f32.xlu0 %v2819_v59 }
 0x5da   :  { %2808 = vadd.xlane.f32.xlu1 %v2807_v2 }
 0x5dd   :  { %3335 = vrot.lane.b32.xlu0 %v6607_v48, %s4988_s15  ;;  %v2825_v48 = vsel %vm159_vm0, %v6228_v0, 0.0 }
 0x5de   :  { %2799 = vadd.xlane.f32.xlu1 %v2798_v39 }
 0x5e2   :  { %2793 = vadd.xlane.f32.xlu1 %v2792_v47 }
 0x5e6   :  { %2817 = vadd.xlane.f32.xlu1 %v2816_v6 }
 0x5ea   :  { %2826 = vadd.xlane.f32.xlu1 %v2825_v48 }
 0x5fb   :  { %3337 = vrot.lane.b32.xlu1 %v6602_v54, %s4988_s15 }
 0x606   :  { %v2740_v23 = vpop.xlane.xlu1 %2739 }
 0x60a   :  { %v2734_v21 = vpop.xlane.xlu1 %2733 }
 0x60b   :  { %v2743_v36 = vpop.xlane.xlu0 %2742 }
 0x60c   :  { %4920 = vrcp.f32 %v2743_v36 }
 0x60d   :  { %4922 = vrcp.f32 %v2734_v21 }
 0x60e   :  { %4924 = vrcp.f32 %v2740_v23 }
 0x60f   :  { %v2737_v9 = vpop.xlane.xlu0 %2736 }
 0x610   :  { %4926 = vrcp.f32 %v2737_v9 }
 0x616   :  { %v2764_v24 = vpop.xlane.xlu1 %2763  ;;  %v4921_v62 = vpop.eup %4920 }
 0x617   :  { %v4923_v59 = vpop.eup %4922  ;;  %v2863_v43 = vmul.f32 %v4921_v62, %v6080_v7 }
 0x618   :  { %v2767_v19 = vpop.xlane.xlu0 %2766  ;;  %v4925_v12 = vpop.eup %4924  ;;  %v2860_v51 = vmul.f32 %v4923_v59, %v6076_v40 }
 0x619   :  { %4928 = vrcp.f32 %v2767_v19  ;;  %v2862_v57 = vmul.f32 %v4925_v12, %v6072_v58 }
 0x61a   :  { %v4927_v56 = vpop.eup %4926  ;;  %v2758_v54 = vpop.xlane.xlu1 %2757 }
 0x61b   :  { %4930 = vrcp.f32 %v2758_v54  ;;  %v2861_v52 = vmul.f32 %v4927_v56, %v6087_v16  ;;  %v2893_v2 = vpack.c.bf16 %v2863_v43, %v2862_v57 }
 0x61c   :  { %4932 = vrcp.f32 %v2764_v24  ;;  %v2761_v25 = vpop.xlane.xlu0 %2760 }
 0x61d   :  { %4934 = vrcp.f32 %v2761_v25  ;;  %v2892_v30 = vpack.c.bf16 %v2861_v52, %v2860_v51 }
 0x61e   :  { %v2752_v33 = vpop.xlane.xlu1 %2751 }
 0x61f   :  { %4570 = vmatprep.mubr.msk.bf16.mxu1 %vm159_vm0, %v2892_v30 }
 0x620   :  { %4571 = vmatmul.mubr.msk.bf16.vlgmr.msra.gmra.mrb[52].mxu1 %vm159_vm0, %v2893_v2 }
 0x621   :  { %4583 = vmatpush3.bf16.msra.mxu1 %v5839_v3 }
 0x622   :  { %4584 = vmatprep.subr.bf16.mxu1 %v6056_v53  ;;  %v2746_v7 = vpop.xlane.xlu1 %2745 }
 0x623   :  { %v4929_v40 = vpop.eup %4928 }
 0x624   :  { %v2755_v39 = vpop.xlane.xlu0 %2754  ;;  %v2871_v48 = vmul.f32 %v4929_v40, %v6099_v20 }
 0x625   :  { %v4931_v16 = vpop.eup %4930  ;;  %4585 = vmatpush3.bf16.msra.mxu1 %v6056_v53  ;;  %4936 = vrcp.f32 %v2755_v39 }
 0x626   :  { %v4933_v58 = vpop.eup %4932  ;;  %4598 = vmatprep.subr.bf16.mxu1 %v6058_v63  ;;  %v2788_v47 = vpop.xlane.xlu1 %2787  ;;  %4938 = vrcp.f32 %v2746_v7  ;;  %v2868_v3 = vmul.f32 %v4931_v16, %v6104_v44 }
 0x627   :  { %v4935_v6 = vpop.eup %4934  ;;  %4940 = vrcp.f32 %v2752_v33  ;;  %v2870_v36 = vmul.f32 %v4933_v58, %v6094_v1 }
 0x628   :  { %v2749_v23 = vpop.xlane.xlu0 %2748  ;;  %v2869_v21 = vmul.f32 %v4935_v6, %v6109_v42 }
 0x629   :  { %4942 = vrcp.f32 %v2749_v23  ;;  %v2897_v24 = vpack.c.bf16 %v2871_v48, %v2870_v36 }
 0x62a   :  { %v2782_v9 = vpop.xlane.xlu1 %2781  ;;  %v2896_v53 = vpack.c.bf16 %v2869_v21, %v2868_v3 }
 0x62c   :  { %4586 = vmatprep.mubr.msk.bf16.mxu1 %vm159_vm0, %v2896_v53  ;;  %v2791_v62 = vpop.xlane.xlu0 %2790 }
 0x62d   :  { %4587 = vmatmul.mubr.msk.bf16.vlgmr.msra.gmra.mrb[56].mxu1 %vm159_vm0, %v2897_v24  ;;  %4944 = vrcp.f32 %v2791_v62 }
 0x62e   :  { %4599 = vmatpush3.bf16.msra.mxu1 %v6058_v63  ;;  %v2776_v20 = vpop.xlane.xlu1 %2775  ;;  %4946 = vrcp.f32 %v2782_v9 }
 0x62f   :  { %4600 = vmatprep.subr.bf16.mxu1 %v6066_v13  ;;  %v4937_v44 = vpop.eup %4936  ;;  %4948 = vrcp.f32 %v2788_v47 }
 0x630   :  { %v2785_v42 = vpop.xlane.xlu0 %2784  ;;  %v4939_v1 = vpop.eup %4938  ;;  %v2867_v12 = vmul.f32 %v4937_v44, %v6125_v37 }
 0x631   :  { %4950 = vrcp.f32 %v2785_v42  ;;  %v4941_v59 = vpop.eup %4940  ;;  %v2864_v63 = vmul.f32 %v4939_v1, %v6119_v38 }
 0x632   :  { %4601 = vmatpush3.bf16.msra.mxu1 %v6066_v13  ;;  %v2770_v56 = vpop.xlane.xlu1 %2769  ;;  %v2866_v51 = vmul.f32 %v4941_v59, %v6114_v31 }
 0x633   :  { %v4943_v19 = vpop.eup %4942  ;;  %4614 = vmatprep.subr.bf16.mxu1 %v6234_v8 }
 0x634   :  { %v2779_v43 = vpop.xlane.xlu0 %2778  ;;  %v2865_v54 = vmul.f32 %v4943_v19, %v6135_v28  ;;  %v2895_v57 = vpack.c.bf16 %v2867_v12, %v2866_v51 }
 0x635   :  { %4952 = vrcp.f32 %v2779_v43 }
 0x636   :  { %v2894_v52 = vpack.c.bf16 %v2865_v54, %v2864_v63  ;;  %4954 = vrcp.f32 %v2770_v56  ;;  %v3277_v47 = vpop.permute.xlu1 %3276 }
 0x637   :  { %v4945_v25 = vpop.eup %4944  ;;  %4956 = vrcp.f32 %v2776_v20 }
 0x638   :  { %4578 = vmatprep.mubr.msk.bf16.mxu0 %vm159_vm0, %v2894_v52  ;;  %v2773_v13 = vpop.xlane.xlu0 %2772  ;;  %v4947_v37 = vpop.eup %4946  ;;  %v2879_v28 = vmul.f32 %v4945_v25, %v6145_v34 }
 0x639   :  { %4958 = vrcp.f32 %v2773_v13  ;;  %4579 = vmatmul.mubr.msk.bf16.vlgmr.msra.gmra.mrb[76].mxu0 %vm159_vm0, %v2895_v57  ;;  %v4949_v30 = vpop.eup %4948  ;;  %v2876_v33 = vmul.f32 %v4947_v37, %v6140_v11 }
 0x63a   :  { %4591 = vmatpush3.bf16.msra.mxu0 %v5845_v17  ;;  %v2878_v7 = vmul.f32 %v4949_v30, %v6130_v27 }
 0x63b   :  { %v4951_v38 = vpop.eup %4950  ;;  %4592 = vmatprep.subr.bf16.mxu0 %v6062_v4 }
 0x63c   :  { %v2812_v31 = vpop.xlane.xlu0 %2811  ;;  %v2877_v2 = vmul.f32 %v4951_v38, %v6154_v55  ;;  %v2901_v39 = vpack.c.bf16 %v2879_v28, %v2878_v7 }
 0x63e   :  { %4593 = vmatpush3.bf16.msra.mxu0 %v6062_v4  ;;  %v2900_v40 = vpack.c.bf16 %v2877_v2, %v2876_v33 }
 0x63f   :  { %4606 = vmatprep.subr.bf16.mxu0 %v6060_v45  ;;  %v4953_v16 = vpop.eup %4952 }
 0x640   :  { %4602 = vmatprep.mubr.msk.bf16.mxu1 %vm159_vm0, %v2900_v40  ;;  %v2806_v17 = vpop.xlane.xlu0 %2805  ;;  %v4955_v34 = vpop.eup %4954  ;;  %v2875_v27 = vmul.f32 %v4953_v16, %v6163_v35 }
 0x641   :  { %4603 = vmatmul.mubr.msk.bf16.vlgmr.msra.gmra.mrb[60].mxu1 %vm159_vm0, %v2901_v39  ;;  %v4957_v58 = vpop.eup %4956  ;;  %v2872_v55 = vmul.f32 %v4955_v34, %v6159_v61 }
 0x642   :  { %4615 = vmatpush3.bf16.msra.mxu1 %v6234_v8  ;;  %v2874_v48 = vmul.f32 %v4957_v58, %v6150_v10 }
 0x643   :  { %v4959_v11 = vpop.eup %4958  ;;  %4616 = vmatprep.subr.bf16.mxu1 %v3277_v47 }
 0x644   :  { %v2815_v4 = vpop.xlane.xlu0 %2814  ;;  %v2873_v6 = vmul.f32 %v4959_v11, %v6168_v15  ;;  %v2899_v3 = vpack.c.bf16 %v2875_v27, %v2874_v48  ;;  %v4726_v27 = vld [vmem:[%s6579_s4] sm:$0xff]  }
 0x645   :  { %4960 = vrcp.f32 %v2815_v4 }
 0x646   :  { %4617 = vmatpush3.bf16.msra.mxu1 %v3277_v47  ;;  %v2898_v23 = vpack.c.bf16 %v2873_v6, %v2872_v55  ;;  %4962 = vrcp.f32 %v2806_v17  ;;  %v4727_v55 = vld [vmem:[%s6579_s4 + $0x8] sm:$0xff]  }
 0x647   :  { %4964 = vrcp.f32 %v2812_v31  ;;  %4666 = vmatprep.subr.bf16.mxu1 %v4726_v27 }
 0x648   :  { %4594 = vmatprep.mubr.msk.bf16.mxu0 %vm159_vm0, %v2898_v23  ;;  %v2803_v21 = vpop.xlane.xlu0 %2802 }
 0x649   :  { %4595 = vmatmul.mubr.msk.bf16.vlgmr.msra.gmra.mrb[80].mxu0 %vm159_vm0, %v2899_v3 }
 0x64a   :  { %4607 = vmatpush3.bf16.msra.mxu0 %v6060_v45 }
 0x64b   :  { %4608 = vmatprep.subr.bf16.mxu0 %v6064_v14 }
 0x64c   :  { %v2797_v35 = vpop.xlane.xlu0 %2796 }
 0x64e   :  { %4609 = vmatpush3.bf16.msra.mxu0 %v6064_v14 }
 0x64f   :  { %v4961_v9 = vpop.eup %4960 }
 0x650   :  { %v2824_v61 = vpop.xlane.xlu0 %2823  ;;  %v4963_v53 = vpop.eup %4962  ;;  %v2887_v14 = vmul.f32 %v4961_v9, %v6182_v18 }
 0x651   :  { %v4965_v24 = vpop.eup %4964  ;;  %v2884_v44 = vmul.f32 %v4963_v53, %v6178_v22 }
 0x652   :  { %v2886_v1 = vmul.f32 %v4965_v24, %v6172_v5 }
 0x654   :  { %v2821_v8 = vpop.xlane.xlu0 %2820  ;;  %v2905_v19 = vpack.c.bf16 %v2887_v14, %v2886_v1 }
 0x658   :  { %v3336_v15 = vpop.permute.xlu0 %3335 }
 0x659   :  { %4622 = vmatprep.subr.bf16.mxu0 %v3336_v15 }
 0x667   :  { %v2809_v10 = vpop.xlane.xlu1 %2808 }
 0x668   :  { %4966 = vrcp.f32 %v2809_v10 }
 0x66b   :  { %v2800_v36 = vpop.xlane.xlu1 %2799 }
 0x66c   :  { %4968 = vrcp.f32 %v2800_v36 }
 0x66d   :  { %4970 = vrcp.f32 %v2797_v35 }
 0x66e   :  { %4972 = vrcp.f32 %v2803_v21 }
 0x66f   :  { %v2794_v45 = vpop.xlane.xlu1 %2793 }
 0x670   :  { %4974 = vrcp.f32 %v2794_v45 }
 0x671   :  { %4976 = vrcp.f32 %v2821_v8 }
 0x672   :  { %v4967_v62 = vpop.eup %4966 }
 0x673   :  { %v2818_v20 = vpop.xlane.xlu1 %2817  ;;  %v2885_v42 = vmul.f32 %v4967_v62, %v6210_v41 }
 0x674   :  { %4978 = vrcp.f32 %v2818_v20 }
 0x675   :  { %v2904_v59 = vpack.c.bf16 %v2885_v42, %v2884_v44  ;;  %4980 = vrcp.f32 %v2824_v61 }
 0x676   :  { %v4969_v12 = vpop.eup %4968 }
 0x677   :  { %v2827_v56 = vpop.xlane.xlu1 %2826  ;;  %4618 = vmatprep.mubr.msk.bf16.mxu1 %vm159_vm0, %v2904_v59  ;;  %v4971_v43 = vpop.eup %4970  ;;  %v2882_v22 = vmul.f32 %v4969_v12, %v6214_v26 }
 0x678   :  { %4982 = vrcp.f32 %v2827_v56  ;;  %4619 = vmatmul.mubr.msk.bf16.vlgmr.msra.gmra.mrb[64].mxu1 %vm159_vm0, %v2905_v19  ;;  %v4973_v18 = vpop.eup %4972  ;;  %v2881_v5 = vmul.f32 %v4971_v43, %v6193_v60 }
 0x679   :  { %v2883_v51 = vmul.f32 %v4973_v18, %v6189_v29  ;;  %4668 = vmatpush3.bf16.msra.mxu1 %v4726_v27 }
 0x67a   :  { %v4975_v63 = vpop.eup %4974  ;;  %4667 = vmatprep.subr.bf16.mxu1 %v4727_v55 }
 0x67b   :  { %v2880_v41 = vmul.f32 %v4975_v63, %v6220_v32  ;;  %v4977_v54 = vpop.eup %4976  ;;  %v2903_v25 = vpack.c.bf16 %v2883_v51, %v2882_v22  ;;  %v3338_v26 = vpop.permute.xlu1 %3337 }
 0x67c   :  { %v2889_v37 = vmul.f32 %v4977_v54, %v6201_v50 }
 0x67d   :  { %v2902_v52 = vpack.c.bf16 %v2881_v5, %v2880_v41  ;;  %4669 = vmatpush3.bf16.msra.mxu1 %v4727_v55 }
 0x67e   :  { %v4979_v57 = vpop.eup %4978 }
 0x67f   :  { %4610 = vmatprep.mubr.msk.bf16.mxu0 %vm159_vm0, %v2902_v52  ;;  %v2888_v13 = vmul.f32 %v4979_v57, %v6224_v49  ;;  %v4981_v30 = vpop.eup %4980 }
 0x680   :  { %4611 = vmatmul.mubr.msk.bf16.vlgmr.msra.gmra.mrb[84].mxu0 %vm159_vm0, %v2903_v25  ;;  %v2890_v60 = vmul.f32 %v4981_v30, %v6197_v46 }
 0x681   :  { %4623 = vmatpush3.bf16.msra.mxu0 %v3336_v15  ;;  %v2906_v32 = vpack.c.bf16 %v2889_v37, %v2888_v13 }
 0x682   :  { %v4983_v38 = vpop.eup %4982  ;;  %4624 = vmatprep.subr.bf16.mxu0 %v3338_v26 }
 0x683   :  { %v2891_v29 = vmul.f32 %v4983_v38, %v6228_v0  ;;  %4626 = vmatprep.mubr.msk.bf16.mxu0 %vm159_vm0, %v2906_v32 }
 0x685   :  { %4625 = vmatpush3.bf16.msra.mxu0 %v3338_v26  ;;  %v2907_v28 = vpack.c.bf16 %v2891_v29, %v2890_v60 }
 0x686   :  { %4630 = vmatprep.subr.bf16.mxu0 %v4726_v27 }
 0x688   :  { %4627 = vmatmul.mubr.msk.bf16.vlgmr.msra.gmra.mrb[88].mxu0 %vm159_vm0, %v2907_v28 }
 0x689   :  { %4631 = vmatpush3.bf16.msra.mxu0 %v4726_v27 }
 0x68a   :  { %4632 = vmatprep.subr.bf16.mxu0 %v4727_v55 }
 0x68d   :  { %4633 = vmatpush3.bf16.msra.mxu0 %v4727_v55 }
 0x6f3   :  { %v4572_v49 = vpop.f32.mrb[52].mxu1 }
 0x6f4   :  { %v3398_v50 = vadd.f32 3.0, %v4572_v49  ;;  %v2954_v31 = vpop.f32.mrb[53].mxu1 }
 0x6f5   :  { %v3396_v33 = vadd.f32 3.0, %v2954_v31  ;;  %v4573_v2 = vpop.f32.mrb[54].mxu1 }
 0x6f6   :  { %v3430_v7 = vmax.f32 %v3398_v50, 0.0  ;;  %v3399_v40 = vadd.f32 3.0, %v4573_v2  ;;  %v2957_v39 = vpop.f32.mrb[55].mxu1 }
 0x6f7   :  { %v3428_v16 = vmax.f32 %v3396_v33, 0.0  ;;  %v3397_v17 = vadd.f32 3.0, %v2957_v39 }
 0x6f8   :  { %v3462_v34 = vmin.f32 %v3430_v7, 6.0  ;;  %v3431_v46 = vmax.f32 %v3399_v40, 0.0 }
 0x6f9   :  { %v3460_v58 = vmin.f32 %v3428_v16, 6.0  ;;  %v3429_v0 = vmax.f32 %v3397_v17, 0.0 }
 0x6fa   :  { %v3494_v47 = vmul.f32 %v4572_v49, %v3462_v34  ;;  %v3463_v11 = vmin.f32 %v3431_v46, 6.0 }
 0x6fb   :  { %v3461_v4 = vmin.f32 %v3429_v0, 6.0  ;;  %v3492_v48 = vmul.f32 %v3460_v58, %v2954_v31 }
 0x6fc   :  { %v3526_v6 = vmul.f32 0.16666667, %v3494_v47  ;;  %v3495_v23 = vmul.f32 %v4573_v2, %v3463_v11 }
 0x6fd   :  { %v3493_v21 = vmul.f32 %v3461_v4, %v2957_v39  ;;  %v3524_v35 = vmul.f32 0.16666667, %v3492_v48 }
 0x6fe   :  { %v3527_v3 = vmul.f32 0.16666667, %v3495_v23  ;;  %3592 = vrot.lane.b32.xlu0 %v3526_v6, %s4989_s23 }
 0x6ff   :  { %v3525_v15 = vmul.f32 0.16666667, %v3493_v21 }
 0x700   :  { %3594 = vrot.lane.b32.xlu1 %v3527_v3, %s4989_s23  ;;  %v6308_v61 = vpop.f32.mrb[56].mxu1 }
 0x701   :  { %v6310_v8 = vpop.f32.mrb[57].mxu1 }
 0x702   :  { %3588 = vrot.lane.b32.xlu0 %v3524_v35, %s4989_s23  ;;  %v6313_v10 = vpop.f32.mrb[58].mxu1 }
 0x703   :  { %v6315_v36 = vpop.f32.mrb[59].mxu1 }
 0x704   :  { %3590 = vrot.lane.b32.xlu1 %v3525_v15, %s4989_s23 }
 0x70c   :  { %v6318_v9 = vpop.f32.mrb[76].mxu0 }
 0x70d   :  { %v3015_v45 = vpop.f32.mrb[77].mxu0  ;;  %v3402_v38 = vadd.f32 3.0, %v6318_v9 }
 0x70e   :  { %v3400_v53 = vadd.f32 3.0, %v3015_v45  ;;  %v6320_v24 = vpop.f32.mrb[78].mxu0 }
 0x70f   :  { %v3018_v62 = vpop.f32.mrb[79].mxu0  ;;  %v3403_v2 = vadd.f32 3.0, %v6320_v24  ;;  %v3434_v47 = vmax.f32 %v3402_v38, 0.0 }
 0x710   :  { %v3432_v14 = vmax.f32 %v3400_v53, 0.0  ;;  %v3401_v20 = vadd.f32 3.0, %v3018_v62 }
 0x711   :  { %v3435_v48 = vmax.f32 %v3403_v2, 0.0  ;;  %v3466_v15 = vmin.f32 %v3434_v47, 6.0  ;;  %v3406_v47 = vadd.f32 3.0, %v6308_v61 }
 0x712   :  { %v3464_v44 = vmin.f32 %v3432_v14, 6.0  ;;  %v3433_v42 = vmax.f32 %v3401_v20, 0.0 }
 0x713   :  { %v3467_v14 = vmin.f32 %v3435_v48, 6.0 }
 0x714   :  { %v3496_v1 = vmul.f32 %v3464_v44, %v3015_v45  ;;  %v3465_v59 = vmin.f32 %v3433_v42, 6.0  ;;  %v4604_v19 = vpop.f32.mrb[60].mxu1  ;;  %v3498_v42 = vmul.f32 %v6318_v9, %v3466_v15 }
 0x715   :  { %v3414_v12 = vadd.f32 3.0, %v4604_v19  ;;  %v3198_v56 = vpop.f32.mrb[61].mxu1 }
 0x716   :  { %v3528_v43 = vmul.f32 0.16666667, %v3496_v1  ;;  %v3497_v18 = vmul.f32 %v3465_v59, %v3018_v62  ;;  %v3412_v63 = vadd.f32 3.0, %v3198_v56  ;;  %v4605_v22 = vpop.f32.mrb[62].mxu1  ;;  %v3499_v59 = vmul.f32 %v6320_v24, %v3467_v14 }
 0x717   :  { %v3446_v41 = vmax.f32 %v3414_v12, 0.0  ;;  %v3415_v5 = vadd.f32 3.0, %v4605_v22  ;;  %v3201_v54 = vpop.f32.mrb[63].mxu1  ;;  %v3530_v12 = vmul.f32 0.16666667, %v3498_v42 }
 0x718   :  { %v3529_v51 = vmul.f32 0.16666667, %v3497_v18  ;;  %v3444_v52 = vmax.f32 %v3412_v63, 0.0  ;;  %v3413_v57 = vadd.f32 3.0, %v3201_v54  ;;  %3596 = vrot.lane.b32.xlu0 %v3528_v43, %s4989_s23 }
 0x719   :  { %v3478_v25 = vmin.f32 %v3446_v41, 6.0  ;;  %v3447_v13 = vmax.f32 %v3415_v5, 0.0 }
 0x71a   :  { %v3476_v37 = vmin.f32 %v3444_v52, 6.0  ;;  %v3445_v30 = vmax.f32 %v3413_v57, 0.0  ;;  %3598 = vrot.lane.b32.xlu1 %v3529_v51, %s4989_s23 }
 0x71b   :  { %v3510_v26 = vmul.f32 %v4604_v19, %v3478_v25  ;;  %v3479_v32 = vmin.f32 %v3447_v13, 6.0 }
 0x71c   :  { %v3477_v60 = vmin.f32 %v3445_v30, 6.0  ;;  %v4596_v29 = vpop.f32.mrb[80].mxu0  ;;  %v3508_v49 = vmul.f32 %v3476_v37, %v3198_v56  ;;  %v3531_v56 = vmul.f32 0.16666667, %v3499_v59 }
 0x71d   :  { %v3542_v28 = vmul.f32 0.16666667, %v3510_v26  ;;  %v3511_v50 = vmul.f32 %v4605_v22, %v3479_v32  ;;  %v3410_v31 = vadd.f32 3.0, %v4596_v29  ;;  %v3137_v33 = vpop.f32.mrb[81].mxu0 }
 0x71e   :  { %v3408_v7 = vadd.f32 3.0, %v3137_v33  ;;  %v4597_v40 = vpop.f32.mrb[82].mxu0  ;;  %v3509_v16 = vmul.f32 %v3477_v60, %v3201_v54  ;;  %v3540_v11 = vmul.f32 0.16666667, %v3508_v49 }
 0x71f   :  { %v3543_v39 = vmul.f32 0.16666667, %v3511_v50  ;;  %v3442_v17 = vmax.f32 %v3410_v31, 0.0  ;;  %v3411_v34 = vadd.f32 3.0, %v4597_v40  ;;  %3624 = vrot.lane.b32.xlu0 %v3542_v28, %s4989_s23  ;;  %v3140_v46 = vpop.f32.mrb[83].mxu0  ;;  %v3404_v50 = vadd.f32 3.0, %v6310_v8 }
 0x720   :  { %v3440_v58 = vmax.f32 %v3408_v7, 0.0  ;;  %v3409_v0 = vadd.f32 3.0, %v3140_v46  ;;  %v3541_v23 = vmul.f32 0.16666667, %v3509_v16 }
 0x721   :  { %v3474_v27 = vmin.f32 %v3442_v17, 6.0  ;;  %v3443_v4 = vmax.f32 %v3411_v34, 0.0  ;;  %3626 = vrot.lane.b32.xlu1 %v3543_v39, %s4989_s23  ;;  %v3405_v34 = vadd.f32 3.0, %v6315_v36 }
 0x722   :  { %v3472_v55 = vmin.f32 %v3440_v58, 6.0  ;;  %v3441_v6 = vmax.f32 %v3409_v0, 0.0 }
 0x723   :  { %v3506_v3 = vmul.f32 %v4596_v29, %v3474_v27  ;;  %v3475_v21 = vmin.f32 %v3443_v4, 6.0  ;;  %3620 = vrot.lane.b32.xlu0 %v3540_v11, %s4989_s23  ;;  %v3436_v11 = vmax.f32 %v3404_v50, 0.0  ;;  %v3437_v15 = vmax.f32 %v3405_v34, 0.0 }
 0x724   :  { %v3473_v35 = vmin.f32 %v3441_v6, 6.0  ;;  %v3504_v53 = vmul.f32 %v3472_v55, %v3137_v33 }
 0x725   :  { %v3538_v45 = vmul.f32 0.16666667, %v3506_v3  ;;  %v3507_v62 = vmul.f32 %v4597_v40, %v3475_v21  ;;  %3622 = vrot.lane.b32.xlu1 %v3541_v23, %s4989_s23  ;;  %v3407_v21 = vadd.f32 3.0, %v6313_v10 }
 0x726   :  { %v3505_v44 = vmul.f32 %v3473_v35, %v3140_v46  ;;  %v3536_v1 = vmul.f32 0.16666667, %v3504_v53 }
 0x727   :  { %v3539_v20 = vmul.f32 0.16666667, %v3507_v62  ;;  %3616 = vrot.lane.b32.xlu0 %v3538_v45, %s4989_s23 }
 0x728   :  { %v3537_v19 = vmul.f32 0.16666667, %v3505_v44  ;;  %v3468_v44 = vmin.f32 %v3436_v11, 6.0 }
 0x729   :  { %3618 = vrot.lane.b32.xlu1 %v3539_v20, %s4989_s23  ;;  %v3438_v20 = vmax.f32 %v3406_v47, 0.0 }
 0x72b   :  { %3612 = vrot.lane.b32.xlu0 %v3536_v1, %s4989_s23 }
 0x72d   :  { %3614 = vrot.lane.b32.xlu1 %v3537_v19, %s4989_s23  ;;  %v3439_v19 = vmax.f32 %v3407_v21, 0.0 }
 0x72f   :  { %3600 = vrot.lane.b32.xlu0 %v3530_v12, %s4989_s23  ;;  %v3469_v12 = vmin.f32 %v3437_v15, 6.0 }
 0x731   :  { %3602 = vrot.lane.b32.xlu1 %v3531_v56, %s4989_s23 }
 0x74b   :  { %v4620_v43 = vpop.f32.mrb[64].mxu1 }
 0x74c   :  { %v3320_v18 = vpop.f32.mrb[65].mxu1  ;;  %v3422_v25 = vadd.f32 3.0, %v4620_v43 }
 0x74d   :  { %v3420_v63 = vadd.f32 3.0, %v3320_v18  ;;  %v4621_v9 = vpop.f32.mrb[66].mxu1 }
 0x74e   :  { %v3323_v22 = vpop.f32.mrb[67].mxu1  ;;  %v3423_v60 = vadd.f32 3.0, %v4621_v9  ;;  %v3454_v7 = vmax.f32 %v3422_v25, 0.0 }
 0x74f   :  { %v3452_v41 = vmax.f32 %v3420_v63, 0.0  ;;  %v3421_v5 = vadd.f32 3.0, %v3323_v22 }
 0x750   :  { %v3455_v46 = vmax.f32 %v3423_v60, 0.0  ;;  %v3486_v55 = vmin.f32 %v3454_v7, 6.0 }
 0x751   :  { %v3484_v54 = vmin.f32 %v3452_v41, 6.0  ;;  %v3453_v24 = vmax.f32 %v3421_v5, 0.0  ;;  %v3500_v41 = vmul.f32 %v3468_v44, %v6310_v8 }
 0x752   :  { %v3487_v45 = vmin.f32 %v3455_v46, 6.0  ;;  %v3518_v42 = vmul.f32 %v4620_v43, %v3486_v55  ;;  %v3471_v43 = vmin.f32 %v3439_v19, 6.0 }
 0x753   :  { %v3516_v51 = vmul.f32 %v3484_v54, %v3320_v18  ;;  %v3485_v52 = vmin.f32 %v3453_v24, 6.0  ;;  %v4612_v57 = vpop.f32.mrb[84].mxu0 }
 0x754   :  { %v3418_v13 = vadd.f32 3.0, %v4612_v57  ;;  %v3259_v37 = vpop.f32.mrb[85].mxu0  ;;  %v3519_v56 = vmul.f32 %v4621_v9, %v3487_v45  ;;  %v3550_v5 = vmul.f32 0.16666667, %v3518_v42  ;;  %v3503_v8 = vmul.f32 %v6313_v10, %v3471_v43 }
 0x755   :  { %v3548_v30 = vmul.f32 0.16666667, %v3516_v51  ;;  %v3517_v26 = vmul.f32 %v3485_v52, %v3323_v22  ;;  %v3416_v32 = vadd.f32 3.0, %v3259_v37  ;;  %v4613_v38 = vpop.f32.mrb[86].mxu0  ;;  %v3470_v22 = vmin.f32 %v3438_v20, 6.0 }
 0x756   :  { %v3450_v29 = vmax.f32 %v3418_v13, 0.0  ;;  %v3419_v28 = vadd.f32 3.0, %v4613_v38  ;;  %v3262_v49 = vpop.f32.mrb[87].mxu0  ;;  %v3501_v51 = vmul.f32 %v3469_v12, %v6315_v36  ;;  %v3551_v52 = vmul.f32 0.16666667, %v3519_v56 }
 0x757   :  { %v3549_v31 = vmul.f32 0.16666667, %v3517_v26  ;;  %v3448_v33 = vmax.f32 %v3416_v32, 0.0  ;;  %v3417_v2 = vadd.f32 3.0, %v3262_v49  ;;  %3636 = vrot.lane.b32.xlu0 %v3548_v30, %s4989_s23  ;;  %v3502_v9 = vmul.f32 %v6308_v61, %v3470_v22 }
 0x758   :  { %v3482_v40 = vmin.f32 %v3450_v29, 6.0  ;;  %v3451_v39 = vmax.f32 %v3419_v28, 0.0  ;;  %v3532_v13 = vmul.f32 0.16666667, %v3500_v41  ;;  %v3533_v26 = vmul.f32 0.16666667, %v3501_v51 }
 0x759   :  { %v3480_v16 = vmin.f32 %v3448_v33, 6.0  ;;  %v3449_v17 = vmax.f32 %v3417_v2, 0.0  ;;  %3638 = vrot.lane.b32.xlu1 %v3549_v31, %s4989_s23  ;;  %v3534_v36 = vmul.f32 0.16666667, %v3502_v9  ;;  %v3535_v28 = vmul.f32 0.16666667, %v3503_v8 }
 0x75a   :  { %v3514_v58 = vmul.f32 %v4612_v57, %v3482_v40  ;;  %v3483_v0 = vmin.f32 %v3451_v39, 6.0 }
 0x75b   :  { %v3481_v27 = vmin.f32 %v3449_v17, 6.0  ;;  %v4628_v4 = vpop.f32.mrb[88].mxu0  ;;  %v3512_v48 = vmul.f32 %v3480_v16, %v3259_v37 }
 0x75c   :  { %v3546_v6 = vmul.f32 0.16666667, %v3514_v58  ;;  %v3515_v23 = vmul.f32 %v4613_v38, %v3483_v0  ;;  %v3381_v3 = vpop.f32.mrb[89].mxu0  ;;  %v3426_v54 = vadd.f32 3.0, %v4628_v4 }
 0x75d   :  { %v4629_v35 = vpop.f32.mrb[90].mxu0  ;;  %v3513_v62 = vmul.f32 %v3481_v27, %v3262_v49  ;;  %v3544_v1 = vmul.f32 0.16666667, %v3512_v48  ;;  %v3424_v59 = vadd.f32 3.0, %v3381_v3 }
 0x75e   :  { %v3547_v53 = vmul.f32 0.16666667, %v3515_v23  ;;  %3632 = vrot.lane.b32.xlu0 %v3546_v6, %s4989_s23  ;;  %v3384_v14 = vpop.f32.mrb[91].mxu0  ;;  %v3427_v57 = vadd.f32 3.0, %v4629_v35  ;;  %v3458_v37 = vmax.f32 %v3426_v54, 0.0 }
 0x75f   :  { %v3545_v18 = vmul.f32 0.16666667, %v3513_v62  ;;  %v3425_v63 = vadd.f32 3.0, %v3384_v14  ;;  %v3456_v24 = vmax.f32 %v3424_v59, 0.0 }
 0x760   :  { %3634 = vrot.lane.b32.xlu1 %v3547_v53, %s4989_s23  ;;  %v3459_v32 = vmax.f32 %v3427_v57, 0.0  ;;  %v3490_v60 = vmin.f32 %v3458_v37, 6.0 }
 0x761   :  { %v3457_v25 = vmax.f32 %v3425_v63, 0.0  ;;  %v3488_v30 = vmin.f32 %v3456_v24, 6.0 }
 0x762   :  { %3628 = vrot.lane.b32.xlu0 %v3544_v1, %s4989_s23  ;;  %v3491_v49 = vmin.f32 %v3459_v32, 6.0  ;;  %v3522_v50 = vmul.f32 %v4628_v4, %v3490_v60 }
 0x763   :  { %v3489_v38 = vmin.f32 %v3457_v25, 6.0  ;;  %v3520_v29 = vmul.f32 %v3488_v30, %v3381_v3 }
 0x764   :  { %3630 = vrot.lane.b32.xlu1 %v3545_v18, %s4989_s23  ;;  %v3523_v33 = vmul.f32 %v4629_v35, %v3491_v49  ;;  %v3554_v40 = vmul.f32 0.16666667, %v3522_v50 }
 0x765   :  { %v3521_v61 = vmul.f32 %v3489_v38, %v3384_v14  ;;  %v3552_v31 = vmul.f32 0.16666667, %v3520_v29 }
 0x766   :  { %3640 = vrot.lane.b32.xlu0 %v3550_v5, %s4989_s23  ;;  %v3555_v16 = vmul.f32 0.16666667, %v3523_v33 }
 0x767   :  { %v3553_v2 = vmul.f32 0.16666667, %v3521_v61 }
 0x768   :  { %3642 = vrot.lane.b32.xlu1 %v3551_v52, %s4989_s23 }
 0x76a   :  { %3604 = vrot.lane.b32.xlu0 %v3532_v13, %s4989_s23 }
 0x76c   :  { %3606 = vrot.lane.b32.xlu1 %v3533_v26, %s4989_s23 }
 0x76e   :  { %3608 = vrot.lane.b32.xlu0 %v3534_v36, %s4989_s23 }
 0x770   :  { %3610 = vrot.lane.b32.xlu1 %v3535_v28, %s4989_s23  ;;  %v3593_v10 = vpop.permute.xlu0 %3592 }
 0x771   :  { %3687 = vst.msk [vmem:[#allocation2 + $0x10] sm:$0xff] %vm3684_vm3, %v3593_v10 }
 0x772   :  { %v3595_v7 = vpop.permute.xlu1 %3594  ;;  %3644 = vrot.lane.b32.xlu0 %v3552_v31, %s4989_s23 }
 0x773   :  { %3688 = vst.msk [vmem:[#allocation2 + $0x18] sm:$0xff] %vm3684_vm3, %v3595_v7 }
 0x774   :  { %3646 = vrot.lane.b32.xlu1 %v3553_v2, %s4989_s23  ;;  %v3589_v39 = vpop.permute.xlu0 %3588 }
 0x775   :  { %3685 = vst.msk [vmem:[#allocation2] sm:$0xff] %vm3684_vm3, %v3589_v39 }
 0x776   :  { %v3591_v17 = vpop.permute.xlu1 %3590  ;;  %3648 = vrot.lane.b32.xlu0 %v3554_v40, %s4989_s23 }
 0x777   :  { %3686 = vst.msk [vmem:[#allocation2 + $0x8] sm:$0xff] %vm3684_vm3, %v3591_v17 }
 0x778   :  { %3650 = vrot.lane.b32.xlu1 %v3555_v16, %s4989_s23  ;;  %v3719_v47 = vld [vmem:[#allocation2 + $0x10] sm:$0xff] }
 0x77a   :  { %v3720_v34 = vld [vmem:[#allocation2 + $0x18] sm:$0xff] }
 0x77b   :  { %v3750_v11 = vpack.c.bf16 %v3720_v34, %v3719_v47 }
 0x77c   :  { %v3717_v46 = vld [vmem:[#allocation2] sm:$0xff] }
 0x77e   :  { %v3718_v58 = vld [vmem:[#allocation2 + $0x8] sm:$0xff] }
 0x77f   :  { %v3749_v0 = vpack.c.bf16 %v3718_v58, %v3717_v46 }
 0x781   :  { %4634 = vmatprep.mubr.msk.bf16.mxu0 %vm159_vm0, %v3749_v0 }
 0x782   :  { %4635 = vmatmul.mubr.msk.bf16.vlgmr.msra.gmra.mrb[92].mxu0 %vm159_vm0, %v3750_v11 }
 0x78a   :  { %v3597_v27 = vpop.permute.xlu0 %3596 }
 0x78b   :  { %3689 = vst.msk [vmem:[#allocation2 + $0x20] sm:$0xff] %vm3684_vm3, %v3597_v27 }
 0x78c   :  { %v3599_v4 = vpop.permute.xlu1 %3598 }
 0x78d   :  { %3690 = vst.msk [vmem:[#allocation2 + $0x28] sm:$0xff] %vm3684_vm3, %v3599_v4 }
 0x791   :  { %v3625_v55 = vpop.permute.xlu0 %3624 }
 0x792   :  { %3703 = vst.msk [vmem:[#allocation2 + $0x90] sm:$0xff] %vm3684_vm3, %v3625_v55  ;;  %v3721_v48 = vld [vmem:[#allocation2 + $0x20] sm:$0xff] }
 0x793   :  { %v3627_v6 = vpop.permute.xlu1 %3626 }
 0x794   :  { %3704 = vst.msk [vmem:[#allocation2 + $0x98] sm:$0xff] %vm3684_vm3, %v3627_v6  ;;  %v3722_v23 = vld [vmem:[#allocation2 + $0x28] sm:$0xff] }
 0x795   :  { %v3621_v3 = vpop.permute.xlu0 %3620  ;;  %v3751_v21 = vpack.c.bf16 %v3722_v23, %v3721_v48 }
 0x796   :  { %3701 = vst.msk [vmem:[#allocation2 + $0x80] sm:$0xff] %vm3684_vm3, %v3621_v3  ;;  %v6413_v3 = vld [vmem:[%s6580_s5] ss:$0 sm:$0xff] }
 0x797   :  { %v3623_v35 = vpop.permute.xlu1 %3622  ;;  %4638 = vmatprep.mubr.msk.bf16.mxu0 %vm159_vm0, %v3751_v21 }
 0x798   :  { %3702 = vst.msk [vmem:[#allocation2 + $0x88] sm:$0xff] %vm3684_vm3, %v3623_v35 }
 0x799   :  { %v3617_v15 = vpop.permute.xlu0 %3616  ;;  %v3735_v24 = vld [vmem:[#allocation2 + $0x90] sm:$0xff] }
 0x79a   :  { %3699 = vst.msk [vmem:[#allocation2 + $0x70] sm:$0xff] %vm3684_vm3, %v3617_v15 }
 0x79b   :  { %v3619_v45 = vpop.permute.xlu1 %3618  ;;  %v3736_v54 = vld [vmem:[#allocation2 + $0x98] sm:$0xff] }
 0x79c   :  { %3700 = vst.msk [vmem:[#allocation2 + $0x78] sm:$0xff] %vm3684_vm3, %v3619_v45  ;;  %v3758_v43 = vpack.c.bf16 %v3736_v54, %v3735_v24 }
 0x79d   :  { %v3613_v53 = vpop.permute.xlu0 %3612  ;;  %v3733_v18 = vld [vmem:[#allocation2 + $0x80] sm:$0xff] }
 0x79e   :  { %3697 = vst.msk [vmem:[#allocation2 + $0x60] sm:$0xff] %vm3684_vm3, %v3613_v53 }
 0x79f   :  { %v3615_v62 = vpop.permute.xlu1 %3614  ;;  %v3734_v59 = vld [vmem:[#allocation2 + $0x88] sm:$0xff] }
 0x7a0   :  { %3698 = vst.msk [vmem:[#allocation2 + $0x68] sm:$0xff] %vm3684_vm3, %v3615_v62  ;;  %v3757_v63 = vpack.c.bf16 %v3734_v59, %v3733_v18 }
 0x7a1   :  { %v3601_v14 = vpop.permute.xlu0 %3600  ;;  %v3731_v12 = vld [vmem:[#allocation2 + $0x70] sm:$0xff] }
 0x7a2   :  { %3691 = vst.msk [vmem:[#allocation2 + $0x30] sm:$0xff] %vm3684_vm3, %v3601_v14 }
 0x7a3   :  { %v3603_v20 = vpop.permute.xlu1 %3602  ;;  %v3732_v44 = vld [vmem:[#allocation2 + $0x78] sm:$0xff] }
 0x7a4   :  { %3692 = vst.msk [vmem:[#allocation2 + $0x38] sm:$0xff] %vm3684_vm3, %v3603_v20  ;;  %v3756_v56 = vpack.c.bf16 %v3732_v44, %v3731_v12 }
 0x7a5   :  { %v3729_v42 = vld [vmem:[#allocation2 + $0x60] sm:$0xff] }
 0x7a7   :  { %v3730_v1 = vld [vmem:[#allocation2 + $0x68] sm:$0xff] }
 0x7a8   :  { %v3755_v19 = vpack.c.bf16 %v3730_v1, %v3729_v42 }
 0x7a9   :  { %v3723_v22 = vld [vmem:[#allocation2 + $0x30] sm:$0xff] }
 0x7aa   :  { %4646 = vmatprep.mubr.msk.bf16.mxu1 %vm159_vm0, %v3755_v19 }
 0x7ab   :  { %4647 = vmatmul.mubr.msk.bf16.vlgmr.msra.gmra.mrb[68].mxu1 %vm159_vm0, %v3756_v56  ;;  %v3724_v41 = vld [vmem:[#allocation2 + $0x38] sm:$0xff] }
 0x7ac   :  { %4650 = vmatprep.mubr.msk.bf16.mxu1 %vm159_vm0, %v3757_v63  ;;  %v3752_v5 = vpack.c.bf16 %v3724_v41, %v3723_v22 }
 0x7ae   :  { %4639 = vmatmul.mubr.msk.bf16.gmra.mrb[96].mxu0 %vm159_vm0, %v3752_v5 }
 0x7b3   :  { %4651 = vmatmul.mubr.msk.bf16.gmra.mrb[72].mxu1 %vm159_vm0, %v3758_v43 }
 0x7c9   :  { %v3637_v51 = vpop.permute.xlu0 %3636 }
 0x7ca   :  { %3709 = vst.msk [vmem:[#allocation2 + $0xc0] sm:$0xff] %vm3684_vm3, %v3637_v51 }
 0x7cb   :  { %v3639_v52 = vpop.permute.xlu1 %3638 }
 0x7cc   :  { %3710 = vst.msk [vmem:[#allocation2 + $0xc8] sm:$0xff] %vm3684_vm3, %v3639_v52 }
 0x7d0   :  { %v3633_v57 = vpop.permute.xlu0 %3632 }
 0x7d1   :  { %3707 = vst.msk [vmem:[#allocation2 + $0xb0] sm:$0xff] %vm3684_vm3, %v3633_v57  ;;  %v3741_v50 = vld [vmem:[#allocation2 + $0xc0] sm:$0xff] }
 0x7d2   :  { %v3635_v25 = vpop.permute.xlu1 %3634 }
 0x7d3   :  { %3708 = vst.msk [vmem:[#allocation2 + $0xb8] sm:$0xff] %vm3684_vm3, %v3635_v25  ;;  %v3742_v60 = vld [vmem:[#allocation2 + $0xc8] sm:$0xff] }
 0x7d4   :  { %v3629_v9 = vpop.permute.xlu0 %3628  ;;  %v3761_v31 = vpack.c.bf16 %v3742_v60, %v3741_v50 }
 0x7d5   :  { %3705 = vst.msk [vmem:[#allocation2 + $0xa0] sm:$0xff] %vm3684_vm3, %v3629_v9 }
 0x7d6   :  { %v3631_v13 = vpop.permute.xlu1 %3630 }
 0x7d7   :  { %3706 = vst.msk [vmem:[#allocation2 + $0xa8] sm:$0xff] %vm3684_vm3, %v3631_v13 }
 0x7d8   :  { %v3641_v37 = vpop.permute.xlu0 %3640  ;;  %v3739_v28 = vld [vmem:[#allocation2 + $0xb0] sm:$0xff] }
 0x7d9   :  { %3711 = vst.msk [vmem:[#allocation2 + $0xd0] sm:$0xff] %vm3684_vm3, %v3641_v37 }
 0x7da   :  { %v3643_v30 = vpop.permute.xlu1 %3642  ;;  %v3740_v26 = vld [vmem:[#allocation2 + $0xb8] sm:$0xff] }
 0x7db   :  { %3712 = vst.msk [vmem:[#allocation2 + $0xd8] sm:$0xff] %vm3684_vm3, %v3643_v30  ;;  %v3760_v61 = vpack.c.bf16 %v3740_v26, %v3739_v28 }
 0x7dc   :  { %v3605_v8 = vpop.permute.xlu0 %3604  ;;  %v3737_v38 = vld [vmem:[#allocation2 + $0xa0] sm:$0xff] }
 0x7dd   :  { %3693 = vst.msk [vmem:[#allocation2 + $0x40] sm:$0xff] %vm3684_vm3, %v3605_v8 }
 0x7de   :  { %v3607_v32 = vpop.permute.xlu1 %3606  ;;  %v3738_v36 = vld [vmem:[#allocation2 + $0xa8] sm:$0xff] }
 0x7df   :  { %3694 = vst.msk [vmem:[#allocation2 + $0x48] sm:$0xff] %vm3684_vm3, %v3607_v32  ;;  %v3759_v29 = vpack.c.bf16 %v3738_v36, %v3737_v38 }
 0x7e0   :  { %v3609_v49 = vpop.permute.xlu0 %3608  ;;  %v3743_v17 = vld [vmem:[#allocation2 + $0xd0] sm:$0xff] }
 0x7e1   :  { %3695 = vst.msk [vmem:[#allocation2 + $0x50] sm:$0xff] %vm3684_vm3, %v3609_v49  ;;  %4654 = vmatprep.mubr.msk.bf16.mxu1 %vm159_vm0, %v3759_v29 }
 0x7e2   :  { %v3611_v10 = vpop.permute.xlu1 %3610  ;;  %4655 = vmatmul.mubr.msk.bf16.gmra.mrb[76].mxu1 %vm159_vm0, %v3760_v61  ;;  %v3744_v2 = vld [vmem:[#allocation2 + $0xd8] sm:$0xff] }
 0x7e3   :  { %3696 = vst.msk [vmem:[#allocation2 + $0x58] sm:$0xff] %vm3684_vm3, %v3611_v10  ;;  %4658 = vmatprep.mubr.msk.bf16.mxu1 %vm159_vm0, %v3761_v31  ;;  %v3762_v46 = vpack.c.bf16 %v3744_v2, %v3743_v17 }
 0x7e4   :  { %v3645_v33 = vpop.permute.xlu0 %3644  ;;  %v3725_v40 = vld [vmem:[#allocation2 + $0x40] sm:$0xff] }
 0x7e5   :  { %3713 = vst.msk [vmem:[#allocation2 + $0xe0] sm:$0xff] %vm3684_vm3, %v3645_v33 }
 0x7e6   :  { %v3647_v7 = vpop.permute.xlu1 %3646  ;;  %v3726_v39 = vld [vmem:[#allocation2 + $0x48] sm:$0xff] }
 0x7e7   :  { %3714 = vst.msk [vmem:[#allocation2 + $0xe8] sm:$0xff] %vm3684_vm3, %v3647_v7  ;;  %v3753_v16 = vpack.c.bf16 %v3726_v39, %v3725_v40 }
 0x7e8   :  { %v3649_v34 = vpop.permute.xlu0 %3648  ;;  %v3727_v0 = vld [vmem:[#allocation2 + $0x50] sm:$0xff] }
 0x7e9   :  { %3715 = vst.msk [vmem:[#allocation2 + $0xf0] sm:$0xff] %vm3684_vm3, %v3649_v34  ;;  %4642 = vmatprep.mubr.msk.bf16.mxu0 %vm159_vm0, %v3753_v16 }
 0x7ea   :  { %v3651_v58 = vpop.permute.xlu1 %3650  ;;  %4659 = vmatmul.mubr.msk.bf16.gmra.mrb[80].mxu1 %vm159_vm0, %v3762_v46  ;;  %v3728_v47 = vld [vmem:[#allocation2 + $0x58] sm:$0xff] }
 0x7eb   :  { %3716 = vst.msk [vmem:[#allocation2 + $0xf8] sm:$0xff] %vm3684_vm3, %v3651_v58  ;;  %v3754_v11 = vpack.c.bf16 %v3728_v47, %v3727_v0 }
 0x7ec   :  { %v3745_v27 = vld [vmem:[#allocation2 + $0xe0] sm:$0xff] }
 0x7ed   :  { %4643 = vmatmul.mubr.msk.bf16.gmra.mrb[100].mxu0 %vm159_vm0, %v3754_v11 }
 0x7ee   :  { %v3746_v4 = vld [vmem:[#allocation2 + $0xe8] sm:$0xff] }
 0x7ef   :  { %v3763_v55 = vpack.c.bf16 %v3746_v4, %v3745_v27 }
 0x7f0   :  { %v3747_v6 = vld [vmem:[#allocation2 + $0xf0] sm:$0xff] }
 0x7f1   :  { %4662 = vmatprep.mubr.msk.bf16.mxu1 %vm159_vm0, %v3763_v55 }
 0x7f2   :  { %v3748_v48 = vld [vmem:[#allocation2 + $0xf8] sm:$0xff] }
 0x7f3   :  { %v3764_v23 = vpack.c.bf16 %v3748_v48, %v3747_v6 }
 0x7f5   :  { %4663 = vmatmul.mubr.msk.bf16.gmra.mrb[84].mxu1 %vm159_vm0, %v3764_v23 }
 0x855   :  { %v4636_v21 = vpop.f32.mrb[92].mxu0 }
 0x856   :  { %v3879_v35 = vadd.f32 %v4636_v21, %v6413_v3  ;;  %v3870_v15 = vpop.f32.mrb[93].mxu0 }
 0x857   :  { %v3871_v45 = vadd.f32 %v6413_v3, %v3870_v15  ;;  %v4637_v53 = vpop.f32.mrb[94].mxu0 }
 0x858   :  { %3999 = vst.msk [vmem:[%s6581_s6 + $0x10] sm:$0xff] %vm159_vm0, %v3879_v35  ;;  %v3882_v62 = vadd.f32 %v4637_v53, %v6413_v3  ;;  %v3873_v14 = vpop.f32.mrb[95].mxu0 }
 0x859   :  { %3997 = vst.msk [vmem:[%s6581_s6] sm:$0xff] %vm159_vm0, %v3871_v45  ;;  %v3874_v20 = vadd.f32 %v6413_v3, %v3873_v14 }
 0x85a   :  { %4000 = vst.msk [vmem:[%s6581_s6 + $0x18] sm:$0xff] %vm159_vm0, %v3882_v62 }
 0x85b   :  { %3998 = vst.msk [vmem:[%s6581_s6 + $0x8] sm:$0xff] %vm159_vm0, %v3874_v20 }
 0x87e   :  { %v4648_v44 = vpop.f32.mrb[68].mxu1 }
 0x87f   :  { %v3927_v42 = vadd.f32 %v4648_v44, %v6413_v3  ;;  %v3918_v1 = vpop.f32.mrb[69].mxu1 }
 0x880   :  { %v3919_v59 = vadd.f32 %v6413_v3, %v3918_v1  ;;  %v4649_v19 = vpop.f32.mrb[70].mxu1 }
 0x881   :  { %4011 = vst.msk [vmem:[%s6581_s6 + $0x70] sm:$0xff] %vm159_vm0, %v3927_v42  ;;  %v3930_v12 = vadd.f32 %v4649_v19, %v6413_v3  ;;  %v4640_v56 = vpop.f32.mrb[96].mxu0  ;;  %v3921_v18 = vpop.f32.mrb[71].mxu1 }
 0x882   :  { %4009 = vst.msk [vmem:[%s6581_s6 + $0x60] sm:$0xff] %vm159_vm0, %v3919_v59  ;;  %v3895_v63 = vadd.f32 %v4640_v56, %v6413_v3  ;;  %v3922_v22 = vadd.f32 %v6413_v3, %v3921_v18  ;;  %v3886_v41 = vpop.f32.mrb[97].mxu0 }
 0x883   :  { %4012 = vst.msk [vmem:[%s6581_s6 + $0x78] sm:$0xff] %vm159_vm0, %v3930_v12  ;;  %v3887_v5 = vadd.f32 %v6413_v3, %v3886_v41  ;;  %v4641_v54 = vpop.f32.mrb[98].mxu0 }
 0x884   :  { %4003 = vst.msk [vmem:[%s6581_s6 + $0x30] sm:$0xff] %vm159_vm0, %v3895_v63  ;;  %4010 = vst.msk [vmem:[%s6581_s6 + $0x68] sm:$0xff] %vm159_vm0, %v3922_v22  ;;  %v3898_v24 = vadd.f32 %v4641_v54, %v6413_v3  ;;  %v3889_v43 = vpop.f32.mrb[99].mxu0 }
 0x885   :  { %4001 = vst.msk [vmem:[%s6581_s6 + $0x20] sm:$0xff] %vm159_vm0, %v3887_v5  ;;  %v3890_v51 = vadd.f32 %v6413_v3, %v3889_v43 }
 0x886   :  { %4004 = vst.msk [vmem:[%s6581_s6 + $0x38] sm:$0xff] %vm159_vm0, %v3898_v24  ;;  %v4652_v52 = vpop.f32.mrb[72].mxu1 }
 0x887   :  { %4002 = vst.msk [vmem:[%s6581_s6 + $0x28] sm:$0xff] %vm159_vm0, %v3890_v51  ;;  %v3943_v57 = vadd.f32 %v4652_v52, %v6413_v3  ;;  %v3934_v25 = vpop.f32.mrb[73].mxu1 }
 0x888   :  { %v3935_v9 = vadd.f32 %v6413_v3, %v3934_v25  ;;  %v4653_v13 = vpop.f32.mrb[74].mxu1 }
 0x889   :  { %4015 = vst.msk [vmem:[%s6581_s6 + $0x90] sm:$0xff] %vm159_vm0, %v3943_v57  ;;  %v3946_v37 = vadd.f32 %v4653_v13, %v6413_v3  ;;  %v3937_v30 = vpop.f32.mrb[75].mxu1 }
 0x88a   :  { %4013 = vst.msk [vmem:[%s6581_s6 + $0x80] sm:$0xff] %vm159_vm0, %v3935_v9  ;;  %v3938_v8 = vadd.f32 %v6413_v3, %v3937_v30 }
 0x88b   :  { %4016 = vst.msk [vmem:[%s6581_s6 + $0x98] sm:$0xff] %vm159_vm0, %v3946_v37 }
 0x88c   :  { %4014 = vst.msk [vmem:[%s6581_s6 + $0x88] sm:$0xff] %vm159_vm0, %v3938_v8 }
 0x8b5   :  { %v4656_v26 = vpop.f32.mrb[76].mxu1 }
 0x8b6   :  { %v3959_v32 = vadd.f32 %v4656_v26, %v6413_v3  ;;  %v3950_v38 = vpop.f32.mrb[77].mxu1 }
 0x8b7   :  { %v3951_v36 = vadd.f32 %v6413_v3, %v3950_v38  ;;  %v4657_v60 = vpop.f32.mrb[78].mxu1 }
 0x8b8   :  { %4019 = vst.msk [vmem:[%s6581_s6 + $0xb0] sm:$0xff] %vm159_vm0, %v3959_v32  ;;  %v3962_v29 = vadd.f32 %v4657_v60, %v6413_v3  ;;  %v3953_v28 = vpop.f32.mrb[79].mxu1 }
 0x8b9   :  { %4017 = vst.msk [vmem:[%s6581_s6 + $0xa0] sm:$0xff] %vm159_vm0, %v3951_v36  ;;  %v3954_v49 = vadd.f32 %v6413_v3, %v3953_v28 }
 0x8ba   :  { %4020 = vst.msk [vmem:[%s6581_s6 + $0xb8] sm:$0xff] %vm159_vm0, %v3962_v29 }
 0x8bb   :  { %4018 = vst.msk [vmem:[%s6581_s6 + $0xa8] sm:$0xff] %vm159_vm0, %v3954_v49 }
 0x8bd   :  { %v4660_v61 = vpop.f32.mrb[80].mxu1 }
 0x8be   :  { %v3975_v50 = vadd.f32 %v4660_v61, %v6413_v3  ;;  %v3966_v31 = vpop.f32.mrb[81].mxu1 }
 0x8bf   :  { %v3967_v10 = vadd.f32 %v6413_v3, %v3966_v31  ;;  %v4661_v33 = vpop.f32.mrb[82].mxu1 }
 0x8c0   :  { %4023 = vst.msk [vmem:[%s6581_s6 + $0xd0] sm:$0xff] %vm159_vm0, %v3975_v50  ;;  %v3978_v2 = vadd.f32 %v4661_v33, %v6413_v3  ;;  %v4644_v7 = vpop.f32.mrb[100].mxu0  ;;  %v3969_v40 = vpop.f32.mrb[83].mxu1 }
 0x8c1   :  { %4021 = vst.msk [vmem:[%s6581_s6 + $0xc0] sm:$0xff] %vm159_vm0, %v3967_v10  ;;  %v3911_v39 = vadd.f32 %v4644_v7, %v6413_v3  ;;  %v3970_v16 = vadd.f32 %v6413_v3, %v3969_v40  ;;  %v3902_v17 = vpop.f32.mrb[101].mxu0 }
 0x8c2   :  { %4024 = vst.msk [vmem:[%s6581_s6 + $0xd8] sm:$0xff] %vm159_vm0, %v3978_v2  ;;  %v3903_v34 = vadd.f32 %v6413_v3, %v3902_v17  ;;  %v4645_v46 = vpop.f32.mrb[102].mxu0 }
 0x8c3   :  { %4007 = vst.msk [vmem:[%s6581_s6 + $0x50] sm:$0xff] %vm159_vm0, %v3911_v39  ;;  %4022 = vst.msk [vmem:[%s6581_s6 + $0xc8] sm:$0xff] %vm159_vm0, %v3970_v16  ;;  %v3914_v58 = vadd.f32 %v4645_v46, %v6413_v3  ;;  %v3905_v0 = vpop.f32.mrb[103].mxu0 }
 0x8c4   :  { %4005 = vst.msk [vmem:[%s6581_s6 + $0x40] sm:$0xff] %vm159_vm0, %v3903_v34  ;;  %v3906_v47 = vadd.f32 %v6413_v3, %v3905_v0 }
 0x8c5   :  { %4008 = vst.msk [vmem:[%s6581_s6 + $0x58] sm:$0xff] %vm159_vm0, %v3914_v58 }
 0x8c6   :  { %4006 = vst.msk [vmem:[%s6581_s6 + $0x48] sm:$0xff] %vm159_vm0, %v3906_v47 }
 0x8c8   :  { %v4664_v11 = vpop.f32.mrb[84].mxu1 }
 0x8c9   :  { %v3991_v27 = vadd.f32 %v4664_v11, %v6413_v3  ;;  %v3982_v4 = vpop.f32.mrb[85].mxu1 }
 0x8ca   :  { %v3983_v55 = vadd.f32 %v6413_v3, %v3982_v4  ;;  %v4665_v6 = vpop.f32.mrb[86].mxu1 }
 0x8cb   :  { %4027 = vst.msk [vmem:[%s6581_s6 + $0xf0] sm:$0xff] %vm159_vm0, %v3991_v27  ;;  %v3994_v48 = vadd.f32 %v4665_v6, %v6413_v3  ;;  %v3985_v23 = vpop.f32.mrb[87].mxu1 }
 0x8cc   :  { %4025 = vst.msk [vmem:[%s6581_s6 + $0xe0] sm:$0xff] %vm159_vm0, %v3983_v55  ;;  %v3986_v21 = vadd.f32 %v6413_v3, %v3985_v23 }
 0x8cd   :  { %4028 = vst.msk [vmem:[%s6581_s6 + $0xf8] sm:$0xff] %vm159_vm0, %v3994_v48 }
 0x8ce   :  { %4026 = vst.msk [vmem:[%s6581_s6 + $0xe8] sm:$0xff] %vm159_vm0, %v3986_v21 }

</bundles_post_ra>
